<compile_context>
chip_gen: v7x
topology: tpu7x:2x2x1
jax: 0.10.0
libtpu: 0.0.40
codegen_flags: <defaults>
</compile_context>

<pallas_src>
import math
import functools

import jax
import jax.numpy as jnp
from jax import lax
from jax.experimental import pallas as pl
from jax.experimental.pallas import tpu as pltpu

LN_EPS = 1e-5  # nn.LayerNorm default


def _msa_block_kernel(x_ref, g_ref, beta_ref, w_in_ref, b_in_ref, w_o_ref, b_o_ref,
                      o_ref, *, num_heads):
    b_tile, N, D = x_ref.shape
    hd = D // num_heads

    # --- LayerNorm over D on the collapsed (b_tile*N, D) slab (f32 stats,
    #     biased variance, eps=1e-5: matches torch) ---
    x = x_ref[...].astype(jnp.float32).reshape(b_tile * N, D)
    mu = jnp.mean(x, axis=-1, keepdims=True)
    var = jnp.mean((x - mu) * (x - mu), axis=-1, keepdims=True)
    xn = (x - mu) * lax.rsqrt(var + LN_EPS)
    xn = xn * g_ref[...].astype(jnp.float32) + beta_ref[...].astype(jnp.float32)

    # --- Fused QKV projection on the MXU: (b_tile*N, D) @ (D, 3D), f32 acc ---
    qkv = jnp.dot(xn.astype(w_in_ref.dtype), w_in_ref[...],
                  preferred_element_type=jnp.float32)
    qkv = qkv + b_in_ref[...].astype(jnp.float32)
    # Downcast once: bf16 operands give single-pass MXU matmuls and halve the
    # live qkv footprint; all accumulation below stays f32.
    qkv = qkv.astype(jnp.bfloat16)

    b_o = b_o_ref[...].astype(jnp.float32)

    for b in range(b_tile):
        r0 = b * N
        # Fused per-head output-projection accumulator (lane-dense (N, D) f32).
        acc = jnp.zeros((N, D), jnp.float32)
        for h in range(num_heads):
            c0 = h * hd
            # Slice qkv directly (no full-width q/k/v temporaries).
            qh = qkv[r0:r0 + N, c0:c0 + hd]                     # scale pre-folded into w_in
            kh = qkv[r0:r0 + N, D + c0:D + c0 + hd]
            vh = qkv[r0:r0 + N, 2 * D + c0:2 * D + c0 + hd]

            # q @ k^T without materializing the transpose (contract last dims).
            s = lax.dot_general(qh, kh, (((1,), (1,)), ((), ())),
                                preferred_element_type=jnp.float32)       # (N, N)
            s = s - jnp.max(s, axis=-1, keepdims=True)
            p = jnp.exp(s)
            p = p * pl.reciprocal(jnp.sum(p, axis=-1, keepdims=True), approx=True)
            # TODO(synk): attention-weight dropout (p=ATTN_DROPOUT) is train-mode
            # only; inference forward is identity, so it is not applied here.

            ctx_h = jnp.dot(p.astype(vh.dtype), vh,
                            preferred_element_type=jnp.float32)           # (N, hd)
            # Fused output projection: (N, hd) @ (hd, D) accumulated in place.
            acc = acc + jnp.dot(ctx_h.astype(w_o_ref.dtype),
                                w_o_ref[c0:c0 + hd, :],
                                preferred_element_type=jnp.float32)
        o_ref[b] = (acc + b_o).astype(o_ref.dtype)


def _pick_b_tile(B, N, D, itemsize):
    """Largest divisor of B that keeps >=2 grid steps (v7x megacore) and fits a
    conservative per-step VMEM budget."""
    best = 1
    for t in range(1, B + 1):
        if B % t:
            continue
        if B >= 2 and B // t < 2:
            continue  # keep at least 2 "parallel" steps so both v7x TCs get work
        rows = t * N
        live = (2 * rows * D * itemsize          # in + out blocks
                + rows * D * 4                   # xn (f32)
                + rows * 3 * D * (4 + 2)         # f32 qkv + bf16 qkv
                + N * D * 4 + N * N * 4)         # out-proj accumulator + scores
        if live <= 24 * (1 << 20):
            best = t
    return best


def _vmem_limit_bytes(b_tile, N, D, x_itemsize, param_itemsize):
    """Derive the scoped-VMEM request from the actual block sizes (+ headroom)."""
    x_blk = b_tile * N * D * x_itemsize
    params = (D * 3 * D + 3 * D + D * D + D + 2 * D) * param_itemsize
    scratch = (b_tile * N * D * 4                # xn f32
               + b_tile * N * 3 * D * (4 + 2)    # f32 + bf16 qkv
               + N * D * 4 + N * N * 4)          # acc + scores
    needed = 2 * (2 * x_blk) + 2 * params + scratch   # double-buffered I/O + params
    return int(min(100 << 20, max(32 << 20, 2 * needed)))


def msa_block(x, gamma, beta, w_in, b_in, w_o, b_o, *, num_heads=4, b_tile=None):
    """x: [B, N, D]; gamma/beta: [D]; w_in: [D, 3D]; b_in: [3D]; w_o: [D, D]; b_o: [D]."""
    assert x.ndim == 3, f"input must be [B N D], got shape {x.shape}"
    B, N, D = x.shape
    assert gamma.shape == (D,) and beta.shape == (D,)
    assert w_in.shape == (D, 3 * D) and b_in.shape == (3 * D,)
    assert w_o.shape == (D, D) and b_o.shape == (D,)
    assert D % num_heads == 0, "embed dim must be divisible by num_heads"
    hd = D // num_heads
    scale = 1.0 / math.sqrt(hd)

    # One-time weight transform: fold the 1/sqrt(hd) attention scale into the
    # Q columns of the fused QKV weight/bias (removes per-step VPU multiplies).
    w_in_s = jnp.concatenate([w_in[:, :D] * scale, w_in[:, D:]], axis=1)
    b_in_s = jnp.concatenate([b_in[:D] * scale, b_in[D:]])

    g2 = gamma.reshape(1, D)
    be2 = beta.reshape(1, D)
    bi2 = b_in_s.reshape(1, 3 * D)
    bo2 = b_o.reshape(1, D)

    if b_tile is None:
        b_tile = _pick_b_tile(B, N, D, jnp.dtype(x.dtype).itemsize)
    assert B % b_tile == 0, f"b_tile={b_tile} must divide B={B}"

    vmem_limit = _vmem_limit_bytes(b_tile, N, D,
                                   jnp.dtype(x.dtype).itemsize,
                                   jnp.dtype(w_in.dtype).itemsize)

    kernel = functools.partial(_msa_block_kernel, num_heads=num_heads)

    # NOTE: per-step row tile is b_tile full sequences.  For very large N one
    # would add a query-tile grid axis with a flash-style accumulator and
    # re-derive tiles against v7x's 64 MiB VMEM; for CCT-sized N the whole
    # sequence fits comfortably.
    # NOTE: at large D the constant-index param specs could be single-buffered
    # (pipeline_mode=pl.Buffered(1)) to halve resident weight VMEM; negligible
    # at D=256, so left at the default double-buffering here.
    return pl.pallas_call(
        kernel,
        out_shape=jax.ShapeDtypeStruct((B, N, D), x.dtype),
        grid_spec=pltpu.PrefetchScalarGridSpec(
            num_scalar_prefetch=0,
            grid=(B // b_tile,),
            in_specs=[
                pl.BlockSpec((b_tile, N, D), lambda b: (b, 0, 0)),  # x tile
                pl.BlockSpec((1, D), lambda b: (0, 0)),             # gamma (resident)
                pl.BlockSpec((1, D), lambda b: (0, 0)),             # beta
                pl.BlockSpec((D, 3 * D), lambda b: (0, 0)),         # fused QKV weight
                pl.BlockSpec((1, 3 * D), lambda b: (0, 0)),         # fused QKV bias
                pl.BlockSpec((D, D), lambda b: (0, 0)),             # out-proj weight
                pl.BlockSpec((1, D), lambda b: (0, 0)),             # out-proj bias
            ],
            out_specs=pl.BlockSpec((b_tile, N, D), lambda b: (b, 0, 0)),
        ),
        compiler_params=pltpu.CompilerParams(
            dimension_semantics=("parallel",),
            vmem_limit_bytes=vmem_limit,
        ),
    )(x, g2, be2, w_in_s, bi2, w_o, bo2)


def msa_block_ref(x, gamma, beta, w_in, b_in, w_o, b_o, num_heads):
    """Pure-JAX reference (eval-mode nn.MultiheadAttention semantics)."""
    hi = lax.Precision.HIGHEST
    xf = x.astype(jnp.float32)
    mu = jnp.mean(xf, axis=-1, keepdims=True)
    var = jnp.mean((xf - mu) ** 2, axis=-1, keepdims=True)
    xn = (xf - mu) * lax.rsqrt(var + LN_EPS) * gamma + beta

    B, N, D = x.shape
    hd = D // num_heads
    qkv = jnp.dot(xn, w_in.astype(jnp.float32), precision=hi) + b_in
    q, k, v = qkv[..., :D], qkv[..., D:2 * D], qkv[..., 2 * D:]

    def split(t):  # (B, N, D) -> (B, H, N, hd)
        return t.reshape(B, N, num_heads, hd).transpose(0, 2, 1, 3)

    qh, kh, vh = split(q), split(k), split(v)
    s = jnp.einsum("bhqd,bhkd->bhqk", qh, kh, precision=hi) / math.sqrt(hd)
    p = jax.nn.softmax(s, axis=-1)
    ctx = jnp.einsum("bhqk,bhkd->bhqd", p, vh, precision=hi)
    ctx = ctx.transpose(0, 2, 1, 3).reshape(B, N, D)
    out = jnp.dot(ctx, w_o.astype(jnp.float32), precision=hi) + b_o
    return out.astype(x.dtype)


if __name__ == "__main__":
    # Small shapes consistent with [B, N, D] forward: EMBED_DIM=256 (lane-dense,
    # multiple of 128), NUM_MSA_HEADS=4, short sequence.
    B, N, D = 2, 64, 256
    NUM_HEADS = 4

    key = jax.random.PRNGKey(0)
    kx, kg, kb, kwi, kbi, kwo, kbo = jax.random.split(key, 7)

    x = jax.random.normal(kx, (B, N, D), dtype=jnp.float32)
    gamma = 1.0 + 0.05 * jax.random.normal(kg, (D,), dtype=jnp.float32)
    beta = 0.05 * jax.random.normal(kb, (D,), dtype=jnp.float32)
    w_in = jax.random.normal(kwi, (D, 3 * D), dtype=jnp.float32) / jnp.sqrt(D)
    b_in = 0.05 * jax.random.normal(kbi, (3 * D,), dtype=jnp.float32)
    w_o = jax.random.normal(kwo, (D, D), dtype=jnp.float32) / jnp.sqrt(D)
    b_o = 0.05 * jax.random.normal(kbo, (D,), dtype=jnp.float32)

    out = msa_block(x, gamma, beta, w_in, b_in, w_o, b_o, num_heads=NUM_HEADS)
    out = jax.block_until_ready(out)

    ref = msa_block_ref(x, gamma, beta, w_in, b_in, w_o, b_o, NUM_HEADS)
    assert out.shape == (B, N, D)
    # Tolerance accounts for bf16 attention operands + MXU default-precision f32
    # projections vs the HIGHEST-precision f32 reference (inference-grade).
    assert jnp.allclose(out, ref, atol=2e-2, rtol=2e-2), "mismatch vs reference"

    print("KERNEL_OK")
</pallas_src>

<mosaic_0001>
module attributes {stable_mosaic.version = 11 : i64} {
  func.func @_msa_block_kernel(%arg0: i32, %arg1: memref<1x64x256xf32, #tpu.memory_space<vmem>>, %arg2: memref<1x256xf32, #tpu.memory_space<vmem>>, %arg3: memref<1x256xf32, #tpu.memory_space<vmem>>, %arg4: memref<256x768xf32, #tpu.memory_space<vmem>>, %arg5: memref<1x768xf32, #tpu.memory_space<vmem>>, %arg6: memref<256x256xf32, #tpu.memory_space<vmem>>, %arg7: memref<1x256xf32, #tpu.memory_space<vmem>>, %arg8: memref<1x64x256xf32, #tpu.memory_space<vmem>>) attributes {dimension_semantics = [#tpu.dimension_semantics<parallel>], iteration_bounds = array<i64: 2>, scalar_prefetch = 0 : i64, scratch_operands = 0 : i64, tpu.core_type = #tpu.core_type<tc>, window_params = [{transform_indices = @transform_0, window_bounds = array<i64: 1, 64, 256>}, {pipeline_mode = #tpu.pipeline_mode<synchronous>, transform_indices = @transform_1, window_bounds = array<i64: 1, 256>}, {pipeline_mode = #tpu.pipeline_mode<synchronous>, transform_indices = @transform_2, window_bounds = array<i64: 1, 256>}, {pipeline_mode = #tpu.pipeline_mode<synchronous>, transform_indices = @transform_3, window_bounds = array<i64: 256, 768>}, {pipeline_mode = #tpu.pipeline_mode<synchronous>, transform_indices = @transform_4, window_bounds = array<i64: 1, 768>}, {pipeline_mode = #tpu.pipeline_mode<synchronous>, transform_indices = @transform_5, window_bounds = array<i64: 256, 256>}, {pipeline_mode = #tpu.pipeline_mode<synchronous>, transform_indices = @transform_6, window_bounds = array<i64: 1, 256>}, {transform_indices = @transform_7, window_bounds = array<i64: 1, 64, 256>}]} {
    %c0 = arith.constant 0 : index
    %c0_0 = arith.constant 0 : index
    %c0_1 = arith.constant 0 : index
    %0 = vector.load %arg1[%c0, %c0_0, %c0_1] : memref<1x64x256xf32, #tpu.memory_space<vmem>>, vector<1x64x256xf32>
    %1 = vector.shape_cast %0 : vector<1x64x256xf32> to vector<64x256xf32>
    %cst = arith.constant dense<0.000000e+00> : vector<64xf32>
    %2 = vector.multi_reduction <add>, %1, %cst [1] : vector<64x256xf32> to vector<64xf32>
    %3 = vector.shape_cast %2 : vector<64xf32> to vector<64x1xf32>
    %cst_2 = arith.constant 2.560000e+02 : f32
    %4 = vector.broadcast %cst_2 : f32 to vector<64x1xf32>
    %5 = arith.divf %3, %4 : vector<64x1xf32>
    %6 = vector.broadcast %5 : vector<64x1xf32> to vector<64x256xf32>
    %7 = arith.subf %1, %6 : vector<64x256xf32>
    %8 = vector.broadcast %5 : vector<64x1xf32> to vector<64x256xf32>
    %9 = arith.subf %1, %8 : vector<64x256xf32>
    %10 = arith.mulf %7, %9 : vector<64x256xf32>
    %cst_3 = arith.constant dense<0.000000e+00> : vector<64xf32>
    %11 = vector.multi_reduction <add>, %10, %cst_3 [1] : vector<64x256xf32> to vector<64xf32>
    %12 = vector.shape_cast %11 : vector<64xf32> to vector<64x1xf32>
    %cst_4 = arith.constant 2.560000e+02 : f32
    %13 = vector.broadcast %cst_4 : f32 to vector<64x1xf32>
    %14 = arith.divf %12, %13 : vector<64x1xf32>
    %15 = vector.broadcast %5 : vector<64x1xf32> to vector<64x256xf32>
    %16 = arith.subf %1, %15 : vector<64x256xf32>
    %cst_5 = arith.constant 9.99999974E-6 : f32
    %17 = vector.broadcast %cst_5 : f32 to vector<64x1xf32>
    %18 = arith.addf %14, %17 : vector<64x1xf32>
    %19 = math.rsqrt %18 : vector<64x1xf32>
    %20 = vector.broadcast %19 : vector<64x1xf32> to vector<64x256xf32>
    %21 = arith.mulf %16, %20 : vector<64x256xf32>
    %c0_6 = arith.constant 0 : index
    %c0_7 = arith.constant 0 : index
    %22 = vector.load %arg2[%c0_6, %c0_7] : memref<1x256xf32, #tpu.memory_space<vmem>>, vector<1x256xf32>
    %23 = vector.broadcast %22 : vector<1x256xf32> to vector<64x256xf32>
    %24 = arith.mulf %21, %23 : vector<64x256xf32>
    %c0_8 = arith.constant 0 : index
    %c0_9 = arith.constant 0 : index
    %25 = vector.load %arg3[%c0_8, %c0_9] : memref<1x256xf32, #tpu.memory_space<vmem>>, vector<1x256xf32>
    %26 = vector.broadcast %25 : vector<1x256xf32> to vector<64x256xf32>
    %27 = arith.addf %24, %26 : vector<64x256xf32>
    %c0_10 = arith.constant 0 : index
    %c0_11 = arith.constant 0 : index
    %28 = vector.load %arg4[%c0_10, %c0_11] : memref<256x768xf32, #tpu.memory_space<vmem>>, vector<256x768xf32>
    %cst_12 = arith.constant dense<0.000000e+00> : vector<64x768xf32>
    %29 = tpu.matmul %27, %28, %cst_12 {dimension_numbers = #tpu.dot_dimension_numbers<[1], [0], [0], [1], [0, 0, 1, 1], [], []>} : vector<64x256xf32>, vector<256x768xf32>, vector<64x768xf32> -> vector<64x768xf32>
    %c0_13 = arith.constant 0 : index
    %c0_14 = arith.constant 0 : index
    %30 = vector.load %arg5[%c0_13, %c0_14] : memref<1x768xf32, #tpu.memory_space<vmem>>, vector<1x768xf32>
    %31 = vector.broadcast %30 : vector<1x768xf32> to vector<64x768xf32>
    %32 = arith.addf %29, %31 : vector<64x768xf32>
    %33 = arith.truncf %32 : vector<64x768xf32> to vector<64x768xbf16>
    %c0_15 = arith.constant 0 : index
    %c0_16 = arith.constant 0 : index
    %34 = vector.load %arg7[%c0_15, %c0_16] : memref<1x256xf32, #tpu.memory_space<vmem>>, vector<1x256xf32>
    %cst_17 = arith.constant 0.000000e+00 : f32
    %35 = vector.broadcast %cst_17 : f32 to vector<64x256xf32>
    %36 = vector.extract_strided_slice %33 {offsets = [0, 0], sizes = [64, 64], strides = [1, 1]} : vector<64x768xbf16> to vector<64x64xbf16>
    %37 = vector.extract_strided_slice %33 {offsets = [0, 256], sizes = [64, 64], strides = [1, 1]} : vector<64x768xbf16> to vector<64x64xbf16>
    %38 = vector.extract_strided_slice %33 {offsets = [0, 512], sizes = [64, 64], strides = [1, 1]} : vector<64x768xbf16> to vector<64x64xbf16>
    %cst_18 = arith.constant dense<0.000000e+00> : vector<64x64xf32>
    %39 = tpu.matmul %36, %37, %cst_18 {dimension_numbers = #tpu.dot_dimension_numbers<[1], [1], [0], [0], [0, 0, 1, 0], [], []>} : vector<64x64xbf16>, vector<64x64xbf16>, vector<64x64xf32> -> vector<64x64xf32>
    %cst_19 = arith.constant dense<0xFF800000> : vector<64xf32>
    %40 = vector.multi_reduction <maximumf>, %39, %cst_19 [1] : vector<64x64xf32> to vector<64xf32>
    %41 = vector.shape_cast %40 : vector<64xf32> to vector<64x1xf32>
    %42 = vector.broadcast %41 : vector<64x1xf32> to vector<64x64xf32>
    %43 = arith.subf %39, %42 : vector<64x64xf32>
    %44 = math.exp %43 : vector<64x64xf32>
    %cst_20 = arith.constant dense<0.000000e+00> : vector<64xf32>
    %45 = vector.multi_reduction <add>, %44, %cst_20 [1] : vector<64x64xf32> to vector<64xf32>
    %46 = vector.shape_cast %45 : vector<64xf32> to vector<64x1xf32>
    %47 = tpu.reciprocal %46 {approx = true} : vector<64x1xf32> -> vector<64x1xf32>
    %48 = vector.broadcast %47 : vector<64x1xf32> to vector<64x64xf32>
    %49 = arith.mulf %44, %48 : vector<64x64xf32>
    %50 = arith.truncf %49 : vector<64x64xf32> to vector<64x64xbf16>
    %cst_21 = arith.constant dense<0.000000e+00> : vector<64x64xf32>
    %51 = tpu.matmul %50, %38, %cst_21 {dimension_numbers = #tpu.dot_dimension_numbers<[1], [0], [0], [1], [0, 0, 1, 1], [], []>} : vector<64x64xbf16>, vector<64x64xbf16>, vector<64x64xf32> -> vector<64x64xf32>
    %c0_22 = arith.constant 0 : index
    %c0_23 = arith.constant 0 : index
    %52 = vector.load %arg6[%c0_22, %c0_23] : memref<256x256xf32, #tpu.memory_space<vmem>>, vector<64x256xf32>
    %cst_24 = arith.constant dense<0.000000e+00> : vector<64x256xf32>
    %53 = tpu.matmul %51, %52, %cst_24 {dimension_numbers = #tpu.dot_dimension_numbers<[1], [0], [0], [1], [0, 0, 1, 1], [], []>} : vector<64x64xf32>, vector<64x256xf32>, vector<64x256xf32> -> vector<64x256xf32>
    %54 = arith.addf %35, %53 : vector<64x256xf32>
    %55 = vector.extract_strided_slice %33 {offsets = [0, 64], sizes = [64, 64], strides = [1, 1]} : vector<64x768xbf16> to vector<64x64xbf16>
    %56 = vector.extract_strided_slice %33 {offsets = [0, 320], sizes = [64, 64], strides = [1, 1]} : vector<64x768xbf16> to vector<64x64xbf16>
    %57 = vector.extract_strided_slice %33 {offsets = [0, 576], sizes = [64, 64], strides = [1, 1]} : vector<64x768xbf16> to vector<64x64xbf16>
    %cst_25 = arith.constant dense<0.000000e+00> : vector<64x64xf32>
    %58 = tpu.matmul %55, %56, %cst_25 {dimension_numbers = #tpu.dot_dimension_numbers<[1], [1], [0], [0], [0, 0, 1, 0], [], []>} : vector<64x64xbf16>, vector<64x64xbf16>, vector<64x64xf32> -> vector<64x64xf32>
    %cst_26 = arith.constant dense<0xFF800000> : vector<64xf32>
    %59 = vector.multi_reduction <maximumf>, %58, %cst_26 [1] : vector<64x64xf32> to vector<64xf32>
    %60 = vector.shape_cast %59 : vector<64xf32> to vector<64x1xf32>
    %61 = vector.broadcast %60 : vector<64x1xf32> to vector<64x64xf32>
    %62 = arith.subf %58, %61 : vector<64x64xf32>
    %63 = math.exp %62 : vector<64x64xf32>
    %cst_27 = arith.constant dense<0.000000e+00> : vector<64xf32>
    %64 = vector.multi_reduction <add>, %63, %cst_27 [1] : vector<64x64xf32> to vector<64xf32>
    %65 = vector.shape_cast %64 : vector<64xf32> to vector<64x1xf32>
    %66 = tpu.reciprocal %65 {approx = true} : vector<64x1xf32> -> vector<64x1xf32>
    %67 = vector.broadcast %66 : vector<64x1xf32> to vector<64x64xf32>
    %68 = arith.mulf %63, %67 : vector<64x64xf32>
    %69 = arith.truncf %68 : vector<64x64xf32> to vector<64x64xbf16>
    %cst_28 = arith.constant dense<0.000000e+00> : vector<64x64xf32>
    %70 = tpu.matmul %69, %57, %cst_28 {dimension_numbers = #tpu.dot_dimension_numbers<[1], [0], [0], [1], [0, 0, 1, 1], [], []>} : vector<64x64xbf16>, vector<64x64xbf16>, vector<64x64xf32> -> vector<64x64xf32>
    %c64 = arith.constant 64 : index
    %c0_29 = arith.constant 0 : index
    %71 = vector.load %arg6[%c64, %c0_29] : memref<256x256xf32, #tpu.memory_space<vmem>>, vector<64x256xf32>
    %cst_30 = arith.constant dense<0.000000e+00> : vector<64x256xf32>
    %72 = tpu.matmul %70, %71, %cst_30 {dimension_numbers = #tpu.dot_dimension_numbers<[1], [0], [0], [1], [0, 0, 1, 1], [], []>} : vector<64x64xf32>, vector<64x256xf32>, vector<64x256xf32> -> vector<64x256xf32>
    %73 = arith.addf %54, %72 : vector<64x256xf32>
    %74 = vector.extract_strided_slice %33 {offsets = [0, 128], sizes = [64, 64], strides = [1, 1]} : vector<64x768xbf16> to vector<64x64xbf16>
    %75 = vector.extract_strided_slice %33 {offsets = [0, 384], sizes = [64, 64], strides = [1, 1]} : vector<64x768xbf16> to vector<64x64xbf16>
    %76 = vector.extract_strided_slice %33 {offsets = [0, 640], sizes = [64, 64], strides = [1, 1]} : vector<64x768xbf16> to vector<64x64xbf16>
    %cst_31 = arith.constant dense<0.000000e+00> : vector<64x64xf32>
    %77 = tpu.matmul %74, %75, %cst_31 {dimension_numbers = #tpu.dot_dimension_numbers<[1], [1], [0], [0], [0, 0, 1, 0], [], []>} : vector<64x64xbf16>, vector<64x64xbf16>, vector<64x64xf32> -> vector<64x64xf32>
    %cst_32 = arith.constant dense<0xFF800000> : vector<64xf32>
    %78 = vector.multi_reduction <maximumf>, %77, %cst_32 [1] : vector<64x64xf32> to vector<64xf32>
    %79 = vector.shape_cast %78 : vector<64xf32> to vector<64x1xf32>
    %80 = vector.broadcast %79 : vector<64x1xf32> to vector<64x64xf32>
    %81 = arith.subf %77, %80 : vector<64x64xf32>
    %82 = math.exp %81 : vector<64x64xf32>
    %cst_33 = arith.constant dense<0.000000e+00> : vector<64xf32>
    %83 = vector.multi_reduction <add>, %82, %cst_33 [1] : vector<64x64xf32> to vector<64xf32>
    %84 = vector.shape_cast %83 : vector<64xf32> to vector<64x1xf32>
    %85 = tpu.reciprocal %84 {approx = true} : vector<64x1xf32> -> vector<64x1xf32>
    %86 = vector.broadcast %85 : vector<64x1xf32> to vector<64x64xf32>
    %87 = arith.mulf %82, %86 : vector<64x64xf32>
    %88 = arith.truncf %87 : vector<64x64xf32> to vector<64x64xbf16>
    %cst_34 = arith.constant dense<0.000000e+00> : vector<64x64xf32>
    %89 = tpu.matmul %88, %76, %cst_34 {dimension_numbers = #tpu.dot_dimension_numbers<[1], [0], [0], [1], [0, 0, 1, 1], [], []>} : vector<64x64xbf16>, vector<64x64xbf16>, vector<64x64xf32> -> vector<64x64xf32>
    %c128 = arith.constant 128 : index
    %c0_35 = arith.constant 0 : index
    %90 = vector.load %arg6[%c128, %c0_35] : memref<256x256xf32, #tpu.memory_space<vmem>>, vector<64x256xf32>
    %cst_36 = arith.constant dense<0.000000e+00> : vector<64x256xf32>
    %91 = tpu.matmul %89, %90, %cst_36 {dimension_numbers = #tpu.dot_dimension_numbers<[1], [0], [0], [1], [0, 0, 1, 1], [], []>} : vector<64x64xf32>, vector<64x256xf32>, vector<64x256xf32> -> vector<64x256xf32>
    %92 = arith.addf %73, %91 : vector<64x256xf32>
    %93 = vector.extract_strided_slice %33 {offsets = [0, 192], sizes = [64, 64], strides = [1, 1]} : vector<64x768xbf16> to vector<64x64xbf16>
    %94 = vector.extract_strided_slice %33 {offsets = [0, 448], sizes = [64, 64], strides = [1, 1]} : vector<64x768xbf16> to vector<64x64xbf16>
    %95 = vector.extract_strided_slice %33 {offsets = [0, 704], sizes = [64, 64], strides = [1, 1]} : vector<64x768xbf16> to vector<64x64xbf16>
    %cst_37 = arith.constant dense<0.000000e+00> : vector<64x64xf32>
    %96 = tpu.matmul %93, %94, %cst_37 {dimension_numbers = #tpu.dot_dimension_numbers<[1], [1], [0], [0], [0, 0, 1, 0], [], []>} : vector<64x64xbf16>, vector<64x64xbf16>, vector<64x64xf32> -> vector<64x64xf32>
    %cst_38 = arith.constant dense<0xFF800000> : vector<64xf32>
    %97 = vector.multi_reduction <maximumf>, %96, %cst_38 [1] : vector<64x64xf32> to vector<64xf32>
    %98 = vector.shape_cast %97 : vector<64xf32> to vector<64x1xf32>
    %99 = vector.broadcast %98 : vector<64x1xf32> to vector<64x64xf32>
    %100 = arith.subf %96, %99 : vector<64x64xf32>
    %101 = math.exp %100 : vector<64x64xf32>
    %cst_39 = arith.constant dense<0.000000e+00> : vector<64xf32>
    %102 = vector.multi_reduction <add>, %101, %cst_39 [1] : vector<64x64xf32> to vector<64xf32>
    %103 = vector.shape_cast %102 : vector<64xf32> to vector<64x1xf32>
    %104 = tpu.reciprocal %103 {approx = true} : vector<64x1xf32> -> vector<64x1xf32>
    %105 = vector.broadcast %104 : vector<64x1xf32> to vector<64x64xf32>
    %106 = arith.mulf %101, %105 : vector<64x64xf32>
    %107 = arith.truncf %106 : vector<64x64xf32> to vector<64x64xbf16>
    %cst_40 = arith.constant dense<0.000000e+00> : vector<64x64xf32>
    %108 = tpu.matmul %107, %95, %cst_40 {dimension_numbers = #tpu.dot_dimension_numbers<[1], [0], [0], [1], [0, 0, 1, 1], [], []>} : vector<64x64xbf16>, vector<64x64xbf16>, vector<64x64xf32> -> vector<64x64xf32>
    %c192 = arith.constant 192 : index
    %c0_41 = arith.constant 0 : index
    %109 = vector.load %arg6[%c192, %c0_41] : memref<256x256xf32, #tpu.memory_space<vmem>>, vector<64x256xf32>
    %cst_42 = arith.constant dense<0.000000e+00> : vector<64x256xf32>
    %110 = tpu.matmul %108, %109, %cst_42 {dimension_numbers = #tpu.dot_dimension_numbers<[1], [0], [0], [1], [0, 0, 1, 1], [], []>} : vector<64x64xf32>, vector<64x256xf32>, vector<64x256xf32> -> vector<64x256xf32>
    %111 = arith.addf %92, %110 : vector<64x256xf32>
    %112 = vector.broadcast %34 : vector<1x256xf32> to vector<64x256xf32>
    %113 = arith.addf %111, %112 : vector<64x256xf32>
    %c0_43 = arith.constant 0 : index
    %c0_44 = arith.constant 0 : index
    %c0_45 = arith.constant 0 : index
    %114 = vector.load %arg8[%c0_43, %c0_44, %c0_45] : memref<1x64x256xf32, #tpu.memory_space<vmem>>, vector<1x64x256xf32>
    %115 = vector.shape_cast %114 : vector<1x64x256xf32> to vector<64x256xf32>
    %116 = vector.shape_cast %113 : vector<64x256xf32> to vector<1x64x256xf32>
    tpu.vector_store %arg8[%c0_43, %c0_44, %c0_45], %116 {strides = array<i32>} : memref<1x64x256xf32, #tpu.memory_space<vmem>>, vector<1x64x256xf32>,
    return
  }
  func.func @transform_0(%arg0: i32) -> (i32, i32, i32) {
    %c0_i32 = arith.constant 0 : i32
    %c0_i32_0 = arith.constant 0 : i32
    %c0_i32_1 = arith.constant 0 : i32
    return %arg0, %c0_i32, %c0_i32_0 : i32, i32, i32
  }
  func.func @transform_1(%arg0: i32) -> (i32, i32) {
    %c0_i32 = arith.constant 0 : i32
    %c0_i32_0 = arith.constant 0 : i32
    %c0_i32_1 = arith.constant 0 : i32
    return %c0_i32, %c0_i32_0 : i32, i32
  }
  func.func @transform_2(%arg0: i32) -> (i32, i32) {
    %c0_i32 = arith.constant 0 : i32
    %c0_i32_0 = arith.constant 0 : i32
    %c0_i32_1 = arith.constant 0 : i32
    return %c0_i32, %c0_i32_0 : i32, i32
  }
  func.func @transform_3(%arg0: i32) -> (i32, i32) {
    %c0_i32 = arith.constant 0 : i32
    %c0_i32_0 = arith.constant 0 : i32
    %c0_i32_1 = arith.constant 0 : i32
    return %c0_i32, %c0_i32_0 : i32, i32
  }
  func.func @transform_4(%arg0: i32) -> (i32, i32) {
    %c0_i32 = arith.constant 0 : i32
    %c0_i32_0 = arith.constant 0 : i32
    %c0_i32_1 = arith.constant 0 : i32
    return %c0_i32, %c0_i32_0 : i32, i32
  }
  func.func @transform_5(%arg0: i32) -> (i32, i32) {
    %c0_i32 = arith.constant 0 : i32
    %c0_i32_0 = arith.constant 0 : i32
    %c0_i32_1 = arith.constant 0 : i32
    return %c0_i32, %c0_i32_0 : i32, i32
  }
  func.func @transform_6(%arg0: i32) -> (i32, i32) {
    %c0_i32 = arith.constant 0 : i32
    %c0_i32_0 = arith.constant 0 : i32
    %c0_i32_1 = arith.constant 0 : i32
    return %c0_i32, %c0_i32_0 : i32, i32
  }
  func.func @transform_7(%arg0: i32) -> (i32, i32, i32) {
    %c0_i32 = arith.constant 0 : i32
    %c0_i32_0 = arith.constant 0 : i32
    %c0_i32_1 = arith.constant 0 : i32
    return %arg0, %c0_i32, %c0_i32_0 : i32, i32, i32
  }
}

</mosaic_0001>

<bundles_post_ra>
// kernel: tpu_custom_call.1
= control target key start
LH: loop header
LB: loop body
LE: loop exit
PB: predicated region body
PF: predicated region fallthrough
CT: control target
= control target key end

     0   :  { %12 = vsyncpa [#allocation3], 0  ;;  %s5174_s0 = inlined_call_operand.hbm [shape: f32[2,64,256], index: 0, kind: input, shape index: {}]   ;;  %s5175_s1 = inlined_call_operand.vmem [shape: f32[1,256], index: 1, kind: input, shape index: {}]   ;;  %s5176_s2 = inlined_call_operand.vmem [shape: f32[1,256], index: 2, kind: input, shape index: {}]   ;;  %s5177_s3 = inlined_call_operand.hbm [shape: f32[256,768], index: 3, kind: input, shape index: {}]   ;;  %s5178_s4 = inlined_call_operand.vmem [shape: f32[1,768], index: 4, kind: input, shape index: {}]   ;;  %s5179_s5 = inlined_call_operand.hbm [shape: f32[256,256], index: 5, kind: input, shape index: {}]   ;;  %s5180_s6 = inlined_call_operand.vmem [shape: f32[1,256], index: 6, kind: input, shape index: {}]   ;;  %s5181_s7 = inlined_call_operand.hbm [shape: f32[2,64,256], index: 7, kind: output, shape index: {}]  }
   0x1   :  { %14 = vsyncpa [#allocation3 + $0x1], 0 }
   0x2   :  { %15 = vsyncpa [#allocation6], 0 }
   0x3   :  { %16 = vsyncpa [#allocation4], 0 }
   0x4   :  { %18 = vsyncpa [#allocation4 + $0x1], 0  ;;  %s4055_s24 = smov 0   ;;  %s4057_s25 = smov 0  }
   0x5   :  { %s4059_s26 = smov 0   ;;  %s4061_s27 = smov 0  }
   0x6 LB: > { %s4076_s28 = sadd.s32 4294967295, %s4001_s27   ;;  %s3022_s29 = sadd.s32 4294967294, %s4001_s27   ;;  %s4001_s27 = sphi %s4061_s27, %s5203_s27   ;;  %s3997_s26 = sphi %s4059_s26, %s5202_s26   ;;  %s3993_s25 = sphi %s4057_s25, %s5201_s25   ;;  %s3989_s24 = sphi %s4055_s24, %s5200_s24  }
   0x7   : > { %p44_p0 = scmp.ne.s32.totalorder %s3993_s25, %s3989_s24  ;;  %p5182_p1 = scmp.eq.s32.totalorder %s4076_s28, 0 }
   0x8   : > { %p200_p3 = scmp.eq.s32.totalorder %s3022_s29, 1  ;;  %p3023_p5 = scmp.ge.s32.totalorder %s4001_s27, 1 }
   0x9   : > { %p4085_p4 = por %p5182_p1, %p44_p0  ;;  %p207_p7 = scmp.lt.s32.totalorder %s4001_s27, 3 }
   0xa   : > { %p4090_p6 = por %p200_p3, %p44_p0  ;;  %s4003_s10 = smov [#allocation5]  }
   0xb   : > { %s5186_s30 = scalar_select %p4085_p4, 1, 0 }
   0xc   : > { %s5187_s8 = scalar_select %p4090_p6, 1, 0 }
   0xd   : > { %p4095_p8 = pnand %p3023_p5, %p207_p7  ;;  %s225_s11 = sshll.u32 %s4003_s10, 4  ;;  %s4099_s11 = int_to_ptr.vmem [resolvable:$true] %s225_s11 }
   0xe   : > { %s4004_s13 = smov [#allocation7]   ;;  %s3845_s17 = scalar_lea.hbm %s5177_s3, 24576 }
   0xf   : > { %p3638_p9 = pneg %p4095_p8  ;;  %s241_s14 = sshll.u32 %s4004_s13, 4  ;;  %s4110_s14 = int_to_ptr.vmem [resolvable:$true] %s241_s14 }
  0x10   : > { %p3846_p12 = scmp.ne.s32.totalorder %s5177_s3, %s3845_s17  ;;  %p3852_p5 = scmp.lt.u32.totalorder %s3845_s17, %s5177_s3 }
  0x11   : > { %p4106_p11 = pnand %p3638_p9, %p5182_p1 }
  0x13   : > { %p3847_p13 = pneg %p4106_p11 }
  0x15   : > { %p3848_p0 = pnand %p3847_p13, %p3846_p12 }
  0x17   : > { %p3849_p3 = pneg %p3848_p0 }
  0x19   : > { %p3854_p7 = pnand %p3852_p5, %p3849_p3 }
  0x1b   : > { %3857 = shalt.err (!%p3854_p7)
}
  0x1c   : > { %s3858_s22 = scalar_lea.vmem %s4099_s11, 24576  ;;  %p3866_p2 = scmp.lt.s32.totalorder %s4099_s11, %s4099_s11 }
  0x1d   : > { %p3859_p9 = scmp.ne.s32.totalorder %s4099_s11, %s3858_s22  ;;  %p3867_p12 = scmp.lt.s32.totalorder %s3858_s22, %s3858_s22 }
  0x1f   : > { %p3861_p10 = pnand %p3859_p9, %p3847_p13  ;;  %p3868_p0 = por %p3867_p12, %p3866_p2 }
  0x21   : > { %p3862_p1 = pneg %p3861_p10 }
  0x23   : > { %p3869_p6 = pnand %p3868_p0, %p3862_p1 }
  0x25   : > { %3872 = shalt.err (!%p3869_p6)
}
  0x26   : > { %s4005_s23 = smov 768   ;;  %s4006_s29 = smov 48  }
  0x27   : > { %3641 = dma.hbm_to_vmem [thread:$0]  (!%p4106_p11), %s5177_s3, 24576, %s4099_s11, [#allocation6], %s4005_s23, %s4005_s23, %s4006_s29  }
  0x28   : > { %s3873_s17 = scalar_lea.hbm %s5179_s5, 8192 }
  0x29   : > { %p3874_p2 = scmp.ne.s32.totalorder %s5179_s5, %s3873_s17  ;;  %p3880_p10 = scmp.lt.u32.totalorder %s3873_s17, %s5179_s5 }
  0x2b   : > { %p3876_p1 = pnand %p3874_p2, %p3847_p13 }
  0x2d   : > { %p3877_p6 = pneg %p3876_p1 }
  0x2f   : > { %p3882_p3 = pnand %p3880_p10, %p3877_p6 }
  0x31   : > { %3885 = shalt.err (!%p3882_p3)
}
  0x32   : > { %s3886_s11 = scalar_lea.vmem %s4110_s14, 8192  ;;  %p3894_p12 = scmp.lt.s32.totalorder %s4110_s14, %s4110_s14 }
  0x33   : > { %p3887_p5 = scmp.ne.s32.totalorder %s4110_s14, %s3886_s11  ;;  %p3895_p0 = scmp.lt.s32.totalorder %s3886_s11, %s3886_s11 }
  0x35   : > { %p3889_p7 = pnand %p3887_p5, %p3847_p13  ;;  %p3896_p2 = por %p3895_p0, %p3894_p12 }
  0x37   : > { %p3890_p9 = pneg %p3889_p7 }
  0x39   : > { %p3897_p1 = pnand %p3896_p2, %p3890_p9 }
  0x3b   : > { %3900 = shalt.err (!%p3897_p1)
}
  0x3c   : > { %s5183_s22 = smov 256   ;;  %s4008_s23 = smov 16  }
  0x3d   : > { %3644 = dma.hbm_to_vmem [thread:$0]  (!%p4106_p11), %s5179_s5, 8192, %s4110_s14, [#allocation6], %s5183_s22, %s5183_s22, %s4008_s23  }
  0x3e   : > { %s4168_s13 = sadd.s32 1, %s4001_s27   ;;  %s31_s16 = sadd.s32 1, %s3997_s26 }
  0x3f   : > { %s28_s15 = ssub.s32 %s4001_s27, %s4168_s13  ;;  %p38_p6 = scmp.ne.s32.totalorder %s3997_s26, %s3993_s25 }
  0x40   : > { %p29_p13 = scmp.eq.s32.totalorder %s28_s15, 0  ;;  %p39_p10 = scmp.eq.s32.totalorder %s4001_s27, 0 }
  0x41   : > { %p5190_p5 = scmp.eq.s32.totalorder %s4076_s28, 1  ;;  %p3655_p9 = scmp.lt.s32.totalorder %s4001_s27, 2 }
  0x42   : > { %s4177_s17 = scalar_select %p29_p13, %s3997_s26, %s31_s16  }
  0x43   : > { %p40_p3 = por %p39_p10, %p38_p6  ;;  %p4181_p7 = por %p5190_p5, %p38_p6 }
  0x44   : > { %s258_s18 = sand.u32 1, %s3997_s26   ;;  %s3104_s14 = sshll.u32 %s4001_s27, 11 }
  0x45   : > { %s5191_s12 = scalar_select %p4181_p7, 1, 0 }
  0x46   : > { %s3027_s19 = sshll.u32 %s258_s18, 7  ;;  %s4191_s11 = scalar_lea.hbm %s5174_s0, %s3104_s14 }
  0x47   : > { %s262_s29 = scalar_lea.vmem [#allocation2], %s3027_s19  ;;  %p4195_p11 = pnand %p3655_p9, %p40_p3 }
  0x48   : > { %s269_s10 = sshll.u32 %s262_s29, 4  ;;  %s4199_s16 = scalar_lea.sflag [#allocation3], %s258_s18  ;;  %s4193_s10 = int_to_ptr.vmem [resolvable:$true] %s269_s10 }
  0x49   : > { %s3901_s22 = scalar_lea.hbm %s4191_s11, 2048  ;;  %p3903_p0 = pneg %p4195_p11 }
  0x4a   : > { %p3902_p12 = scmp.ne.s32.totalorder %s4191_s11, %s3901_s22  ;;  %s3906_s20 = scalar_lea.hbm %s5174_s0, 4096 }
  0x4b   : > { %p3907_p13 = scmp.lt.u32.totalorder %s4191_s11, %s5174_s0  ;;  %p3908_p6 = scmp.lt.u32.totalorder %s3906_s20, %s3901_s22 }
  0x4c   : > { %p3904_p2 = pnand %p3903_p0, %p3902_p12  ;;  %p3910_p3 = scmp.lt.u32.totalorder %s3901_s22, %s4191_s11 }
  0x4d   : > { %p3909_p10 = por %p3908_p6, %p3907_p13 }
  0x4e   : > { %p3905_p1 = pneg %p3904_p2 }
  0x4f   : > { %p3911_p5 = por %p3910_p3, %p3909_p10 }
  0x51   : > { %p3912_p9 = pnand %p3911_p5, %p3905_p1 }
  0x53   : > { %3915 = shalt.err (!%p3912_p9)
}
  0x54   : > { %s3916_s18 = scalar_lea.vmem %s4193_s10, 2048  ;;  %s4009_s19 = smov [#allocation2]  }
  0x55   : > { %p3917_p12 = scmp.ne.s32.totalorder %s4193_s10, %s3916_s18  ;;  %s3921_s14 = sshll.u32 %s4009_s19, 4  ;;  %s3922_s14 = int_to_ptr.vmem [resolvable:$false] %s3921_s14 }
  0x56   : > { %s3923_s21 = scalar_lea.vmem %s3922_s14, 4096  ;;  %p3924_p4 = scmp.lt.s32.totalorder %s4193_s10, %s3922_s14 }
  0x57   : > { %p3919_p2 = pnand %p3917_p12, %p3903_p0  ;;  %p3925_p13 = scmp.lt.s32.totalorder %s3923_s21, %s3916_s18 }
  0x59   : > { %p3920_p7 = pneg %p3919_p2  ;;  %p3926_p6 = por %p3925_p13, %p3924_p4 }
  0x5b   : > { %p3927_p10 = pnand %p3926_p6, %p3920_p7 }
  0x5d   : > { %3930 = shalt.err (!%p3927_p10)
}
  0x5e   : > { %s5193_s22 = smov 256   ;;  %281 = sbr.rel (%p4095_p8) target bundleno = 3553 (0xde1), region = 48 }
  0x5f   : > { %3648 = dma.hbm_to_vmem [thread:$0]  (!%p4195_p11), %s4191_s11, 2048, %s4193_s10, %s4199_s16, %s5193_s22, %s5193_s22, %s4008_s23  }
  0x60   : > { %s4233_s20 = sand.u32 (!%p4095_p8), 1, %s3993_s25   ;;  %p5194_p4 = scmp.ne.s32.totalorder (!%p4095_p8), %s5186_s30, 0 }
  0x61   : > { %s3031_s29 = sshll.u32 (!%p4095_p8), %s4233_s20, 7  ;;  %s284_s18 = scalar_lea.sflag (!%p4095_p8), [#allocation3], %s4233_s20 }
  0x62   : > { %s287_s15 = scalar_lea.vmem (!%p4095_p8), [#allocation2], %s3031_s29 }
  0x65   : > { %3976 = dma.done.wait (%p5194_p4), %s284_s18, 2048  }
  0x66   : > { %3978 = vsyncadd (%p5194_p4), %s284_s18, 4294965248  ;;  %p5195_p7 = scmp.eq.s32.totalorder %s4076_s28, 0 }
  0x68   : > { %3980 = dma.done.wait (%p5195_p7), [#allocation6], 32768   ;;  %p5196_p8 = pmov %p5195_p7 }
  0x69   : > { %v4247_v0 = vld [vmem:[%s287_s15] sm:$0xff]  ;;  %v4249_v1 = vld [vmem:[%s287_s15 + $0x8] sm:$0xff]  ;;  %v4257_v5 = vld [vmem:[%s287_s15 + $0x10] sm:$0xff]  ;;  %vm1116_vm0 = vcmask 523264   ;;  %s4010_s19 = smov 64   ;;  %s5102_s22 = scalar_lea.vmem [#allocation8], %s3031_s29 }
  0x6a   : > { %3982 = vsyncadd (%p5196_p8), [#allocation6], 4294934528  ;;  %v4251_v2 = vld [vmem:[%s287_s15 + $0x20] sm:$0xff]  ;;  %v343_v3 = vadd.f32 %v4249_v1, %v4247_v0  ;;  %v4255_v4 = vld [vmem:[%s287_s15 + $0x28] sm:$0xff]  ;;  %s3105_s29 = sshll.u32 %s4076_s28, 11  ;;  %s2930_s18 = sshll.u32 %s5102_s22, 4  ;;  %s5128_s18 = int_to_ptr.vmem [resolvable:$true] %s2930_s18 }
  0x6b   : > { %v4259_v6 = vld [vmem:[%s287_s15 + $0x18] sm:$0xff]  ;;  %v349_v7 = vadd.f32 %v4255_v4, %v4251_v2  ;;  %v4263_v8 = vld [vmem:[%s287_s15 + $0x30] sm:$0xff]  ;;  %v4271_v12 = vld [vmem:[%s287_s15 + $0x40] sm:$0xff]  ;;  %s5126_s9 = scalar_lea.hbm %s5181_s7, %s3105_s29  ;;  %s2917_s28 = scalar_lea.sflag [#allocation4], %s4233_s20 }
  0x6c   : > { %v4265_v9 = vld [vmem:[%s287_s15 + $0x38] sm:$0xff]  ;;  %344 = vadd.xlane.f32.xlu0 %v343_v3  ;;  %v346_v10 = vadd.f32 %v4259_v6, %v4257_v5  ;;  %v4273_v13 = vld [vmem:[%s287_s15 + $0x48] sm:$0xff]  ;;  %v4275_v14 = vld [vmem:[%s287_s15 + $0x50] sm:$0xff]  ;;  %s3931_s23 = scalar_lea.vmem %s5128_s18, 2048  ;;  %p5197_p0 = scmp.ne.s32.totalorder %s5191_s12, 0 }
  0x6d   : > { %350 = vadd.xlane.f32.xlu1 %v349_v7  ;;  %v352_v11 = vadd.f32 %v4265_v9, %v4263_v8  ;;  %v4277_v15 = vld [vmem:[%s287_s15 + $0x58] sm:$0xff]  ;;  %v355_v16 = vadd.f32 %v4273_v13, %v4271_v12  ;;  %v4283_v18 = vld [vmem:[%s287_s15 + $0x60] sm:$0xff]  ;;  %v4285_v19 = vld [vmem:[%s287_s15 + $0x68] sm:$0xff]  ;;  %p3932_p11 = scmp.ne.s32.totalorder %s5128_s18, %s3931_s23  ;;  %s4012_s11 = smov [#allocation8]  }
  0x6e   : > { %v358_v17 = vadd.f32 %v4277_v15, %v4275_v14  ;;  %v4287_v20 = vld [vmem:[%s287_s15 + $0x70] sm:$0xff]  ;;  %v4289_v21 = vld [vmem:[%s287_s15 + $0x78] sm:$0xff]  ;;  %v361_v22 = vadd.f32 %v4285_v19, %v4283_v18  ;;  %v529_v24 = vld [vmem:[#allocation5 + $0x8] sm:$0xff]  ;;  %s3935_s10 = sshll.u32 %s4012_s11, 4  ;;  %s3936_s10 = int_to_ptr.vmem [resolvable:$false] %s3935_s10 }
  0x6f   : > { %v364_v23 = vadd.f32 %v4289_v21, %v4287_v20  ;;  %v535_v25 = vld [vmem:[#allocation5 + $0x38] sm:$0xff]  ;;  %v528_v26 = vld [vmem:[#allocation5] sm:$0xff]  ;;  %v534_v28 = vld [vmem:[#allocation5 + $0x30] sm:$0xff]  ;;  %p3933_p1 = pnand %p3932_p11, %p5197_p0  ;;  %s3937_s16 = scalar_lea.vmem %s3936_s10, 4096 }
  0x70   : > { %347 = vadd.xlane.f32.xlu0 %v346_v10  ;;  %v3298_v27 = vpack.c.bf16 %v535_v25, %v529_v24  ;;  %v531_v29 = vld [vmem:[#allocation5 + $0x18] sm:$0xff]  ;;  %v537_v30 = vld [vmem:[#allocation5 + $0x48] sm:$0xff]  ;;  %v3300_v31 = vpack.c.bf16 %v534_v28, %v528_v26  ;;  %v530_v33 = vld [vmem:[#allocation5 + $0x10] sm:$0xff]  ;;  %p3938_p5 = scmp.lt.s32.totalorder %s5128_s18, %s3936_s10  ;;  %p3939_p9 = scmp.lt.s32.totalorder %s3937_s16, %s3931_s23 }
  0x71   : > { %353 = vadd.xlane.f32.xlu1 %v352_v11  ;;  %v3362_v32 = vpack.c.bf16 %v537_v30, %v531_v29  ;;  %v536_v34 = vld [vmem:[#allocation5 + $0x40] sm:$0xff]  ;;  %v541_v35 = vld [vmem:[#allocation5 + $0x68] sm:$0xff]  ;;  %v547_v37 = vld [vmem:[#allocation5 + $0x98] sm:$0xff]  ;;  %p3934_p3 = pneg %p3933_p1 }
  0x72   : > { %3299 = vmatprep.subr.bf16.mxu0 %v3298_v27  ;;  %v3364_v36 = vpack.c.bf16 %v536_v34, %v530_v33  ;;  %v540_v38 = vld [vmem:[#allocation5 + $0x60] sm:$0xff]  ;;  %v546_v39 = vld [vmem:[#allocation5 + $0x90] sm:$0xff]  ;;  %v3302_v40 = vpack.c.bf16 %v547_v37, %v541_v35  ;;  %v543_v42 = vld [vmem:[#allocation5 + $0x78] sm:$0xff]  ;;  %p3940_p12 = por %p3939_p9, %p3938_p5 }
  0x73   : > { %3301 = vmatpush1.bf16.msra.mxu0 %v3300_v31  ;;  %3363 = vmatprep.subr.bf16.mxu1 %v3362_v32  ;;  %v3304_v41 = vpack.c.bf16 %v546_v39, %v540_v38  ;;  %v549_v43 = vld [vmem:[#allocation5 + $0xa8] sm:$0xff]  ;;  %v542_v44 = vld [vmem:[#allocation5 + $0x70] sm:$0xff]  ;;  %v548_v46 = vld [vmem:[#allocation5 + $0xa0] sm:$0xff] }
  0x74   : > { %356 = vadd.xlane.f32.xlu0 %v355_v16  ;;  %3365 = vmatpush1.bf16.msra.mxu1 %v3364_v36  ;;  %v3366_v45 = vpack.c.bf16 %v549_v43, %v543_v42  ;;  %v553_v47 = vld [vmem:[#allocation5 + $0xc8] sm:$0xff]  ;;  %v559_v48 = vld [vmem:[#allocation5 + $0xf8] sm:$0xff]  ;;  %v3368_v49 = vpack.c.bf16 %v548_v46, %v542_v44  ;;  %v552_v51 = vld [vmem:[#allocation5 + $0xc0] sm:$0xff]  ;;  %p3941_p2 = pnand %p3940_p12, %p3934_p3 }
  0x75   : > { %359 = vadd.xlane.f32.xlu1 %v358_v17  ;;  %3303 = vmatprep.subr.bf16.mxu0 %v3302_v40  ;;  %v3306_v50 = vpack.c.bf16 %v559_v48, %v553_v47  ;;  %v558_v52 = vld [vmem:[#allocation5 + $0xf0] sm:$0xff]  ;;  %v555_v53 = vld [vmem:[#allocation5 + $0xd8] sm:$0xff]  ;;  %v561_v54 = vld [vmem:[#allocation5 + $0x108] sm:$0xff] }
  0x76   : > { %3367 = vmatprep.subr.bf16.mxu1 %v3366_v45  ;;  %v554_v55 = vld [vmem:[#allocation5 + $0xd0] sm:$0xff]  ;;  %v560_v56 = vld [vmem:[#allocation5 + $0x100] sm:$0xff]  ;;  %v3308_v57 = vpack.c.bf16 %v558_v52, %v552_v51  ;;  %v3370_v58 = vpack.c.bf16 %v561_v54, %v555_v53  ;;  %v565_v59 = vld [vmem:[#allocation5 + $0x128] sm:$0xff] }
  0x77   : > { %3305 = vmatpush1.bf16.msra.mxu0 %v3304_v41  ;;  %v571_v60 = vld [vmem:[#allocation5 + $0x158] sm:$0xff]  ;;  %v564_v61 = vld [vmem:[#allocation5 + $0x120] sm:$0xff]  ;;  %v3372_v62 = vpack.c.bf16 %v560_v56, %v554_v55  ;;  %v570_v3 = vld [vmem:[#allocation5 + $0x150] sm:$0xff] }
  0x78   : > { %362 = vadd.xlane.f32.xlu0 %v361_v22  ;;  %3369 = vmatpush1.bf16.msra.mxu1 %v3368_v49  ;;  %v3310_v63 = vpack.c.bf16 %v571_v60, %v565_v59  ;;  %v567_v7 = vld [vmem:[#allocation5 + $0x138] sm:$0xff]  ;;  %v573_v10 = vld [vmem:[#allocation5 + $0x168] sm:$0xff]  ;;  %v566_v16 = vld [vmem:[#allocation5 + $0x130] sm:$0xff]  ;;  %v3312_v24 = vpack.c.bf16 %v570_v3, %v564_v61 }
  0x79   : > { %365 = vadd.xlane.f32.xlu1 %v364_v23  ;;  %3307 = vmatprep.subr.bf16.mxu0 %v3306_v50  ;;  %v3374_v11 = vpack.c.bf16 %v573_v10, %v567_v7  ;;  %v572_v17 = vld [vmem:[#allocation5 + $0x160] sm:$0xff]  ;;  %v577_v22 = vld [vmem:[#allocation5 + $0x188] sm:$0xff]  ;;  %v583_v23 = vld [vmem:[#allocation5 + $0x1b8] sm:$0xff] }
  0x7a   : > { %3371 = vmatprep.subr.bf16.mxu1 %v3370_v58  ;;  %v579_v25 = vld [vmem:[#allocation5 + $0x198] sm:$0xff]  ;;  %v585_v26 = vld [vmem:[#allocation5 + $0x1c8] sm:$0xff]  ;;  %v3376_v27 = vpack.c.bf16 %v572_v17, %v566_v16  ;;  %v3314_v28 = vpack.c.bf16 %v583_v23, %v577_v22  ;;  %v576_v29 = vld [vmem:[#allocation5 + $0x180] sm:$0xff] }
  0x7b   : > { %3309 = vmatpush1.bf16.msra.mxu0 %v3308_v57  ;;  %v582_v30 = vld [vmem:[#allocation5 + $0x1b0] sm:$0xff]  ;;  %v3378_v32 = vpack.c.bf16 %v585_v26, %v579_v25  ;;  %v584_v33 = vld [vmem:[#allocation5 + $0x1c0] sm:$0xff]  ;;  %v589_v34 = vld [vmem:[#allocation5 + $0x1e8] sm:$0xff] }
  0x7c   : > { %3373 = vmatpush1.bf16.msra.mxu1 %v3372_v62  ;;  %3311 = vmatprep.subr.bf16.mxu0 %v3310_v63  ;;  %v578_v31 = vld [vmem:[#allocation5 + $0x190] sm:$0xff]  ;;  %v595_v35 = vld [vmem:[#allocation5 + $0x218] sm:$0xff]  ;;  %v597_v37 = vld [vmem:[#allocation5 + $0x228] sm:$0xff]  ;;  %v3316_v38 = vpack.c.bf16 %v582_v30, %v576_v29 }
  0x7d   : > { %3375 = vmatprep.subr.bf16.mxu1 %v3374_v11  ;;  %v591_v36 = vld [vmem:[#allocation5 + $0x1f8] sm:$0xff]  ;;  %v3380_v39 = vpack.c.bf16 %v584_v33, %v578_v31  ;;  %v3318_v40 = vpack.c.bf16 %v595_v35, %v589_v34  ;;  %v588_v41 = vld [vmem:[#allocation5 + $0x1e0] sm:$0xff]  ;;  %v594_v42 = vld [vmem:[#allocation5 + $0x210] sm:$0xff] }
  0x7e   : > { %v590_v43 = vld [vmem:[#allocation5 + $0x1f0] sm:$0xff]  ;;  %v3382_v44 = vpack.c.bf16 %v597_v37, %v591_v36  ;;  %v596_v45 = vld [vmem:[#allocation5 + $0x220] sm:$0xff]  ;;  %v601_v46 = vld [vmem:[#allocation5 + $0x248] sm:$0xff]  ;;  %v3320_v50 = vpack.c.bf16 %v594_v42, %v588_v41 }
  0x7f   : > { %3313 = vmatpush1.bf16.msra.mxu0 %v3312_v24  ;;  %v607_v47 = vld [vmem:[#allocation5 + $0x278] sm:$0xff]  ;;  %v609_v49 = vld [vmem:[#allocation5 + $0x288] sm:$0xff]  ;;  %v3384_v51 = vpack.c.bf16 %v596_v45, %v590_v43  ;;  %v600_v53 = vld [vmem:[#allocation5 + $0x240] sm:$0xff] }
  0x80   : > { %3377 = vmatpush1.bf16.msra.mxu1 %v3376_v27  ;;  %3315 = vmatprep.subr.bf16.mxu0 %v3314_v28  ;;  %v603_v48 = vld [vmem:[#allocation5 + $0x258] sm:$0xff]  ;;  %v3322_v52 = vpack.c.bf16 %v607_v47, %v601_v46  ;;  %v606_v54 = vld [vmem:[#allocation5 + $0x270] sm:$0xff]  ;;  %v608_v57 = vld [vmem:[#allocation5 + $0x280] sm:$0xff] }
  0x81   : > { %3379 = vmatprep.subr.bf16.mxu1 %v3378_v32  ;;  %v602_v55 = vld [vmem:[#allocation5 + $0x250] sm:$0xff]  ;;  %v3386_v56 = vpack.c.bf16 %v609_v49, %v603_v48  ;;  %v613_v58 = vld [vmem:[#allocation5 + $0x2a8] sm:$0xff]  ;;  %v619_v59 = vld [vmem:[#allocation5 + $0x2d8] sm:$0xff]  ;;  %v3324_v62 = vpack.c.bf16 %v606_v54, %v600_v53 }
  0x82   : > { %v615_v60 = vld [vmem:[#allocation5 + $0x2b8] sm:$0xff]  ;;  %v621_v61 = vld [vmem:[#allocation5 + $0x2e8] sm:$0xff]  ;;  %v3388_v63 = vpack.c.bf16 %v608_v57, %v602_v55  ;;  %v3326_v3 = vpack.c.bf16 %v619_v59, %v613_v58  ;;  %v612_v7 = vld [vmem:[#allocation5 + $0x2a0] sm:$0xff] }
  0x83   : > { %3317 = vmatpush1.bf16.msra.mxu0 %v3316_v38  ;;  %v618_v10 = vld [vmem:[#allocation5 + $0x2d0] sm:$0xff]  ;;  %v3390_v16 = vpack.c.bf16 %v621_v61, %v615_v60  ;;  %v620_v17 = vld [vmem:[#allocation5 + $0x2e0] sm:$0xff]  ;;  %v625_v22 = vld [vmem:[#allocation5 + $0x308] sm:$0xff] }
  0x84   : > { %3381 = vmatpush1.bf16.msra.mxu1 %v3380_v39  ;;  %3319 = vmatprep.subr.bf16.mxu0 %v3318_v40  ;;  %v614_v11 = vld [vmem:[#allocation5 + $0x2b0] sm:$0xff]  ;;  %v631_v23 = vld [vmem:[#allocation5 + $0x338] sm:$0xff]  ;;  %v633_v25 = vld [vmem:[#allocation5 + $0x348] sm:$0xff]  ;;  %v3328_v26 = vpack.c.bf16 %v618_v10, %v612_v7 }
  0x85   : > { %3383 = vmatprep.subr.bf16.mxu1 %v3382_v44  ;;  %v627_v24 = vld [vmem:[#allocation5 + $0x318] sm:$0xff]  ;;  %v3392_v27 = vpack.c.bf16 %v620_v17, %v614_v11  ;;  %v3330_v28 = vpack.c.bf16 %v631_v23, %v625_v22  ;;  %v624_v29 = vld [vmem:[#allocation5 + $0x300] sm:$0xff]  ;;  %v630_v30 = vld [vmem:[#allocation5 + $0x330] sm:$0xff] }
  0x86   : > { %v626_v31 = vld [vmem:[#allocation5 + $0x310] sm:$0xff]  ;;  %v3394_v32 = vpack.c.bf16 %v633_v25, %v627_v24  ;;  %v632_v33 = vld [vmem:[#allocation5 + $0x340] sm:$0xff]  ;;  %v637_v34 = vld [vmem:[#allocation5 + $0x368] sm:$0xff]  ;;  %v3332_v38 = vpack.c.bf16 %v630_v30, %v624_v29 }
  0x87   : > { %3321 = vmatpush1.bf16.msra.mxu0 %v3320_v50  ;;  %v643_v35 = vld [vmem:[#allocation5 + $0x398] sm:$0xff]  ;;  %v645_v37 = vld [vmem:[#allocation5 + $0x3a8] sm:$0xff]  ;;  %v3396_v39 = vpack.c.bf16 %v632_v33, %v626_v31  ;;  %v636_v41 = vld [vmem:[#allocation5 + $0x360] sm:$0xff] }
  0x88   : > { %3385 = vmatpush1.bf16.msra.mxu1 %v3384_v51  ;;  %3323 = vmatprep.subr.bf16.mxu0 %v3322_v52  ;;  %v639_v36 = vld [vmem:[#allocation5 + $0x378] sm:$0xff]  ;;  %v3334_v40 = vpack.c.bf16 %v643_v35, %v637_v34  ;;  %v642_v42 = vld [vmem:[#allocation5 + $0x390] sm:$0xff]  ;;  %v644_v45 = vld [vmem:[#allocation5 + $0x3a0] sm:$0xff] }
  0x89   : > { %3387 = vmatprep.subr.bf16.mxu1 %v3386_v56  ;;  %v638_v43 = vld [vmem:[#allocation5 + $0x370] sm:$0xff]  ;;  %v3398_v44 = vpack.c.bf16 %v645_v37, %v639_v36  ;;  %v649_v46 = vld [vmem:[#allocation5 + $0x3c8] sm:$0xff]  ;;  %v655_v47 = vld [vmem:[#allocation5 + $0x3f8] sm:$0xff]  ;;  %v3336_v50 = vpack.c.bf16 %v642_v42, %v636_v41 }
  0x8a   : > { %v651_v48 = vld [vmem:[#allocation5 + $0x3d8] sm:$0xff]  ;;  %v657_v49 = vld [vmem:[#allocation5 + $0x408] sm:$0xff]  ;;  %v3400_v51 = vpack.c.bf16 %v644_v45, %v638_v43  ;;  %v3338_v52 = vpack.c.bf16 %v655_v47, %v649_v46  ;;  %v648_v53 = vld [vmem:[#allocation5 + $0x3c0] sm:$0xff] }
  0x8b   : > { %3325 = vmatpush1.bf16.msra.mxu0 %v3324_v62  ;;  %v654_v54 = vld [vmem:[#allocation5 + $0x3f0] sm:$0xff]  ;;  %v3402_v55 = vpack.c.bf16 %v657_v49, %v651_v48  ;;  %v656_v57 = vld [vmem:[#allocation5 + $0x400] sm:$0xff] }
  0x8c   : > { %3389 = vmatpush1.bf16.msra.mxu1 %v3388_v63  ;;  %3327 = vmatprep.subr.bf16.mxu0 %v3326_v3  ;;  %v650_v56 = vld [vmem:[#allocation5 + $0x3d0] sm:$0xff]  ;;  %v3340_v58 = vpack.c.bf16 %v654_v54, %v648_v53  ;;  %v667_v53 = vld [vmem:[#allocation5 + $0x458] sm:$0xff] }
  0x8d   : > { %3391 = vmatprep.subr.bf16.mxu1 %v3390_v16  ;;  %v3404_v59 = vpack.c.bf16 %v656_v57, %v650_v56  ;;  %v666_v56 = vld [vmem:[#allocation5 + $0x450] sm:$0xff]  ;;  %v663_v57 = vld [vmem:[#allocation5 + $0x438] sm:$0xff] }
  0x8f   : > { %3329 = vmatpush1.bf16.msra.mxu0 %v3328_v26 }
  0x90   : > { %3393 = vmatpush1.bf16.msra.mxu1 %v3392_v27  ;;  %3331 = vmatprep.subr.bf16.mxu0 %v3330_v28 }
  0x91   : > { %3395 = vmatprep.subr.bf16.mxu1 %v3394_v32 }
  0x93   : > { %3333 = vmatpush1.bf16.msra.mxu0 %v3332_v38 }
  0x94   : > { %3397 = vmatpush1.bf16.msra.mxu1 %v3396_v39  ;;  %3335 = vmatprep.subr.bf16.mxu0 %v3334_v40 }
  0x95   : > { %3399 = vmatprep.subr.bf16.mxu1 %v3398_v44 }
  0x97   : > { %3337 = vmatpush1.bf16.msra.mxu0 %v3336_v50 }
  0x98   : > { %3401 = vmatpush1.bf16.msra.mxu1 %v3400_v51  ;;  %3339 = vmatprep.subr.bf16.mxu0 %v3338_v52  ;;  %v661_v52 = vld [vmem:[#allocation5 + $0x428] sm:$0xff] }
  0x99   : > { %3403 = vmatprep.subr.bf16.mxu1 %v3402_v55  ;;  %v3342_v54 = vpack.c.bf16 %v667_v53, %v661_v52  ;;  %v660_v55 = vld [vmem:[#allocation5 + $0x420] sm:$0xff]  ;;  %v709_v52 = vld [vmem:[#allocation5 + $0x5a8] sm:$0xff]  ;;  %v715_v53 = vld [vmem:[#allocation5 + $0x5d8] sm:$0xff] }
  0x9b   : > { %3341 = vmatpush1.bf16.msra.mxu0 %v3340_v58  ;;  %v3344_v58 = vpack.c.bf16 %v666_v56, %v660_v55  ;;  %v708_v55 = vld [vmem:[#allocation5 + $0x5a0] sm:$0xff]  ;;  %v714_v56 = vld [vmem:[#allocation5 + $0x5d0] sm:$0xff] }
  0x9c   : > { %3405 = vmatpush1.bf16.msra.mxu1 %v3404_v59  ;;  %v669_v59 = vld [vmem:[#allocation5 + $0x468] sm:$0xff]  ;;  %3343 = vmatprep.subr.bf16.mxu0 %v3342_v54  ;;  %v3358_v54 = vpack.c.bf16 %v715_v53, %v709_v52 }
  0x9f   : > { %3345 = vmatpush1.bf16.msra.mxu0 %v3344_v58  ;;  %v3360_v58 = vpack.c.bf16 %v714_v56, %v708_v55  ;;  %v545_v55 = vld [vmem:[#allocation5 + $0x88] sm:$0xff]  ;;  %v551_v56 = vld [vmem:[#allocation5 + $0xb8] sm:$0xff] }
  0xf9   : > { %v345_v60 = vpop.xlane.xlu0 %344 }
  0xfa   : > { %v368_v61 = vmul.f32 0.00390625, %v345_v60  ;;  %v351_v62 = vpop.xlane.xlu1 %350  ;;  %v662_v60 = vld [vmem:[#allocation5 + $0x430] sm:$0xff] }
  0xfb   : > { %v370_v63 = vmul.f32 0.00390625, %v351_v62  ;;  %v3406_v62 = vpack.c.bf16 %v669_v59, %v663_v57  ;;  %v711_v57 = vld [vmem:[#allocation5 + $0x5b8] sm:$0xff]  ;;  %v717_v59 = vld [vmem:[#allocation5 + $0x5e8] sm:$0xff] }
  0xfc   : > { %v4296_v3 = vsub.f32 %v4247_v0, %v368_v61  ;;  %v4299_v7 = vsub.f32 %v4249_v1, %v368_v61  ;;  %v668_v61 = vld [vmem:[#allocation5 + $0x460] sm:$0xff] }
  0xfd   : > { %v4302_v10 = vsub.f32 %v4251_v2, %v370_v63  ;;  %v4305_v11 = vsub.f32 %v4255_v4, %v370_v63  ;;  %v348_v16 = vpop.xlane.xlu0 %347  ;;  %v3408_v63 = vpack.c.bf16 %v668_v61, %v662_v60  ;;  %3407 = vmatprep.subr.bf16.mxu1 %v3406_v62  ;;  %v710_v60 = vld [vmem:[#allocation5 + $0x5b0] sm:$0xff]  ;;  %v716_v61 = vld [vmem:[#allocation5 + $0x5e0] sm:$0xff]  ;;  %v3422_v62 = vpack.c.bf16 %v717_v59, %v711_v57 }
  0xfe   : > { %v369_v17 = vmul.f32 0.00390625, %v348_v16  ;;  %v354_v22 = vpop.xlane.xlu1 %353  ;;  %v392_v23 = vmul.f32 %v4296_v3, %v4296_v3  ;;  %v393_v24 = vmul.f32 %v4299_v7, %v4299_v7  ;;  %v673_v16 = vld [vmem:[#allocation5 + $0x488] sm:$0xff] }
  0xff   : > { %v371_v0 = vmul.f32 0.00390625, %v354_v22  ;;  %v396_v1 = vmul.f32 %v4302_v10, %v4302_v10  ;;  %v397_v2 = vmul.f32 %v4305_v11, %v4305_v11  ;;  %3409 = vmatpush1.bf16.msra.mxu1 %v3408_v63  ;;  %v3424_v63 = vpack.c.bf16 %v716_v61, %v710_v60 }
 0x100   : > { %v4316_v25 = vsub.f32 %v4257_v5, %v369_v17  ;;  %v4319_v4 = vsub.f32 %v4259_v6, %v369_v17  ;;  %v408_v26 = vadd.f32 %v393_v24, %v392_v23  ;;  %v679_v17 = vld [vmem:[#allocation5 + $0x4b8] sm:$0xff]  ;;  %v672_v23 = vld [vmem:[#allocation5 + $0x480] sm:$0xff]  ;;  %v678_v24 = vld [vmem:[#allocation5 + $0x4b0] sm:$0xff] }
 0x101   : > { %v4322_v27 = vsub.f32 %v4263_v8, %v371_v0  ;;  %v4325_v28 = vsub.f32 %v4265_v9, %v371_v0  ;;  %v357_v29 = vpop.xlane.xlu0 %356  ;;  %v414_v32 = vadd.f32 %v397_v2, %v396_v1  ;;  %v3346_v22 = vpack.c.bf16 %v679_v17, %v673_v16  ;;  %v675_v0 = vld [vmem:[#allocation5 + $0x498] sm:$0xff]  ;;  %v681_v2 = vld [vmem:[#allocation5 + $0x4c8] sm:$0xff] }
 0x102   : > { %v372_v30 = vmul.f32 0.00390625, %v357_v29  ;;  %409 = vadd.xlane.f32.xlu0 %v408_v26  ;;  %v360_v31 = vpop.xlane.xlu1 %359  ;;  %v394_v33 = vmul.f32 %v4316_v25, %v4316_v25  ;;  %v395_v5 = vmul.f32 %v4319_v4, %v4319_v4  ;;  %v3348_v1 = vpack.c.bf16 %v678_v24, %v672_v23  ;;  %v674_v26 = vld [vmem:[#allocation5 + $0x490] sm:$0xff]  ;;  %v680_v29 = vld [vmem:[#allocation5 + $0x4c0] sm:$0xff]  ;;  %v533_v16 = vld [vmem:[#allocation5 + $0x28] sm:$0xff] }
 0x103   : > { %v373_v6 = vmul.f32 0.00390625, %v360_v31  ;;  %v398_v34 = vmul.f32 %v4322_v27, %v4322_v27  ;;  %v399_v8 = vmul.f32 %v4325_v28, %v4325_v28  ;;  %3347 = vmatprep.subr.bf16.mxu0 %v3346_v22  ;;  %v3412_v31 = vpack.c.bf16 %v680_v29, %v674_v26  ;;  %v539_v17 = vld [vmem:[#allocation5 + $0x58] sm:$0xff] }
 0x104   : > { %v4336_v9 = vsub.f32 %v4271_v12, %v372_v30  ;;  %v4339_v35 = vsub.f32 %v4273_v13, %v372_v30  ;;  %v411_v36 = vadd.f32 %v395_v5, %v394_v33  ;;  %v3410_v30 = vpack.c.bf16 %v681_v2, %v675_v0  ;;  %3349 = vmatpush1.bf16.msra.mxu0 %v3348_v1  ;;  %v691_v33 = vld [vmem:[#allocation5 + $0x518] sm:$0xff] }
 0x105   : > { %v4342_v37 = vsub.f32 %v4275_v14, %v373_v6  ;;  %v4345_v38 = vsub.f32 %v4277_v15, %v373_v6  ;;  %v363_v39 = vpop.xlane.xlu0 %362  ;;  %v417_v42 = vadd.f32 %v399_v8, %v398_v34  ;;  %v684_v6 = vld [vmem:[#allocation5 + $0x4e0] sm:$0xff]  ;;  %v690_v34 = vld [vmem:[#allocation5 + $0x510] sm:$0xff]  ;;  %v687_v8 = vld [vmem:[#allocation5 + $0x4f8] sm:$0xff]  ;;  %v3426_v22 = vpack.c.bf16 %v539_v17, %v533_v16 }
 0x106   : > { %v374_v40 = vmul.f32 0.00390625, %v363_v39  ;;  %415 = vadd.xlane.f32.xlu0 %v414_v32  ;;  %412 = vadd.xlane.f32.xlu1 %v411_v36  ;;  %v366_v41 = vpop.xlane.xlu1 %365  ;;  %v400_v12 = vmul.f32 %v4336_v9, %v4336_v9  ;;  %v401_v13 = vmul.f32 %v4339_v35, %v4339_v35  ;;  %v685_v32 = vld [vmem:[#allocation5 + $0x4e8] sm:$0xff]  ;;  %v3352_v36 = vpack.c.bf16 %v690_v34, %v684_v6 }
 0x107   : > { %v375_v43 = vmul.f32 0.00390625, %v366_v41  ;;  %v402_v14 = vmul.f32 %v4342_v37, %v4342_v37  ;;  %v403_v15 = vmul.f32 %v4345_v38, %v4345_v38  ;;  %3411 = vmatprep.subr.bf16.mxu1 %v3410_v30  ;;  %v3350_v5 = vpack.c.bf16 %v691_v33, %v685_v32  ;;  %v693_v39 = vld [vmem:[#allocation5 + $0x528] sm:$0xff]  ;;  %v692_v41 = vld [vmem:[#allocation5 + $0x520] sm:$0xff] }
 0x108   : > { %v4356_v44 = vsub.f32 %v4283_v18, %v374_v40  ;;  %v4359_v45 = vsub.f32 %v4285_v19, %v374_v40  ;;  %v420_v46 = vadd.f32 %v401_v13, %v400_v12  ;;  %3413 = vmatpush1.bf16.msra.mxu1 %v3412_v31  ;;  %v686_v40 = vld [vmem:[#allocation5 + $0x4f0] sm:$0xff]  ;;  %v697_v13 = vld [vmem:[#allocation5 + $0x548] sm:$0xff]  ;;  %v474_v0 = vlaneseq }
 0x109   : > { %v4362_v47 = vsub.f32 %v4287_v20, %v375_v43  ;;  %v4365_v48 = vsub.f32 %v4289_v21, %v375_v43  ;;  %v423_v49 = vadd.f32 %v403_v15, %v402_v14  ;;  %3351 = vmatprep.subr.bf16.mxu0 %v3350_v5  ;;  %v3416_v12 = vpack.c.bf16 %v692_v41, %v686_v40  ;;  %v703_v43 = vld [vmem:[#allocation5 + $0x578] sm:$0xff]  ;;  %v696_v15 = vld [vmem:[#allocation5 + $0x540] sm:$0xff] }
 0x10a   : > { %418 = vadd.xlane.f32.xlu1 %v417_v42  ;;  %421 = vadd.xlane.f32.xlu0 %v420_v46  ;;  %v404_v50 = vmul.f32 %v4356_v44, %v4356_v44  ;;  %v405_v18 = vmul.f32 %v4359_v45, %v4359_v45  ;;  %v3414_v42 = vpack.c.bf16 %v693_v39, %v687_v8  ;;  %v702_v46 = vld [vmem:[#allocation5 + $0x570] sm:$0xff]  ;;  %v4375_v31 = vshrl.u32 %v474_v0, 7 }
 0x10b   : > { %v406_v19 = vmul.f32 %v4362_v47, %v4362_v47  ;;  %v407_v51 = vmul.f32 %v4365_v48, %v4365_v48  ;;  %3353 = vmatpush1.bf16.msra.mxu0 %v3352_v36  ;;  %v3354_v14 = vpack.c.bf16 %v703_v43, %v697_v13  ;;  %v550_v0 = vld [vmem:[#allocation5 + $0xb0] sm:$0xff] }
 0x10c   : > { %v426_v20 = vadd.f32 %v405_v18, %v404_v50  ;;  %3415 = vmatprep.subr.bf16.mxu1 %v3414_v42  ;;  %v3356_v50 = vpack.c.bf16 %v702_v46, %v696_v15  ;;  %v705_v18 = vld [vmem:[#allocation5 + $0x588] sm:$0xff]  ;;  %v4378_v36 = vsub.s32 1, %v4375_v31  ;;  %v4381_v39 = vsub.s32 0, %v4375_v31  ;;  %v472_v42 = vld [vmem:[%s5175_s1] sm:$0x3] }
 0x10d   : > { %v429_v21 = vadd.f32 %v407_v51, %v406_v19  ;;  %3417 = vmatpush1.bf16.msra.mxu1 %v3416_v12  ;;  %v698_v19 = vld [vmem:[#allocation5 + $0x550] sm:$0xff]  ;;  %v704_v51 = vld [vmem:[#allocation5 + $0x580] sm:$0xff]  ;;  %3355 = vmatprep.subr.bf16.mxu0 %v3354_v14 }
 0x10e   : > { %424 = vadd.xlane.f32.xlu1 %v423_v49  ;;  %427 = vadd.xlane.f32.xlu0 %v426_v20  ;;  %v699_v49 = vld [vmem:[#allocation5 + $0x558] sm:$0xff]  ;;  %v500_v15 = vld [vmem:[%s5176_s2] sm:$0x3]  ;;  %v4390_v46 = vrot.slane %v472_v42, %v4378_v36 }
 0x10f   : > { %v3418_v20 = vpack.c.bf16 %v705_v18, %v699_v49  ;;  %3357 = vmatpush1.bf16.msra.mxu0 %v3356_v50  ;;  %v4393_v49 = vrot.slane %v472_v42, %v4381_v39  ;;  %v4401_v53 = vrot.slane %v500_v15, %v4381_v39  ;;  %v569_v42 = vld [vmem:[#allocation5 + $0x148] sm:$0xff] }
 0x110   : > { %3359 = vmatprep.subr.bf16.mxu0 %v3358_v54  ;;  %v538_v54 = vld [vmem:[#allocation5 + $0x50] sm:$0xff] }
 0x111   : > { %3419 = vmatprep.subr.bf16.mxu1 %v3418_v20 }
 0x112   : > { %430 = vadd.xlane.f32.xlu1 %v429_v21  ;;  %v3420_v21 = vpack.c.bf16 %v704_v51, %v698_v19  ;;  %v532_v19 = vld [vmem:[#allocation5 + $0x20] sm:$0xff] }
 0x113   : > { %3361 = vmatpush1.bf16.msra.mxu0 %v3360_v58 }
 0x114   : > { %3421 = vmatpush1.bf16.msra.mxu1 %v3420_v21  ;;  %3427 = vmatprep.subr.bf16.mxu0 %v3426_v22  ;;  %v4397_v21 = vrot.slane %v500_v15, %v4378_v36 }
 0x115   : > { %3423 = vmatprep.subr.bf16.mxu1 %v3422_v62  ;;  %v3430_v62 = vpack.c.bf16 %v551_v56, %v545_v55 }
 0x118   : > { %3425 = vmatpush1.bf16.msra.mxu1 %v3424_v63 }
 0x18f   : > { %v410_v23 = vpop.xlane.xlu0 %409 }
 0x190   : > { %v432_v24 = vmul.f32 0.00390625, %v410_v23 }
 0x192   : > { %v440_v1 = vadd.f32 1e-05, %v432_v24  ;;  %v544_v24 = vld [vmem:[#allocation5 + $0x80] sm:$0xff] }
 0x193   : > { %v413_v2 = vpop.xlane.xlu1 %412  ;;  %v416_v26 = vpop.xlane.xlu0 %415 }
 0x194   : > { %3701 = vrsqrt.f32 %v440_v1  ;;  %v433_v29 = vmul.f32 0.00390625, %v413_v2  ;;  %v434_v30 = vmul.f32 0.00390625, %v416_v26 }
 0x196   : > { %v441_v32 = vadd.f32 1e-05, %v433_v29  ;;  %v442_v33 = vadd.f32 1e-05, %v434_v30  ;;  %v557_v30 = vld [vmem:[#allocation5 + $0xe8] sm:$0xff] }
 0x197   : > { %v419_v5 = vpop.xlane.xlu1 %418  ;;  %v422_v6 = vpop.xlane.xlu0 %421 }
 0x198   : > { %3703 = vrsqrt.f32 %v441_v32  ;;  %v435_v34 = vmul.f32 0.00390625, %v419_v5  ;;  %v436_v8 = vmul.f32 0.00390625, %v422_v6  ;;  %v3432_v5 = vpack.c.bf16 %v550_v0, %v544_v24  ;;  %v556_v6 = vld [vmem:[#allocation5 + $0xe0] sm:$0xff] }
 0x199   : > { %3705 = vrsqrt.f32 %v442_v33 }
 0x19a   : > { %v443_v40 = vadd.f32 1e-05, %v435_v34  ;;  %v444_v41 = vadd.f32 1e-05, %v436_v8 }
 0x19b   : > { %v425_v12 = vpop.xlane.xlu1 %424  ;;  %v428_v13 = vpop.xlane.xlu0 %427 }
 0x19c   : > { %3707 = vrsqrt.f32 %v443_v40  ;;  %v437_v43 = vmul.f32 0.00390625, %v425_v12  ;;  %v438_v14 = vmul.f32 0.00390625, %v428_v13  ;;  %v575_v12 = vld [vmem:[#allocation5 + $0x178] sm:$0xff] }
 0x19d   : > { %3709 = vrsqrt.f32 %v444_v41  ;;  %v562_v41 = vld [vmem:[#allocation5 + $0x110] sm:$0xff] }
 0x19e   : > { %v3702_v50 = vpop.eup %3701  ;;  %v445_v18 = vadd.f32 1e-05, %v437_v43  ;;  %v446_v57 = vadd.f32 1e-05, %v438_v14 }
 0x19f   : > { %v431_v51 = vpop.xlane.xlu1 %430  ;;  %v457_v20 = vmul.f32 %v3702_v50, %v4299_v7  ;;  %v456_v52 = vmul.f32 %v3702_v50, %v4296_v3  ;;  %v3428_v7 = vpack.c.bf16 %v538_v54, %v532_v19  ;;  %v3438_v50 = vpack.c.bf16 %v575_v12, %v569_v42 }
 0x1a0   : > { %3711 = vrsqrt.f32 %v445_v18  ;;  %v439_v58 = vmul.f32 0.00390625, %v431_v51  ;;  %v568_v18 = vld [vmem:[#allocation5 + $0x140] sm:$0xff] }
 0x1a1   : > { %v485_v59 = vmul.f32 %v4390_v46, %v457_v20  ;;  %v484_v60 = vmul.f32 %v4393_v49, %v456_v52  ;;  %3713 = vrsqrt.f32 %v446_v57  ;;  %v581_v20 = vld [vmem:[#allocation5 + $0x1a8] sm:$0xff]  ;;  %v587_v52 = vld [vmem:[#allocation5 + $0x1d8] sm:$0xff] }
 0x1a2   : > { %v3704_v61 = vpop.eup %3703  ;;  %v447_v23 = vadd.f32 1e-05, %v439_v58 }
 0x1a3   : > { %v3706_v63 = vpop.eup %3705  ;;  %v4406_v16 = vadd.f32 %v4397_v21, %v485_v59  ;;  %v4409_v3 = vadd.f32 %v4401_v53, %v484_v60  ;;  %v459_v17 = vmul.f32 %v3704_v61, %v4319_v4  ;;  %v458_v22 = vmul.f32 %v3704_v61, %v4316_v25  ;;  %v563_v4 = vld [vmem:[#allocation5 + $0x118] sm:$0xff]  ;;  %v580_v61 = vld [vmem:[#allocation5 + $0x1a0] sm:$0xff] }
 0x1a4   : > { %v461_v1 = vmul.f32 %v3706_v63, %v4305_v11  ;;  %v460_v2 = vmul.f32 %v3706_v63, %v4302_v10  ;;  %3715 = vrsqrt.f32 %v447_v23  ;;  %v3434_v8 = vpack.c.bf16 %v563_v4, %v557_v30  ;;  %v599_v63 = vld [vmem:[#allocation5 + $0x238] sm:$0xff]  ;;  %v605_v30 = vld [vmem:[#allocation5 + $0x268] sm:$0xff] }
 0x1a5   : > { %816 = vmatprep.mubr.f32.mxu0 %v4406_v16  ;;  %929 = vmatprep.mubr.f32.mxu1 %v4406_v16  ;;  %v487_v26 = vmul.f32 %v4390_v46, %v459_v17  ;;  %v486_v29 = vmul.f32 %v4393_v49, %v458_v22  ;;  %v3442_v60 = vpack.c.bf16 %v587_v52, %v581_v20  ;;  %v611_v4 = vld [vmem:[#allocation5 + $0x298] sm:$0xff] }
 0x1a6   : > { %v3708_v32 = vpop.eup %3707  ;;  %817 = vmatmul.mubr.f32.vlgmr.msra.gmra.mrb[0].mxu0 %v4409_v3  ;;  %930 = vmatmul.mubr.f32.vlgmr.msra.gmra.mrb[0].mxu1 %v4409_v3  ;;  %v489_v25 = vmul.f32 %v4390_v46, %v461_v1  ;;  %v488_v40 = vmul.f32 %v4393_v49, %v460_v2 }
 0x1a7   : > { %v3710_v11 = vpop.eup %3709  ;;  %3429 = vmatpush1.bf16.msra.mxu0 %v3428_v7  ;;  %v4423_v10 = vadd.f32 %v4397_v21, %v487_v26  ;;  %v4426_v33 = vadd.f32 %v4401_v53, %v486_v29  ;;  %v463_v34 = vmul.f32 %v3708_v32, %v4325_v28  ;;  %v462_v13 = vmul.f32 %v3708_v32, %v4322_v27  ;;  %v592_v26 = vld [vmem:[#allocation5 + $0x200] sm:$0xff] }
 0x1a8   : > { %3431 = vmatprep.subr.bf16.mxu0 %v3430_v62  ;;  %v4434_v43 = vadd.f32 %v4397_v21, %v489_v25  ;;  %v465_v28 = vmul.f32 %v3710_v11, %v4339_v35  ;;  %v3436_v27 = vpack.c.bf16 %v562_v41, %v556_v6  ;;  %v4443_v19 = vadd.f32 %v4401_v53, %v488_v40  ;;  %v574_v35 = vld [vmem:[#allocation5 + $0x170] sm:$0xff]  ;;  %v593_v62 = vld [vmem:[#allocation5 + $0x208] sm:$0xff]  ;;  %v604_v40 = vld [vmem:[#allocation5 + $0x260] sm:$0xff] }
 0x1a9   : > { %822 = vmatprep.mubr.f32.mxu0 %v4423_v10  ;;  %935 = vmatprep.mubr.f32.mxu1 %v4423_v10  ;;  %v491_v14 = vmul.f32 %v4390_v46, %v463_v34  ;;  %v490_v51 = vmul.f32 %v4393_v49, %v462_v13  ;;  %v464_v54 = vmul.f32 %v3710_v11, %v4336_v9  ;;  %v610_v41 = vld [vmem:[#allocation5 + $0x290] sm:$0xff]  ;;  %v617_v13 = vld [vmem:[#allocation5 + $0x2c8] sm:$0xff] }
 0x1aa   : > { %v3712_v15 = vpop.eup %3711  ;;  %823 = vmatmul.mubr.f32.gmra.mrb[2].mxu0 %v4426_v33  ;;  %936 = vmatmul.mubr.f32.gmra.mrb[2].mxu1 %v4426_v33  ;;  %v493_v56 = vmul.f32 %v4390_v46, %v465_v28  ;;  %v3440_v59 = vpack.c.bf16 %v574_v35, %v568_v18  ;;  %v3446_v2 = vpack.c.bf16 %v599_v63, %v593_v62  ;;  %v635_v35 = vld [vmem:[#allocation5 + $0x358] sm:$0xff]  ;;  %v652_v63 = vld [vmem:[#allocation5 + $0x3e0] sm:$0xff] }
 0x1ab   : > { %3433 = vmatpush1.bf16.msra.mxu0 %v3432_v5  ;;  %828 = vmatprep.mubr.f32.mxu0 %v4434_v43  ;;  %v4448_v55 = vadd.f32 %v4397_v21, %v491_v14  ;;  %v467_v57 = vmul.f32 %v3712_v15, %v4345_v38  ;;  %v3714_v58 = vpop.eup %3713  ;;  %v4457_v9 = vadd.f32 %v4401_v53, %v490_v51  ;;  %v586_v38 = vld [vmem:[#allocation5 + $0x1d0] sm:$0xff]  ;;  %v623_v14 = vld [vmem:[#allocation5 + $0x2f8] sm:$0xff]  ;;  %v629_v51 = vld [vmem:[#allocation5 + $0x328] sm:$0xff] }
 0x1ac   : > { %941 = vmatprep.mubr.f32.mxu1 %v4434_v43  ;;  %3435 = vmatprep.subr.bf16.mxu0 %v3434_v8  ;;  %v492_v7 = vmul.f32 %v4393_v49, %v464_v54  ;;  %v466_v17 = vmul.f32 %v3712_v15, %v4342_v37  ;;  %v4462_v22 = vadd.f32 %v4397_v21, %v493_v56  ;;  %v628_v54 = vld [vmem:[#allocation5 + $0x320] sm:$0xff]  ;;  %v641_v56 = vld [vmem:[#allocation5 + $0x388] sm:$0xff] }
 0x1ad   : > { %v495_v23 = vmul.f32 %v4390_v46, %v467_v57  ;;  %v469_v24 = vmul.f32 %v3714_v58, %v4359_v45  ;;  %v3444_v1 = vpack.c.bf16 %v586_v38, %v580_v61  ;;  %v598_v45 = vld [vmem:[#allocation5 + $0x230] sm:$0xff]  ;;  %v468_v32 = vmul.f32 %v3714_v58, %v4356_v44  ;;  %v647_v57 = vld [vmem:[#allocation5 + $0x3b8] sm:$0xff] }
 0x1ae   : > { %829 = vmatmul.mubr.f32.gmra.mrb[4].mxu0 %v4443_v19  ;;  %942 = vmatmul.mubr.f32.gmra.mrb[4].mxu1 %v4443_v19  ;;  %v3716_v0 = vpop.eup %3715  ;;  %v4471_v37 = vadd.f32 %v4401_v53, %v492_v7  ;;  %v494_v29 = vmul.f32 %v4393_v49, %v466_v17  ;;  %v3448_v6 = vpack.c.bf16 %v598_v45, %v592_v26  ;;  %v646_v61 = vld [vmem:[#allocation5 + $0x3b0] sm:$0xff]  ;;  %v653_v7 = vld [vmem:[#allocation5 + $0x3e8] sm:$0xff] }
 0x1af   : > { %3437 = vmatpush1.bf16.msra.mxu0 %v3436_v27  ;;  %834 = vmatprep.mubr.f32.mxu0 %v4448_v55  ;;  %v4476_v25 = vadd.f32 %v4397_v21, %v495_v23  ;;  %v497_v11 = vmul.f32 %v4390_v46, %v469_v24  ;;  %v471_v5 = vmul.f32 %v3716_v0, %v4365_v48  ;;  %v658_v17 = vld [vmem:[#allocation5 + $0x410] sm:$0xff]  ;;  %v665_v23 = vld [vmem:[#allocation5 + $0x448] sm:$0xff]  ;;  %v671_v24 = vld [vmem:[#allocation5 + $0x478] sm:$0xff] }
 0x1b0   : > { %947 = vmatprep.mubr.f32.mxu1 %v4448_v55  ;;  %3439 = vmatprep.subr.bf16.mxu0 %v3438_v50  ;;  %v3450_v34 = vpack.c.bf16 %v611_v4, %v605_v30  ;;  %v4485_v44 = vadd.f32 %v4401_v53, %v494_v29  ;;  %v496_v8 = vmul.f32 %v4393_v49, %v468_v32  ;;  %v622_v50 = vld [vmem:[#allocation5 + $0x2f0] sm:$0xff]  ;;  %v677_v26 = vld [vmem:[#allocation5 + $0x4a8] sm:$0xff]  ;;  %v683_v29 = vld [vmem:[#allocation5 + $0x4d8] sm:$0xff] }
 0x1b1   : > { %v470_v48 = vmul.f32 %v3716_v0, %v4362_v47  ;;  %v4490_v42 = vadd.f32 %v4397_v21, %v497_v11  ;;  %v499_v12 = vmul.f32 %v4390_v46, %v471_v5  ;;  %v3452_v28 = vpack.c.bf16 %v610_v41, %v604_v40  ;;  %v616_v46 = vld [vmem:[#allocation5 + $0x2c0] sm:$0xff]  ;;  %v682_v32 = vld [vmem:[#allocation5 + $0x4d0] sm:$0xff]  ;;  %v689_v11 = vld [vmem:[#allocation5 + $0x508] sm:$0xff] }
 0x1b2   : > { %835 = vmatmul.mubr.f32.gmra.mrb[6].mxu0 %v4457_v9  ;;  %948 = vmatmul.mubr.f32.gmra.mrb[6].mxu1 %v4457_v9  ;;  %v4498_v47 = vadd.f32 %v4401_v53, %v496_v8  ;;  %v3454_v15 = vpack.c.bf16 %v623_v14, %v617_v13  ;;  %v3456_v20 = vpack.c.bf16 %v622_v50, %v616_v46  ;;  %v676_v4 = vld [vmem:[#allocation5 + $0x4a0] sm:$0xff]  ;;  %v695_v5 = vld [vmem:[#allocation5 + $0x538] sm:$0xff]  ;;  %v694_v40 = vld [vmem:[#allocation5 + $0x530] sm:$0xff] }
 0x1b3   : > { %3441 = vmatpush1.bf16.msra.mxu0 %v3440_v59  ;;  %840 = vmatprep.mubr.f32.mxu0 %v4462_v22  ;;  %v498_v27 = vmul.f32 %v4393_v49, %v470_v48  ;;  %v4502_v18 = vadd.f32 %v4397_v21, %v499_v12  ;;  %v3458_v52 = vpack.c.bf16 %v635_v35, %v629_v51  ;;  %v634_v21 = vld [vmem:[#allocation5 + $0x350] sm:$0xff]  ;;  %v688_v8 = vld [vmem:[#allocation5 + $0x500] sm:$0xff]  ;;  %v701_v41 = vld [vmem:[#allocation5 + $0x568] sm:$0xff] }
 0x1b4   : > { %953 = vmatprep.mubr.f32.mxu1 %v4462_v22  ;;  %3443 = vmatprep.subr.bf16.mxu0 %v3442_v60  ;;  %v3460_v58 = vpack.c.bf16 %v634_v21, %v628_v54  ;;  %v3462_v59 = vpack.c.bf16 %v647_v57, %v641_v56  ;;  %v640_v60 = vld [vmem:[#allocation5 + $0x380] sm:$0xff]  ;;  %v3468_v0 = vpack.c.bf16 %v658_v17, %v652_v63  ;;  %v707_v48 = vld [vmem:[#allocation5 + $0x598] sm:$0xff]  ;;  %v718_v35 = vld [vmem:[#allocation5 + $0x5f0] sm:$0xff] }
 0x1b5   : > { %v4509_v49 = vadd.f32 %v4401_v53, %v498_v27  ;;  %v659_v53 = vld [vmem:[#allocation5 + $0x418] sm:$0xff]  ;;  %v3464_v38 = vpack.c.bf16 %v646_v61, %v640_v60  ;;  %v3474_v30 = vpack.c.bf16 %v683_v29, %v677_v26  ;;  %v3480_v12 = vpack.c.bf16 %v694_v40, %v688_v8  ;;  %v700_v14 = vld [vmem:[#allocation5 + $0x560] sm:$0xff] }
 0x1b6   : > { %841 = vmatmul.mubr.f32.gmra.mrb[8].mxu0 %v4471_v37  ;;  %954 = vmatmul.mubr.f32.gmra.mrb[8].mxu1 %v4471_v37  ;;  %v3466_v62 = vpack.c.bf16 %v659_v53, %v653_v7  ;;  %v3482_v13 = vpack.c.bf16 %v707_v48, %v701_v41  ;;  %v719_v27 = vld [vmem:[#allocation5 + $0x5f8] sm:$0xff]  ;;  %v712_v51 = vld [vmem:[#allocation5 + $0x5c0] sm:$0xff] }
 0x1b7   : > { %3445 = vmatpush1.bf16.msra.mxu0 %v3444_v1  ;;  %846 = vmatprep.mubr.f32.mxu0 %v4476_v25  ;;  %v3470_v1 = vpack.c.bf16 %v671_v24, %v665_v23 }
 0x1b8   : > { %959 = vmatprep.mubr.f32.mxu1 %v4476_v25  ;;  %3447 = vmatprep.subr.bf16.mxu0 %v3446_v2  ;;  %v670_v2 = vld [vmem:[#allocation5 + $0x470] sm:$0xff] }
 0x1ba   : > { %847 = vmatmul.mubr.f32.gmra.mrb[10].mxu0 %v4485_v44  ;;  %960 = vmatmul.mubr.f32.gmra.mrb[10].mxu1 %v4485_v44 }
 0x1bb   : > { %3449 = vmatpush1.bf16.msra.mxu0 %v3448_v6  ;;  %852 = vmatprep.mubr.f32.mxu0 %v4490_v42  ;;  %v3476_v6 = vpack.c.bf16 %v682_v32, %v676_v4 }
 0x1bc   : > { %965 = vmatprep.mubr.f32.mxu1 %v4490_v42  ;;  %3451 = vmatprep.subr.bf16.mxu0 %v3450_v34  ;;  %v3478_v34 = vpack.c.bf16 %v695_v5, %v689_v11 }
 0x1be   : > { %853 = vmatmul.mubr.f32.gmra.mrb[12].mxu0 %v4498_v47  ;;  %966 = vmatmul.mubr.f32.gmra.mrb[12].mxu1 %v4498_v47 }
 0x1bf   : > { %3453 = vmatpush1.bf16.msra.mxu0 %v3452_v28  ;;  %858 = vmatprep.mubr.f32.mxu0 %v4502_v18  ;;  %v706_v28 = vld [vmem:[#allocation5 + $0x590] sm:$0xff] }
 0x1c0   : > { %971 = vmatprep.mubr.f32.mxu1 %v4502_v18  ;;  %3455 = vmatprep.subr.bf16.mxu0 %v3454_v15  ;;  %v713_v15 = vld [vmem:[#allocation5 + $0x5c8] sm:$0xff]  ;;  %v3484_v46 = vpack.c.bf16 %v706_v28, %v700_v14 }
 0x1c1   : > { %v3486_v50 = vpack.c.bf16 %v719_v27, %v713_v15 }
 0x1c2   : > { %859 = vmatmul.mubr.f32.gmra.mrb[14].mxu0 %v4509_v49  ;;  %972 = vmatmul.mubr.f32.gmra.mrb[14].mxu1 %v4509_v49 }
 0x1c3   : > { %3457 = vmatpush1.bf16.msra.mxu0 %v3456_v20  ;;  %1042 = vmatprep.mubr.f32.mxu0 %v4406_v16  ;;  %v664_v16 = vld [vmem:[#allocation5 + $0x440] sm:$0xff]  ;;  %v3488_v20 = vpack.c.bf16 %v718_v35, %v712_v51 }
 0x1c4   : > { %3459 = vmatprep.subr.bf16.mxu0 %v3458_v52  ;;  %v3472_v45 = vpack.c.bf16 %v670_v2, %v664_v16 }
 0x1c7   : > { %3461 = vmatpush1.bf16.msra.mxu0 %v3460_v58 }
 0x1c8   : > { %3463 = vmatprep.subr.bf16.mxu0 %v3462_v59 }
 0x1cb   : > { %3465 = vmatpush1.bf16.msra.mxu0 %v3464_v38 }
 0x1cc   : > { %3467 = vmatprep.subr.bf16.mxu0 %v3466_v62 }
 0x1cf   : > { %3469 = vmatpush1.bf16.msra.mxu0 %v3468_v0 }
 0x1d0   : > { %3471 = vmatprep.subr.bf16.mxu0 %v3470_v1 }
 0x1d3   : > { %3473 = vmatpush1.bf16.msra.mxu0 %v3472_v45 }
 0x1d4   : > { %3475 = vmatprep.subr.bf16.mxu0 %v3474_v30 }
 0x1d7   : > { %3477 = vmatpush1.bf16.msra.mxu0 %v3476_v6 }
 0x1d8   : > { %3479 = vmatprep.subr.bf16.mxu0 %v3478_v34 }
 0x1db   : > { %3481 = vmatpush1.bf16.msra.mxu0 %v3480_v12 }
 0x1dc   : > { %3483 = vmatprep.subr.bf16.mxu0 %v3482_v13 }
 0x1df   : > { %3485 = vmatpush1.bf16.msra.mxu0 %v3484_v46 }
 0x1e0   : > { %3487 = vmatprep.subr.bf16.mxu0 %v3486_v50 }
 0x1e3   : > { %3489 = vmatpush1.bf16.msra.mxu0 %v3488_v20 }
 0x1e6   : > { %1043 = vmatmul.mubr.f32.vlgmr.msra.gmra.mrb[16].mxu0 %v4409_v3  ;;  %v732_v3 = vsub.s32 2, %v4375_v31 }
 0x1e7   : > { %1048 = vmatprep.mubr.f32.mxu0 %v4423_v10  ;;  %v4533_v10 = vld [vmem:[%s5178_s4] sm:$0x3f] }
 0x1ea   : > { %1049 = vmatmul.mubr.f32.gmra.mrb[18].mxu0 %v4426_v33  ;;  %v736_v33 = vsub.s32 3, %v4375_v31 }
 0x1eb   : > { %1054 = vmatprep.mubr.f32.mxu0 %v4434_v43 }
 0x1ee   : > { %1055 = vmatmul.mubr.f32.gmra.mrb[20].mxu0 %v4443_v19 }
 0x1ef   : > { %1060 = vmatprep.mubr.f32.mxu0 %v4448_v55  ;;  %v4538_v55 = vrot.slane %v4533_v10, %v4381_v39 }
 0x1f2   : > { %1061 = vmatmul.mubr.f32.gmra.mrb[22].mxu0 %v4457_v9  ;;  %v4541_v9 = vrot.slane %v4533_v10, %v732_v3 }
 0x1f3   : > { %1066 = vmatprep.mubr.f32.mxu0 %v4462_v22 }
 0x1f6   : > { %1067 = vmatmul.mubr.f32.gmra.mrb[24].mxu0 %v4471_v37 }
 0x1f7   : > { %1072 = vmatprep.mubr.f32.mxu0 %v4476_v25  ;;  %v4545_v25 = vrot.slane %v4533_v10, %v4378_v36 }
 0x1fa   : > { %1073 = vmatmul.mubr.f32.gmra.mrb[26].mxu0 %v4485_v44  ;;  %v4548_v44 = vrot.slane %v4533_v10, %v736_v33 }
 0x1fb   : > { %1078 = vmatprep.mubr.f32.mxu0 %v4490_v42 }
 0x1fe   : > { %1079 = vmatmul.mubr.f32.gmra.mrb[28].mxu0 %v4498_v47 }
 0x1ff   : > { %1084 = vmatprep.mubr.f32.mxu0 %v4502_v18 }
 0x202   : > { %1085 = vmatmul.mubr.f32.gmra.mrb[30].mxu0 %v4509_v49 }
 0x279   : > { %v818_v43 = vpop.f32.mrb[0].mxu0  ;;  %v931_v19 = vpop.f32.mrb[0].mxu1 }
 0x27a   : > { %v820_v22 = vpop.f32.mrb[1].mxu0  ;;  %v933_v37 = vpop.f32.mrb[1].mxu1  ;;  %v819_v18 = vadd.f32 %v818_v43, %v4538_v55  ;;  %v932_v49 = vadd.f32 %v931_v19, %v4541_v9 }
 0x27b   : > { %v821_v57 = vadd.f32 %v820_v22, %v4545_v25  ;;  %v934_v58 = vadd.f32 %v933_v37, %v4548_v44 }
 0x27d   : > { %v824_v42 = vpop.f32.mrb[2].mxu0  ;;  %v937_v47 = vpop.f32.mrb[2].mxu1 }
 0x27e   : > { %v825_v52 = vadd.f32 %v824_v42, %v4538_v55  ;;  %v938_v54 = vadd.f32 %v937_v47, %v4541_v9  ;;  %v826_v21 = vpop.f32.mrb[3].mxu0  ;;  %v939_v56 = vpop.f32.mrb[3].mxu1 }
 0x27f   : > { %v827_v59 = vadd.f32 %v826_v21, %v4545_v25  ;;  %v940_v60 = vadd.f32 %v939_v56, %v4548_v44 }
 0x280   : > { %v4558_v61 = vpack.c.bf16 %v825_v52, %v819_v18  ;;  %v4560_v7 = vpack.c.bf16 %v938_v54, %v932_v49 }
 0x281   : > { %v4562_v53 = vpack.c.bf16 %v827_v59, %v821_v57  ;;  %v4564_v38 = vpack.c.bf16 %v940_v60, %v934_v58  ;;  %v830_v62 = vpop.f32.mrb[4].mxu0  ;;  %v943_v63 = vpop.f32.mrb[4].mxu1 }
 0x282   : > { %v832_v17 = vpop.f32.mrb[5].mxu0  ;;  %v945_v23 = vpop.f32.mrb[5].mxu1  ;;  %3610 = vmatprep.subr.msk.bf16.mxu1 %vm1116_vm0, %v4560_v7  ;;  %3178 = vmatprep.mubr.msk.bf16.mxu1 %vm1116_vm0, %v4558_v61  ;;  %v1130_v24 = vsel %vm1116_vm0, %v4560_v7, 0  ;;  %v831_v16 = vadd.f32 %v830_v62, %v4538_v55  ;;  %v944_v2 = vadd.f32 %v943_v63, %v4541_v9 }
 0x283   : > { %3171 = vmatpush3.bf16.xpose.msra.mxu1 %v1130_v24  ;;  %v833_v4 = vadd.f32 %v832_v17, %v4545_v25  ;;  %v946_v32 = vadd.f32 %v945_v23, %v4548_v44 }
 0x285   : > { %v836_v0 = vpop.f32.mrb[6].mxu0  ;;  %v949_v1 = vpop.f32.mrb[6].mxu1 }
 0x286   : > { %v837_v26 = vadd.f32 %v836_v0, %v4538_v55  ;;  %v950_v29 = vadd.f32 %v949_v1, %v4541_v9  ;;  %v838_v45 = vpop.f32.mrb[7].mxu0  ;;  %v951_v30 = vpop.f32.mrb[7].mxu1 }
 0x287   : > { %v839_v11 = vadd.f32 %v838_v45, %v4545_v25  ;;  %v952_v5 = vadd.f32 %v951_v30, %v4548_v44 }
 0x288   : > { %v4580_v6 = vpack.c.bf16 %v837_v26, %v831_v16  ;;  %v4582_v34 = vpack.c.bf16 %v950_v29, %v944_v2 }
 0x289   : > { %v4584_v8 = vpack.c.bf16 %v839_v11, %v833_v4  ;;  %v4586_v40 = vpack.c.bf16 %v952_v5, %v946_v32  ;;  %v842_v41 = vpop.f32.mrb[8].mxu0  ;;  %v955_v48 = vpop.f32.mrb[8].mxu1 }
 0x28a   : > { %v844_v12 = vpop.f32.mrb[9].mxu0  ;;  %v957_v13 = vpop.f32.mrb[9].mxu1  ;;  %3611 = vmatprep.subr.msk.bf16.mxu1 %vm1116_vm0, %v4582_v34  ;;  %v1133_v14 = vsel %vm1116_vm0, %v4582_v34, 0  ;;  %v843_v27 = vadd.f32 %v842_v41, %v4538_v55  ;;  %v956_v46 = vadd.f32 %v955_v48, %v4541_v9 }
 0x28b   : > { %3173 = vmatpush3.bf16.xpose.msra.mxu1 %v1133_v14  ;;  %v845_v3 = vadd.f32 %v844_v12, %v4545_v25  ;;  %v958_v33 = vadd.f32 %v957_v13, %v4548_v44 }
 0x28d   : > { %v848_v28 = vpop.f32.mrb[10].mxu0  ;;  %v961_v15 = vpop.f32.mrb[10].mxu1 }
 0x28e   : > { %v849_v50 = vadd.f32 %v848_v28, %v4538_v55  ;;  %v962_v51 = vadd.f32 %v961_v15, %v4541_v9  ;;  %v850_v35 = vpop.f32.mrb[11].mxu0  ;;  %v963_v20 = vpop.f32.mrb[11].mxu1 }
 0x28f   : > { %v851_v43 = vadd.f32 %v850_v35, %v4545_v25  ;;  %v964_v19 = vadd.f32 %v963_v20, %v4548_v44 }
 0x290   : > { %v4600_v22 = vpack.c.bf16 %v849_v50, %v843_v27  ;;  %v4602_v37 = vpack.c.bf16 %v962_v51, %v956_v46 }
 0x291   : > { %v4604_v42 = vpack.c.bf16 %v851_v43, %v845_v3  ;;  %v4606_v47 = vpack.c.bf16 %v964_v19, %v958_v33  ;;  %v854_v18 = vpop.f32.mrb[12].mxu0  ;;  %v967_v49 = vpop.f32.mrb[12].mxu1 }
 0x292   : > { %v856_v52 = vpop.f32.mrb[13].mxu0  ;;  %v969_v54 = vpop.f32.mrb[13].mxu1  ;;  %3612 = vmatprep.subr.msk.bf16.mxu1 %vm1116_vm0, %v4602_v37  ;;  %v1136_v21 = vsel %vm1116_vm0, %v4602_v37, 0  ;;  %v855_v58 = vadd.f32 %v854_v18, %v4538_v55  ;;  %v968_v59 = vadd.f32 %v967_v49, %v4541_v9 }
 0x293   : > { %3175 = vmatpush3.bf16.xpose.msra.mxu1 %v1136_v21  ;;  %v857_v23 = vadd.f32 %v856_v52, %v4545_v25  ;;  %v970_v24 = vadd.f32 %v969_v54, %v4548_v44 }
 0x295   : > { %v860_v56 = vpop.f32.mrb[14].mxu0  ;;  %v973_v57 = vpop.f32.mrb[14].mxu1 }
 0x296   : > { %v861_v60 = vadd.f32 %v860_v56, %v4538_v55  ;;  %v974_v62 = vadd.f32 %v973_v57, %v4541_v9  ;;  %v862_v63 = vpop.f32.mrb[15].mxu0  ;;  %v975_v17 = vpop.f32.mrb[15].mxu1  ;;  %v740_v9 = vsub.s32 4, %v4375_v31 }
 0x297   : > { %v863_v0 = vadd.f32 %v862_v63, %v4545_v25  ;;  %v976_v1 = vadd.f32 %v975_v17, %v4548_v44  ;;  %v744_v25 = vsub.s32 5, %v4375_v31 }
 0x298   : > { %v4620_v16 = vpack.c.bf16 %v861_v60, %v855_v58  ;;  %v4622_v2 = vpack.c.bf16 %v974_v62, %v968_v59  ;;  %v741_v45 = vrot.slane %v4533_v10, %v740_v9 }
 0x299   : > { %v4624_v26 = vpack.c.bf16 %v863_v0, %v857_v23  ;;  %v4626_v29 = vpack.c.bf16 %v976_v1, %v970_v24  ;;  %v745_v4 = vrot.slane %v4533_v10, %v744_v25 }
 0x29a   : > { %3613 = vmatprep.subr.msk.bf16.mxu1 %vm1116_vm0, %v4622_v2  ;;  %v1139_v55 = vsel %vm1116_vm0, %v4622_v2, 0 }
 0x29b   : > { %3177 = vmatpush3.bf16.xpose.msra.mxu1 %v1139_v55 }
 0x2a2   : > { %3179 = vmatmul.mubr.msk.bf16.vlgmr.msra.gmra.mrb[16].mxu1 %vm1116_vm0, %v4580_v6 }
 0x2a3   : > { %3182 = vmatprep.mubr.msk.bf16.mxu1 %vm1116_vm0, %v4600_v22 }
 0x2aa   : > { %3183 = vmatmul.mubr.msk.bf16.gmra.mrb[20].mxu1 %vm1116_vm0, %v4620_v16 }
 0x2b9   : > { %v1044_v44 = vpop.f32.mrb[16].mxu0 }
 0x2ba   : > { %v1046_v30 = vpop.f32.mrb[17].mxu0  ;;  %v1045_v11 = vadd.f32 %v1044_v44, %v741_v45 }
 0x2bb   : > { %v1047_v48 = vadd.f32 %v1046_v30, %v745_v4 }
 0x2bd   : > { %v1050_v32 = vpop.f32.mrb[18].mxu0 }
 0x2be   : > { %v1051_v5 = vadd.f32 %v1050_v32, %v741_v45  ;;  %v1052_v41 = vpop.f32.mrb[19].mxu0 }
 0x2bf   : > { %v1053_v12 = vadd.f32 %v1052_v41, %v745_v4 }
 0x2c0   : > { %v4642_v13 = vpack.c.bf16 %v1051_v5, %v1045_v11 }
 0x2c1   : > { %v4644_v14 = vpack.c.bf16 %v1053_v12, %v1047_v48  ;;  %v1056_v28 = vpop.f32.mrb[20].mxu0 }
 0x2c2   : > { %v1058_v15 = vpop.f32.mrb[21].mxu0  ;;  %3186 = vmatprep.subr.bf16.mxu1 %v4642_v13  ;;  %v1057_v27 = vadd.f32 %v1056_v28, %v741_v45 }
 0x2c3   : > { %3187 = vmatpush3.bf16.msra.mxu1 %v4642_v13  ;;  %v1059_v50 = vadd.f32 %v1058_v15, %v745_v4 }
 0x2c5   : > { %v1062_v31 = vpop.f32.mrb[22].mxu0 }
 0x2c6   : > { %v1063_v46 = vadd.f32 %v1062_v31, %v741_v45  ;;  %v1064_v10 = vpop.f32.mrb[23].mxu0 }
 0x2c7   : > { %v1065_v51 = vadd.f32 %v1064_v10, %v745_v4 }
 0x2c8   : > { %v4648_v35 = vpack.c.bf16 %v1063_v46, %v1057_v27 }
 0x2c9   : > { %v4650_v20 = vpack.c.bf16 %v1065_v51, %v1059_v50  ;;  %v1068_v3 = vpop.f32.mrb[24].mxu0 }
 0x2ca   : > { %v1070_v33 = vpop.f32.mrb[25].mxu0  ;;  %3188 = vmatprep.subr.bf16.mxu1 %v4648_v35  ;;  %v1069_v19 = vadd.f32 %v1068_v3, %v741_v45 }
 0x2cb   : > { %3189 = vmatpush3.bf16.msra.mxu1 %v4648_v35  ;;  %v1071_v52 = vadd.f32 %v1070_v33, %v745_v4 }
 0x2cd   : > { %v1074_v43 = vpop.f32.mrb[26].mxu0 }
 0x2ce   : > { %v1075_v18 = vadd.f32 %v1074_v43, %v741_v45  ;;  %v1076_v49 = vpop.f32.mrb[27].mxu0 }
 0x2cf   : > { %v1077_v54 = vadd.f32 %v1076_v49, %v745_v4 }
 0x2d0   : > { %v4654_v21 = vpack.c.bf16 %v1075_v18, %v1069_v19 }
 0x2d1   : > { %v4656_v56 = vpack.c.bf16 %v1077_v54, %v1071_v52  ;;  %v1080_v57 = vpop.f32.mrb[28].mxu0 }
 0x2d2   : > { %v1082_v58 = vpop.f32.mrb[29].mxu0  ;;  %3190 = vmatprep.subr.bf16.mxu1 %v4654_v21  ;;  %v1081_v60 = vadd.f32 %v1080_v57, %v741_v45 }
 0x2d3   : > { %3191 = vmatpush3.bf16.msra.mxu1 %v4654_v21  ;;  %v1083_v17 = vadd.f32 %v1082_v58, %v745_v4 }
 0x2d5   : > { %v1086_v59 = vpop.f32.mrb[30].mxu0 }
 0x2d6   : > { %v1087_v62 = vadd.f32 %v1086_v59, %v741_v45  ;;  %v1088_v63 = vpop.f32.mrb[31].mxu0 }
 0x2d7   : > { %v1089_v23 = vadd.f32 %v1088_v63, %v745_v4 }
 0x2d8   : > { %v4660_v24 = vpack.c.bf16 %v1087_v62, %v1081_v60 }
 0x2d9   : > { %v4662_v0 = vpack.c.bf16 %v1089_v23, %v1083_v17 }
 0x2da   : > { %3192 = vmatprep.subr.bf16.mxu1 %v4660_v24 }
 0x2db   : > { %3193 = vmatpush3.bf16.msra.mxu1 %v4660_v24 }
 0x375   : > { %v3180_v1 = vpop.f32.mrb[16].mxu1 }
 0x376   : > { %v1175_v55 = vpop.f32.mrb[17].mxu1  ;;  %v1212_v30 = vsel %vm1116_vm0, %v3180_v1, -inf }
 0x377   : > { %v3181_v9 = vpop.f32.mrb[18].mxu1  ;;  %v1206_v25 = vsel %vm1116_vm0, %v1175_v55, -inf }
 0x378   : > { %1207 = vmax.xlane.f32.xlu0 %v1206_v25  ;;  %v1178_v44 = vpop.f32.mrb[19].mxu1  ;;  %v1215_v32 = vsel %vm1116_vm0, %v3181_v9, -inf }
 0x379   : > { %v1209_v45 = vsel %vm1116_vm0, %v1178_v44, -inf }
 0x37a   : > { %1210 = vmax.xlane.f32.xlu1 %v1209_v45 }
 0x37c   : > { %1213 = vmax.xlane.f32.xlu0 %v1212_v30 }
 0x37d   : > { %v3184_v4 = vpop.f32.mrb[20].mxu1 }
 0x37e   : > { %1216 = vmax.xlane.f32.xlu1 %v1215_v32  ;;  %v1191_v11 = vpop.f32.mrb[21].mxu1  ;;  %v1224_v28 = vsel %vm1116_vm0, %v3184_v4, -inf }
 0x37f   : > { %v3185_v5 = vpop.f32.mrb[22].mxu1  ;;  %v1218_v41 = vsel %vm1116_vm0, %v1191_v11, -inf }
 0x380   : > { %1219 = vmax.xlane.f32.xlu0 %v1218_v41  ;;  %v1194_v48 = vpop.f32.mrb[23].mxu1  ;;  %v1227_v15 = vsel %vm1116_vm0, %v3185_v5, -inf }
 0x381   : > { %v1221_v12 = vsel %vm1116_vm0, %v1194_v48, -inf }
 0x382   : > { %1222 = vmax.xlane.f32.xlu1 %v1221_v12 }
 0x384   : > { %1225 = vmax.xlane.f32.xlu0 %v1224_v28 }
 0x386   : > { %1228 = vmax.xlane.f32.xlu1 %v1227_v15 }
 0x405   : > { %v1208_v31 = vpop.xlane.xlu0 %1207 }
 0x406   : > { %v1230_v27 = vsub.f32 %v1175_v55, %v1208_v31 }
 0x407   : > { %v1211_v46 = vpop.xlane.xlu1 %1210 }
 0x408   : > { %v1231_v50 = vsub.f32 %v1178_v44, %v1211_v46  ;;  %v1238_v3 = vmul.f32 1.442695, %v1230_v27 }
 0x409   : > { %v1214_v10 = vpop.xlane.xlu0 %1213 }
 0x40a   : > { %v1232_v51 = vsub.f32 %v3180_v1, %v1214_v10  ;;  %v1240_v49 = vmul.f32 1.442695, %v1231_v50 }
 0x40b   : > { %v1217_v33 = vpop.xlane.xlu1 %1216 }
 0x40c   : > { %v1242_v43 = vmul.f32 1.442695, %v1232_v51  ;;  %v1233_v19 = vsub.f32 %v3181_v9, %v1217_v33 }
 0x40d   : > { %v1220_v18 = vpop.xlane.xlu0 %1219 }
 0x40e   : > { %3717 = vpow2.f32 %v1242_v43  ;;  %v1244_v52 = vmul.f32 1.442695, %v1233_v19  ;;  %v1234_v54 = vsub.f32 %v1191_v11, %v1220_v18 }
 0x40f   : > { %3719 = vpow2.f32 %v1238_v3  ;;  %v1223_v32 = vpop.xlane.xlu1 %1222 }
 0x410   : > { %3721 = vpow2.f32 %v1244_v52  ;;  %v1246_v59 = vmul.f32 1.442695, %v1234_v54  ;;  %v1235_v12 = vsub.f32 %v1194_v48, %v1223_v32 }
 0x411   : > { %v1226_v57 = vpop.xlane.xlu0 %1225  ;;  %3723 = vpow2.f32 %v1240_v49 }
 0x412   : > { %v1236_v58 = vsub.f32 %v3184_v4, %v1226_v57  ;;  %v1248_v15 = vmul.f32 1.442695, %v1235_v12 }
 0x413   : > { %v1229_v11 = vpop.xlane.xlu1 %1228 }
 0x414   : > { %v1250_v60 = vmul.f32 1.442695, %v1236_v58  ;;  %v1237_v41 = vsub.f32 %v3185_v5, %v1229_v11 }
 0x416   : > { %3725 = vpow2.f32 %v1250_v60  ;;  %v1252_v28 = vmul.f32 1.442695, %v1237_v41 }
 0x417   : > { %3727 = vpow2.f32 %v1246_v59 }
 0x418   : > { %v3718_v62 = vpop.eup %3717  ;;  %3729 = vpow2.f32 %v1252_v28 }
 0x419   : > { %v3720_v63 = vpop.eup %3719  ;;  %v1260_v17 = vsel %vm1116_vm0, %v3718_v62, 0.0  ;;  %3731 = vpow2.f32 %v1248_v15 }
 0x41a   : > { %v3722_v23 = vpop.eup %3721  ;;  %1261 = vadd.xlane.f32.xlu0 %v1260_v17  ;;  %v1254_v9 = vsel %vm1116_vm0, %v3720_v63, 0.0 }
 0x41b   : > { %v1263_v1 = vsel %vm1116_vm0, %v3722_v23, 0.0  ;;  %v3724_v55 = vpop.eup %3723 }
 0x41c   : > { %1264 = vadd.xlane.f32.xlu1 %v1263_v1  ;;  %v1257_v25 = vsel %vm1116_vm0, %v3724_v55, 0.0 }
 0x41e   : > { %1255 = vadd.xlane.f32.xlu0 %v1254_v9 }
 0x420   : > { %v4678_v44 = vpop.eup %3725  ;;  %1258 = vadd.xlane.f32.xlu1 %v1257_v25 }
 0x421   : > { %v1272_v45 = vsel %vm1116_vm0, %v4678_v44, 0.0  ;;  %v4682_v30 = vpop.eup %3727 }
 0x422   : > { %1273 = vadd.xlane.f32.xlu0 %v1272_v45  ;;  %v1266_v4 = vsel %vm1116_vm0, %v4682_v30, 0.0 }
 0x426   : > { %1267 = vadd.xlane.f32.xlu0 %v1266_v4 }
 0x431   : > { %1409 = vrot.lane.b32.xlu1 %v4582_v34, %s4010_s19  ;;  %v3730_v34 = vpop.eup %3729 }
 0x432   : > { %v3732_v31 = vpop.eup %3731 }
 0x435   : > { %1411 = vrot.lane.b32.xlu1 %v4602_v37, %s4010_s19  ;;  %v1275_v37 = vsel %vm1116_vm0, %v3730_v34, 0.0 }
 0x43c   : > { %1407 = vrot.lane.b32.xlu0 %v4560_v7, %s4010_s19  ;;  %v1269_v7 = vsel %vm1116_vm0, %v3732_v31, 0.0 }
 0x440   : > { %1395 = vrot.lane.b32.xlu0 %v4558_v61, %s4010_s19 }
 0x444   : > { %1399 = vrot.lane.b32.xlu0 %v4600_v22, %s4010_s19 }
 0x459   : > { %1276 = vadd.xlane.f32.xlu1 %v1275_v37 }
 0x45d   : > { %1270 = vadd.xlane.f32.xlu1 %v1269_v7 }
 0x46e   : > { %1413 = vrot.lane.b32.xlu1 %v4622_v2, %s4010_s19 }
 0x472   : > { %1397 = vrot.lane.b32.xlu1 %v4580_v6, %s4010_s19 }
 0x476   : > { %1401 = vrot.lane.b32.xlu1 %v4620_v16, %s4010_s19 }
 0x4a7   : > { %v1262_v61 = vpop.xlane.xlu0 %1261 }
 0x4a9   : > { %v1265_v22 = vpop.xlane.xlu1 %1264 }
 0x4aa   : > { %3733 = vrcp.f32 %v1265_v22 }
 0x4ab   : > { %v1256_v5 = vpop.xlane.xlu0 %1255 }
 0x4ac   : > { %3735 = vrcp.f32 %v1256_v5 }
 0x4ad   : > { %3737 = vrcp.f32 %v1262_v61  ;;  %v1259_v48 = vpop.xlane.xlu1 %1258 }
 0x4ae   : > { %3739 = vrcp.f32 %v1259_v48 }
 0x4af   : > { %v1274_v27 = vpop.xlane.xlu0 %1273 }
 0x4b1   : > { %v1410_v52 = vpop.permute.xlu1 %1409 }
 0x4b2   : > { %v1431_v54 = vsel %vm1116_vm0, %v1410_v52, 0 }
 0x4b3   : > { %v1268_v46 = vpop.xlane.xlu0 %1267 }
 0x4b4   : > { %v3734_v10 = vpop.eup %3733 }
 0x4b5   : > { %v1289_v33 = vmul.f32 %v3734_v10, %v3722_v23  ;;  %v1412_v57 = vpop.permute.xlu1 %1411 }
 0x4b6   : > { %v3736_v50 = vpop.eup %3735  ;;  %v1434_v58 = vsel %vm1116_vm0, %v1412_v57, 0 }
 0x4b7   : > { %v3738_v51 = vpop.eup %3737  ;;  %v1408_v2 = vpop.permute.xlu0 %1407  ;;  %v1286_v6 = vmul.f32 %v3736_v50, %v3720_v63 }
 0x4b8   : > { %v3740_v3 = vpop.eup %3739  ;;  %3614 = vmatprep.subr.msk.bf16.mxu1 %vm1116_vm0, %v1408_v2  ;;  %v1288_v43 = vmul.f32 %v3738_v51, %v3718_v62  ;;  %v1428_v49 = vsel %vm1116_vm0, %v1408_v2, 0 }
 0x4b9   : > { %v1287_v16 = vmul.f32 %v3740_v3, %v3724_v55 }
 0x4ba   : > { %v1295_v18 = vpack.c.bf16 %v1289_v33, %v1288_v43 }
 0x4bb   : > { %v1294_v19 = vpack.c.bf16 %v1287_v16, %v1286_v6  ;;  %v1396_v41 = vpop.permute.xlu0 %1395 }
 0x4bd   : > { %3194 = vmatprep.mubr.msk.bf16.mxu1 %vm1116_vm0, %v1294_v19 }
 0x4be   : > { %3195 = vmatmul.mubr.msk.bf16.vlgmr.msra.gmra.mrb[24].mxu1 %vm1116_vm0, %v1295_v18 }
 0x4bf   : > { %3203 = vmatpush3.bf16.xpose.msra.mxu1 %v1428_v49  ;;  %v1400_v28 = vpop.permute.xlu0 %1399 }
 0x4c0   : > { %3615 = vmatprep.subr.msk.bf16.mxu1 %vm1116_vm0, %v1410_v52 }
 0x4c7   : > { %3205 = vmatpush3.bf16.xpose.msra.mxu1 %v1431_v54 }
 0x4c8   : > { %3616 = vmatprep.subr.msk.bf16.mxu1 %vm1116_vm0, %v1412_v57 }
 0x4cf   : > { %3207 = vmatpush3.bf16.xpose.msra.mxu1 %v1434_v58 }
 0x4e6   : > { %v1277_v59 = vpop.xlane.xlu1 %1276 }
 0x4e7   : > { %3741 = vrcp.f32 %v1277_v59 }
 0x4e8   : > { %3743 = vrcp.f32 %v1268_v46 }
 0x4e9   : > { %3745 = vrcp.f32 %v1274_v27 }
 0x4ea   : > { %v1271_v60 = vpop.xlane.xlu1 %1270 }
 0x4eb   : > { %3747 = vrcp.f32 %v1271_v60 }
 0x4ee   : > { %v1414_v62 = vpop.permute.xlu1 %1413 }
 0x4ef   : > { %v1437_v63 = vsel %vm1116_vm0, %v1414_v62, 0  ;;  %3617 = vmatprep.subr.msk.bf16.mxu1 %vm1116_vm0, %v1414_v62 }
 0x4f0   : > { %3209 = vmatpush3.bf16.xpose.msra.mxu1 %v1437_v63 }
 0x4f1   : > { %v3742_v17 = vpop.eup %3741 }
 0x4f2   : > { %v3744_v23 = vpop.eup %3743  ;;  %v1293_v9 = vmul.f32 %v3742_v17, %v3730_v34  ;;  %v1398_v12 = vpop.permute.xlu1 %1397 }
 0x4f3   : > { %v3746_v1 = vpop.eup %3745  ;;  %v1290_v25 = vmul.f32 %v3744_v23, %v4682_v30 }
 0x4f4   : > { %v1292_v4 = vmul.f32 %v3746_v1, %v4678_v44 }
 0x4f5   : > { %v3748_v55 = vpop.eup %3747 }
 0x4f6   : > { %v1291_v45 = vmul.f32 %v3748_v55, %v3732_v31  ;;  %v1297_v11 = vpack.c.bf16 %v1293_v9, %v1292_v4  ;;  %v1402_v15 = vpop.permute.xlu1 %1401 }
 0x4f8   : > { %v1296_v32 = vpack.c.bf16 %v1291_v45, %v1290_v25 }
 0x4fa   : > { %3198 = vmatprep.mubr.msk.bf16.mxu1 %vm1116_vm0, %v1296_v32 }
 0x4fb   : > { %3199 = vmatmul.mubr.msk.bf16.gmra.mrb[28].mxu1 %vm1116_vm0, %v1297_v11 }
 0x4fc   : > { %3210 = vmatprep.mubr.msk.bf16.mxu1 %vm1116_vm0, %v1396_v41 }
 0x503   : > { %3211 = vmatmul.mubr.msk.bf16.vlgmr.msra.gmra.mrb[32].mxu1 %vm1116_vm0, %v1398_v12 }
 0x504   : > { %3214 = vmatprep.mubr.msk.bf16.mxu1 %vm1116_vm0, %v1400_v28 }
 0x50b   : > { %3215 = vmatmul.mubr.msk.bf16.gmra.mrb[36].mxu1 %vm1116_vm0, %v1402_v15 }
 0x591   : > { %v4722_v30 = vpop.f32.mrb[24].mxu1 }
 0x592   : > { %v4724_v44 = vpop.f32.mrb[25].mxu1 }
 0x593   : > { %v4726_v34 = vpop.f32.mrb[26].mxu1 }
 0x594   : > { %v4728_v37 = vpop.f32.mrb[27].mxu1 }
 0x5ce   : > { %v4730_v31 = vpop.f32.mrb[28].mxu1 }
 0x5cf   : > { %v4732_v7 = vpop.f32.mrb[29].mxu1 }
 0x5d0   : > { %v4734_v61 = vpop.f32.mrb[30].mxu1 }
 0x5d1   : > { %v4736_v22 = vpop.f32.mrb[31].mxu1 }
 0x5d6   : > { %v3212_v5 = vpop.f32.mrb[32].mxu1 }
 0x5d7   : > { %v1473_v48 = vpop.f32.mrb[33].mxu1  ;;  %v1510_v27 = vsel %vm1116_vm0, %v3212_v5, -inf }
 0x5d8   : > { %1511 = vmax.xlane.f32.xlu0 %v1510_v27  ;;  %v3213_v46 = vpop.f32.mrb[34].mxu1  ;;  %v1504_v51 = vsel %vm1116_vm0, %v1473_v48, -inf }
 0x5d9   : > { %v1476_v10 = vpop.f32.mrb[35].mxu1  ;;  %v1513_v33 = vsel %vm1116_vm0, %v3213_v46, -inf }
 0x5da   : > { %v1507_v50 = vsel %vm1116_vm0, %v1476_v10, -inf }
 0x5db   : > { %1508 = vmax.xlane.f32.xlu1 %v1507_v50 }
 0x5dc   : > { %1505 = vmax.xlane.f32.xlu0 %v1504_v51 }
 0x5de   : > { %v3216_v2 = vpop.f32.mrb[36].mxu1 }
 0x5df   : > { %v1489_v3 = vpop.f32.mrb[37].mxu1  ;;  %v1522_v49 = vsel %vm1116_vm0, %v3216_v2, -inf }
 0x5e0   : > { %1514 = vmax.xlane.f32.xlu0 %v1513_v33  ;;  %v3217_v6 = vpop.f32.mrb[38].mxu1  ;;  %v1516_v19 = vsel %vm1116_vm0, %v1489_v3, -inf }
 0x5e1   : > { %v1492_v16 = vpop.f32.mrb[39].mxu1  ;;  %v1525_v43 = vsel %vm1116_vm0, %v3217_v6, -inf }
 0x5e2   : > { %1526 = vmax.xlane.f32.xlu1 %v1525_v43  ;;  %v1519_v18 = vsel %vm1116_vm0, %v1492_v16, -inf }
 0x5e4   : > { %1517 = vmax.xlane.f32.xlu0 %v1516_v19 }
 0x5e6   : > { %1520 = vmax.xlane.f32.xlu1 %v1519_v18  ;;  %v1690_v18 = vld [vmem:[#allocation7 + $0x88] sm:$0xff] }
 0x5e8   : > { %1523 = vmax.xlane.f32.xlu0 %v1522_v49  ;;  %v1692_v49 = vld [vmem:[#allocation7 + $0x98] sm:$0xff] }
 0x5f7   : > { %1602 = vrot.lane.b32.xlu1 %v4648_v35, %s4010_s19 }
 0x5fb   : > { %1604 = vrot.lane.b32.xlu1 %v4654_v21, %s4010_s19 }
 0x665   : > { %v1512_v52 = vpop.xlane.xlu0 %1511 }
 0x666   : > { %v1530_v54 = vsub.f32 %v3212_v5, %v1512_v52  ;;  %v1689_v52 = vld [vmem:[#allocation7 + $0x80] sm:$0xff] }
 0x668   : > { %v1540_v57 = vmul.f32 1.442695, %v1530_v54  ;;  %v1509_v58 = vpop.xlane.xlu1 %1508  ;;  %v3490_v54 = vpack.c.bf16 %v1692_v49, %v1690_v18 }
 0x669   : > { %v1506_v59 = vpop.xlane.xlu0 %1505  ;;  %v1529_v62 = vsub.f32 %v1476_v10, %v1509_v58  ;;  %v1694_v58 = vld [vmem:[#allocation7 + $0xa8] sm:$0xff] }
 0x66a   : > { %3749 = vpow2.f32 %v1540_v57  ;;  %v1528_v60 = vsub.f32 %v1473_v48, %v1506_v59  ;;  %v1691_v57 = vld [vmem:[#allocation7 + $0x90] sm:$0xff]  ;;  %v1696_v59 = vld [vmem:[#allocation7 + $0xb8] sm:$0xff]  ;;  %3491 = vmatprep.subr.bf16.mxu1 %v3490_v54 }
 0x66b   : > { %v1538_v1 = vmul.f32 1.442695, %v1529_v62  ;;  %v3494_v62 = vpack.c.bf16 %v1696_v59, %v1694_v58 }
 0x66c   : > { %v1536_v63 = vmul.f32 1.442695, %v1528_v60  ;;  %v3492_v60 = vpack.c.bf16 %v1691_v57, %v1689_v52 }
 0x66d   : > { %v1515_v17 = vpop.xlane.xlu0 %1514 }
 0x66e   : > { %3751 = vpow2.f32 %v1536_v63  ;;  %v1531_v23 = vsub.f32 %v3213_v46, %v1515_v17  ;;  %v1693_v63 = vld [vmem:[#allocation7 + $0xa0] sm:$0xff]  ;;  %v1695_v17 = vld [vmem:[#allocation7 + $0xb0] sm:$0xff]  ;;  %3493 = vmatpush1.bf16.msra.mxu1 %v3492_v60 }
 0x66f   : > { %v1527_v12 = vpop.xlane.xlu1 %1526  ;;  %3495 = vmatprep.subr.bf16.mxu1 %v3494_v62  ;;  %v1992_v62 = vsel %vm1116_vm0, %v4564_v38, 0 }
 0x670   : > { %v1542_v55 = vmul.f32 1.442695, %v1531_v23  ;;  %v1535_v46 = vsub.f32 %v3217_v6, %v1527_v12  ;;  %v1698_v23 = vld [vmem:[#allocation7 + $0xc8] sm:$0xff] }
 0x671   : > { %v1518_v41 = vpop.xlane.xlu0 %1517 }
 0x672   : > { %3753 = vpow2.f32 %v1542_v55  ;;  %v1532_v28 = vsub.f32 %v1489_v3, %v1518_v41  ;;  %v1550_v51 = vmul.f32 1.442695, %v1535_v46  ;;  %v3496_v55 = vpack.c.bf16 %v1695_v17, %v1693_v63  ;;  %v1704_v41 = vld [vmem:[#allocation7 + $0xf8] sm:$0xff] }
 0x673   : > { %3755 = vpow2.f32 %v1538_v1  ;;  %v1521_v27 = vpop.xlane.xlu1 %1520  ;;  %v1700_v1 = vld [vmem:[#allocation7 + $0xd8] sm:$0xff] }
 0x674   : > { %v4750_v9 = vpop.eup %3749  ;;  %v1544_v5 = vmul.f32 1.442695, %v1532_v28  ;;  %v1533_v10 = vsub.f32 %v1492_v16, %v1521_v27  ;;  %3497 = vmatpush1.bf16.msra.mxu1 %v3496_v55 }
 0x675   : > { %v1558_v35 = vsel %vm1116_vm0, %v4750_v9, 0.0  ;;  %v1524_v15 = vpop.xlane.xlu0 %1523 }
 0x676   : > { %1559 = vadd.xlane.f32.xlu0 %v1558_v35  ;;  %v1534_v48 = vsub.f32 %v3216_v2, %v1524_v15  ;;  %3757 = vpow2.f32 %v1544_v5  ;;  %v1546_v33 = vmul.f32 1.442695, %v1533_v10  ;;  %v3498_v35 = vpack.c.bf16 %v1700_v1, %v1698_v23  ;;  %v1701_v15 = vld [vmem:[#allocation7 + $0xe0] sm:$0xff]  ;;  %v1703_v5 = vld [vmem:[#allocation7 + $0xf0] sm:$0xff] }
 0x677   : > { %v1603_v27 = vpop.permute.xlu1 %1602 }
 0x678   : > { %v4754_v21 = vpop.eup %3751  ;;  %v1548_v50 = vmul.f32 1.442695, %v1534_v48  ;;  %3499 = vmatprep.subr.bf16.mxu1 %v3498_v35  ;;  %v3504_v48 = vpack.c.bf16 %v1703_v5, %v1701_v15  ;;  %v1375_v5 = vld [vmem:[#allocation7] sm:$0xff] }
 0x679   : > { %v1552_v25 = vsel %vm1116_vm0, %v4754_v21, 0.0 }
 0x67a   : > { %1553 = vadd.xlane.f32.xlu0 %v1552_v25  ;;  %3759 = vpow2.f32 %v1548_v50  ;;  %v1697_v25 = vld [vmem:[#allocation7 + $0xc0] sm:$0xff] }
 0x67b   : > { %3761 = vpow2.f32 %v1550_v51  ;;  %v1605_v10 = vpop.permute.xlu1 %1604 }
 0x67c   : > { %v4758_v45 = vpop.eup %3753  ;;  %3763 = vpow2.f32 %v1546_v33 }
 0x67d   : > { %v1561_v4 = vsel %vm1116_vm0, %v4758_v45, 0.0  ;;  %v4762_v32 = vpop.eup %3755 }
 0x67e   : > { %1562 = vadd.xlane.f32.xlu1 %v1561_v4  ;;  %v1555_v11 = vsel %vm1116_vm0, %v4762_v32, 0.0  ;;  %v1699_v4 = vld [vmem:[#allocation7 + $0xd0] sm:$0xff] }
 0x67f   : > { %v3500_v12 = vpack.c.bf16 %v1699_v4, %v1697_v25 }
 0x681   : > { %3501 = vmatpush1.bf16.msra.mxu1 %v3500_v12 }
 0x682   : > { %1556 = vadd.xlane.f32.xlu1 %v1555_v11  ;;  %v1702_v11 = vld [vmem:[#allocation7 + $0xe8] sm:$0xff] }
 0x683   : > { %v3502_v28 = vpack.c.bf16 %v1704_v41, %v1702_v11 }
 0x685   : > { %3503 = vmatprep.subr.bf16.mxu1 %v3502_v28 }
 0x686   : > { %3505 = vmatpush1.bf16.msra.mxu1 %v3504_v48  ;;  %v1377_v48 = vld [vmem:[#allocation7 + $0x10] sm:$0xff] }
 0x690   : > { %1600 = vrot.lane.b32.xlu0 %v4642_v13, %s4010_s19  ;;  %v4770_v13 = vpop.eup %3757 }
 0x691   : > { %v4774_v43 = vpop.eup %3759 }
 0x692   : > { %v4776_v3 = vpop.eup %3761  ;;  %v1570_v2 = vsel %vm1116_vm0, %v4774_v43, 0.0 }
 0x693   : > { %1606 = vrot.lane.b32.xlu1 %v4660_v24, %s4010_s19  ;;  %v1564_v24 = vsel %vm1116_vm0, %v4770_v13, 0.0  ;;  %v4780_v6 = vpop.eup %3763  ;;  %v1573_v16 = vsel %vm1116_vm0, %v4776_v3, 0.0 }
 0x694   : > { %v1567_v19 = vsel %vm1116_vm0, %v4780_v6, 0.0 }
 0x6af   : > { %1565 = vadd.xlane.f32.xlu0 %v1564_v24 }
 0x6b3   : > { %1571 = vadd.xlane.f32.xlu0 %v1570_v2 }
 0x6b7   : > { %1574 = vadd.xlane.f32.xlu0 %v1573_v16  ;;  %1568 = vadd.xlane.f32.xlu1 %v1567_v19 }
 0x703   : > { %v1560_v46 = vpop.xlane.xlu0 %1559 }
 0x707   : > { %v1554_v50 = vpop.xlane.xlu0 %1553 }
 0x70b   : > { %v1601_v51 = vpop.permute.xlu0 %1600  ;;  %v1563_v33 = vpop.xlane.xlu1 %1562 }
 0x70c   : > { %3218 = vmatprep.subr.bf16.mxu0 %v1601_v51  ;;  %3765 = vrcp.f32 %v1563_v33  ;;  %v1379_v33 = vld [vmem:[#allocation7 + $0x20] sm:$0xff] }
 0x70d   : > { %3219 = vmatpush3.bf16.msra.mxu0 %v1601_v51  ;;  %3767 = vrcp.f32 %v1554_v50 }
 0x70e   : > { %3220 = vmatprep.subr.bf16.mxu0 %v1603_v27  ;;  %3769 = vrcp.f32 %v1560_v46  ;;  %v1382_v46 = vld [vmem:[#allocation7 + $0x38] sm:$0xff] }
 0x70f   : > { %v1557_v24 = vpop.xlane.xlu1 %1556 }
 0x710   : > { %3771 = vrcp.f32 %v1557_v24  ;;  %v1381_v24 = vld [vmem:[#allocation7 + $0x30] sm:$0xff] }
 0x711   : > { %3221 = vmatpush3.bf16.msra.mxu0 %v1603_v27  ;;  %v1380_v27 = vld [vmem:[#allocation7 + $0x28] sm:$0xff] }
 0x712   : > { %3222 = vmatprep.subr.bf16.mxu0 %v1605_v10  ;;  %v3510_v51 = vpack.c.bf16 %v1382_v46, %v1380_v27 }
 0x713   : > { %v1607_v2 = vpop.permute.xlu1 %1606 }
 0x715   : > { %3223 = vmatpush3.bf16.msra.mxu0 %v1605_v10  ;;  %v3508_v10 = vpack.c.bf16 %v1377_v48, %v1375_v5 }
 0x716   : > { %3224 = vmatprep.subr.bf16.mxu0 %v1607_v2  ;;  %v3766_v16 = vpop.eup %3765 }
 0x717   : > { %v3768_v19 = vpop.eup %3767  ;;  %v1587_v52 = vmul.f32 %v3766_v16, %v4758_v45  ;;  %v2001_v45 = vsel %vm1116_vm0, %v4626_v29, 0  ;;  %v1384_v16 = vld [vmem:[#allocation7 + $0x48] sm:$0xff] }
 0x718   : > { %v3770_v18 = vpop.eup %3769  ;;  %v1584_v54 = vmul.f32 %v3768_v19, %v4754_v21  ;;  %v1995_v21 = vsel %vm1116_vm0, %v4586_v40, 0  ;;  %v1386_v19 = vld [vmem:[#allocation7 + $0x58] sm:$0xff] }
 0x719   : > { %3225 = vmatpush3.bf16.msra.mxu0 %v1607_v2  ;;  %v1586_v58 = vmul.f32 %v3770_v18, %v4750_v9  ;;  %v1998_v9 = vsel %vm1116_vm0, %v4606_v47, 0 }
 0x71a   : > { %v3772_v49 = vpop.eup %3771  ;;  %3618 = vmatprep.subr.msk.bf16.mxu0 %vm1116_vm0, %v4564_v38 }
 0x71b   : > { %v1585_v57 = vmul.f32 %v3772_v49, %v4762_v32  ;;  %v1593_v60 = vpack.c.bf16 %v1587_v52, %v1586_v58  ;;  %v3512_v52 = vpack.c.bf16 %v1381_v24, %v1379_v33  ;;  %v1385_v58 = vld [vmem:[#allocation7 + $0x50] sm:$0xff] }
 0x71d   : > { %v1592_v59 = vpack.c.bf16 %v1585_v57, %v1584_v54  ;;  %v3514_v54 = vpack.c.bf16 %v1386_v19, %v1384_v16  ;;  %v1383_v57 = vld [vmem:[#allocation7 + $0x40] sm:$0xff] }
 0x71f   : > { %3226 = vmatprep.mubr.msk.bf16.mxu0 %vm1116_vm0, %v1592_v59  ;;  %v1388_v59 = vld [vmem:[#allocation7 + $0x68] sm:$0xff] }
 0x720   : > { %3227 = vmatmul.mubr.msk.bf16.vlgmr.msra.gmra.mrb[32].mxu0 %vm1116_vm0, %v1593_v60  ;;  %v1390_v60 = vld [vmem:[#allocation7 + $0x78] sm:$0xff] }
 0x722   : > { %3235 = vmatpush3.bf16.xpose.msra.mxu0 %v1992_v62  ;;  %v3516_v62 = vpack.c.bf16 %v1385_v58, %v1383_v57 }
 0x723   : > { %3619 = vmatprep.subr.msk.bf16.mxu0 %vm1116_vm0, %v4586_v40 }
 0x72a   : > { %3237 = vmatpush3.bf16.xpose.msra.mxu0 %v1995_v21  ;;  %v3518_v21 = vpack.c.bf16 %v1390_v60, %v1388_v59 }
 0x72b   : > { %3620 = vmatprep.subr.msk.bf16.mxu0 %vm1116_vm0, %v4606_v47 }
 0x732   : > { %3239 = vmatpush3.bf16.xpose.msra.mxu0 %v1998_v9  ;;  %v1387_v9 = vld [vmem:[#allocation7 + $0x60] sm:$0xff] }
 0x733   : > { %3621 = vmatprep.subr.msk.bf16.mxu0 %vm1116_vm0, %v4626_v29 }
 0x73a   : > { %3241 = vmatpush3.bf16.xpose.msra.mxu0 %v2001_v45  ;;  %v1389_v45 = vld [vmem:[#allocation7 + $0x70] sm:$0xff] }
 0x73b   : > { %3250 = vmatprep.subr.bf16.mxu0 %v4644_v14 }
 0x73c   : > { %v1566_v32 = vpop.xlane.xlu0 %1565 }
 0x740   : > { %v1572_v63 = vpop.xlane.xlu0 %1571 }
 0x741   : > { %3773 = vrcp.f32 %v1572_v63 }
 0x742   : > { %3775 = vrcp.f32 %v1566_v32  ;;  %v3520_v32 = vpack.c.bf16 %v1389_v45, %v1387_v9 }
 0x744   : > { %v1575_v17 = vpop.xlane.xlu0 %1574  ;;  %v1569_v23 = vpop.xlane.xlu1 %1568 }
 0x745   : > { %3777 = vrcp.f32 %v1575_v17 }
 0x746   : > { %3779 = vrcp.f32 %v1569_v23 }
 0x74b   : > { %v3774_v1 = vpop.eup %3773 }
 0x74c   : > { %v3776_v55 = vpop.eup %3775  ;;  %v1590_v4 = vmul.f32 %v3774_v1, %v4774_v43  ;;  %v1376_v43 = vld [vmem:[#allocation7 + $0x8] sm:$0xff] }
 0x74d   : > { %v1588_v41 = vmul.f32 %v3776_v55, %v4770_v13  ;;  %v4011_v13 = vmov 0.0  }
 0x74e   : > { %1793 = vmatprep.mubr.f32.mxu1 %v4011_v13 }
 0x74f   : > { %v3778_v35 = vpop.eup %3777 }
 0x750   : > { %v3780_v25 = vpop.eup %3779  ;;  %v1591_v11 = vmul.f32 %v3778_v35, %v4776_v3  ;;  %v1378_v3 = vld [vmem:[#allocation7 + $0x18] sm:$0xff] }
 0x751   : > { %v1589_v12 = vmul.f32 %v3780_v25, %v4780_v6  ;;  %v3506_v6 = vpack.c.bf16 %v1378_v3, %v1376_v43 }
 0x752   : > { %v1595_v28 = vpack.c.bf16 %v1591_v11, %v1590_v4 }
 0x753   : > { %v1594_v15 = vpack.c.bf16 %v1589_v12, %v1588_v41  ;;  %3507 = vmatprep.subr.bf16.mxu1 %v3506_v6 }
 0x755   : > { %3230 = vmatprep.mubr.msk.bf16.mxu0 %vm1116_vm0, %v1594_v15 }
 0x756   : > { %3231 = vmatmul.mubr.msk.bf16.gmra.mrb[36].mxu0 %vm1116_vm0, %v1595_v28 }
 0x757   : > { %3242 = vmatprep.mubr.msk.bf16.mxu0 %vm1116_vm0, %v4562_v53 }
 0x75e   : > { %3243 = vmatmul.mubr.msk.bf16.vlgmr.msra.gmra.mrb[40].mxu0 %vm1116_vm0, %v4584_v8 }
 0x75f   : > { %3251 = vmatpush3.bf16.msra.mxu0 %v4644_v14  ;;  %3246 = vmatprep.mubr.msk.bf16.mxu0 %vm1116_vm0, %v4604_v42 }
 0x760   : > { %3252 = vmatprep.subr.bf16.mxu0 %v4650_v20 }
 0x763   : > { %3253 = vmatpush3.bf16.msra.mxu0 %v4650_v20 }
 0x764   : > { %3254 = vmatprep.subr.bf16.mxu0 %v4656_v56 }
 0x766   : > { %3247 = vmatmul.mubr.msk.bf16.gmra.mrb[44].mxu0 %vm1116_vm0, %v4624_v26 }
 0x767   : > { %3255 = vmatpush3.bf16.msra.mxu0 %v4656_v56 }
 0x768   : > { %3256 = vmatprep.subr.bf16.mxu0 %v4662_v0 }
 0x76b   : > { %3257 = vmatpush3.bf16.msra.mxu0 %v4662_v0 }
 0x7f3   : > { %v3228_v50 = vpop.f32.mrb[32].mxu0 }
 0x7f4   : > { %v1658_v2 = vpop.f32.mrb[33].mxu0 }
 0x7f5   : > { %v3229_v18 = vpop.f32.mrb[34].mxu0  ;;  %3051 = vmatmul.mubr.msk.f32.vlgmr.msra.gmra.mrb[40].mxu1 %vm1116_vm0, %v1658_v2 }
 0x7f6   : > { %v1661_v49 = vpop.f32.mrb[35].mxu0  ;;  %1799 = vmatprep.mubr.f32.mxu1 %v4011_v13  ;;  %3509 = vmatpush1.bf16.msra.mxu1 %v3508_v10 }
 0x7f7   : > { %3511 = vmatprep.subr.bf16.mxu1 %v3510_v51 }
 0x7f9   : > { %3052 = vmatmul.mubr.msk.f32.gmra.mrb[42].mxu1 %vm1116_vm0, %v1661_v49 }
 0x7fa   : > { %1805 = vmatprep.mubr.f32.mxu1 %v4011_v13  ;;  %3513 = vmatpush1.bf16.msra.mxu1 %v3512_v52 }
 0x7fb   : > { %3515 = vmatprep.subr.bf16.mxu1 %v3514_v54 }
 0x7fd   : > { %3053 = vmatmul.mubr.msk.f32.gmra.mrb[44].mxu1 %vm1116_vm0, %v3228_v50 }
 0x7fe   : > { %1811 = vmatprep.mubr.f32.mxu1 %v4011_v13  ;;  %3517 = vmatpush1.bf16.msra.mxu1 %v3516_v62 }
 0x7ff   : > { %3519 = vmatprep.subr.bf16.mxu1 %v3518_v21 }
 0x801   : > { %3054 = vmatmul.mubr.msk.f32.gmra.mrb[46].mxu1 %vm1116_vm0, %v3229_v18 }
 0x802   : > { %1817 = vmatprep.mubr.f32.mxu1 %v4011_v13  ;;  %3521 = vmatpush1.bf16.msra.mxu1 %v3520_v32 }
 0x829   : > { %v3232_v63 = vpop.f32.mrb[36].mxu0 }
 0x82a   : > { %v1674_v17 = vpop.f32.mrb[37].mxu0 }
 0x82b   : > { %v3233_v23 = vpop.f32.mrb[38].mxu0  ;;  %3055 = vmatmul.mubr.msk.f32.gmra.mrb[48].mxu1 %vm1116_vm0, %v1674_v17 }
 0x82c   : > { %v1677_v1 = vpop.f32.mrb[39].mxu0  ;;  %1823 = vmatprep.mubr.f32.mxu1 %v4011_v13 }
 0x82f   : > { %3056 = vmatmul.mubr.msk.f32.gmra.mrb[50].mxu1 %vm1116_vm0, %v1677_v1 }
 0x830   : > { %1829 = vmatprep.mubr.f32.mxu1 %v4011_v13 }
 0x831   : > { %v3244_v55 = vpop.f32.mrb[40].mxu0 }
 0x832   : > { %v2037_v35 = vpop.f32.mrb[41].mxu0  ;;  %v2074_v12 = vsel %vm1116_vm0, %v3244_v55, -inf }
 0x833   : > { %3057 = vmatmul.mubr.msk.f32.gmra.mrb[52].mxu1 %vm1116_vm0, %v3232_v63  ;;  %v3245_v25 = vpop.f32.mrb[42].mxu0  ;;  %v2068_v4 = vsel %vm1116_vm0, %v2037_v35, -inf }
 0x834   : > { %2069 = vmax.xlane.f32.xlu0 %v2068_v4  ;;  %v2040_v11 = vpop.f32.mrb[43].mxu0  ;;  %1835 = vmatprep.mubr.f32.mxu1 %v4011_v13  ;;  %v2077_v15 = vsel %vm1116_vm0, %v3245_v25, -inf  ;;  %v2240_v4 = vld [vmem:[#allocation7 + $0x118] sm:$0xff] }
 0x835   : > { %v2071_v41 = vsel %vm1116_vm0, %v2040_v11, -inf }
 0x836   : > { %2072 = vmax.xlane.f32.xlu1 %v2071_v41 }
 0x837   : > { %3058 = vmatmul.mubr.msk.f32.gmra.mrb[54].mxu1 %vm1116_vm0, %v3233_v23 }
 0x838   : > { %2075 = vmax.xlane.f32.xlu0 %v2074_v12  ;;  %1930 = vmatprep.mubr.f32.mxu1 %v4011_v13  ;;  %v2239_v12 = vld [vmem:[#allocation7 + $0x110] sm:$0xff] }
 0x839   : > { %v3248_v28 = vpop.f32.mrb[44].mxu0 }
 0x83a   : > { %2078 = vmax.xlane.f32.xlu1 %v2077_v15  ;;  %v2053_v43 = vpop.f32.mrb[45].mxu0  ;;  %v2086_v27 = vsel %vm1116_vm0, %v3248_v28, -inf  ;;  %v2244_v15 = vld [vmem:[#allocation7 + $0x138] sm:$0xff] }
 0x83b   : > { %3059 = vmatmul.mubr.msk.f32.vlgmr.msra.gmra.mrb[40].mxu1 %vm1116_vm0, %v4724_v44  ;;  %v4853_v3 = vpop.f32.mrb[46].mxu0  ;;  %v2080_v6 = vsel %vm1116_vm0, %v2053_v43, -inf }
 0x83c   : > { %2081 = vmax.xlane.f32.xlu0 %v2080_v6  ;;  %v4856_v5 = vpop.f32.mrb[47].mxu0  ;;  %1936 = vmatprep.mubr.f32.mxu1 %v4011_v13  ;;  %v2089_v44 = vsel %vm1116_vm0, %v4853_v3, -inf  ;;  %v2241_v6 = vld [vmem:[#allocation7 + $0x120] sm:$0xff] }
 0x83d   : > { %v2083_v48 = vsel %vm1116_vm0, %v4856_v5, -inf }
 0x83e   : > { %2084 = vmax.xlane.f32.xlu1 %v2083_v48  ;;  %v2246_v48 = vld [vmem:[#allocation7 + $0x148] sm:$0xff] }
 0x83f   : > { %3060 = vmatmul.mubr.msk.f32.gmra.mrb[42].mxu1 %vm1116_vm0, %v4728_v37 }
 0x840   : > { %2087 = vmax.xlane.f32.xlu0 %v2086_v27  ;;  %1942 = vmatprep.mubr.f32.mxu1 %v4011_v13 }
 0x842   : > { %2090 = vmax.xlane.f32.xlu1 %v2089_v44  ;;  %v2245_v44 = vld [vmem:[#allocation7 + $0x140] sm:$0xff] }
 0x843   : > { %3061 = vmatmul.mubr.msk.f32.gmra.mrb[44].mxu1 %vm1116_vm0, %v4722_v30 }
 0x844   : > { %1948 = vmatprep.mubr.f32.mxu1 %v4011_v13 }
 0x847   : > { %3062 = vmatmul.mubr.msk.f32.gmra.mrb[46].mxu1 %vm1116_vm0, %v4726_v34 }
 0x848   : > { %1954 = vmatprep.mubr.f32.mxu1 %v4011_v13 }
 0x84b   : > { %3063 = vmatmul.mubr.msk.f32.gmra.mrb[48].mxu1 %vm1116_vm0, %v4732_v7 }
 0x84c   : > { %1960 = vmatprep.mubr.f32.mxu1 %v4011_v13 }
 0x84f   : > { %3064 = vmatmul.mubr.msk.f32.gmra.mrb[50].mxu1 %vm1116_vm0, %v4736_v22 }
 0x850   : > { %1966 = vmatprep.mubr.f32.mxu1 %v4011_v13 }
 0x853   : > { %3065 = vmatmul.mubr.msk.f32.gmra.mrb[52].mxu1 %vm1116_vm0, %v4730_v31 }
 0x854   : > { %1972 = vmatprep.mubr.f32.mxu1 %v4011_v13 }
 0x857   : > { %3066 = vmatmul.mubr.msk.f32.gmra.mrb[54].mxu1 %vm1116_vm0, %v4734_v61 }
 0x858   : > { %2341 = vmatprep.mubr.f32.mxu1 %v4011_v13 }
 0x8c1   : > { %v2070_v30 = vpop.xlane.xlu0 %2069 }
 0x8c2   : > { %v2092_v34 = vsub.f32 %v2037_v35, %v2070_v30  ;;  %v2250_v30 = vld [vmem:[#allocation7 + $0x168] sm:$0xff] }
 0x8c3   : > { %v2073_v37 = vpop.xlane.xlu1 %2072 }
 0x8c4   : > { %v2093_v46 = vsub.f32 %v2040_v11, %v2073_v37  ;;  %v2100_v50 = vmul.f32 1.442695, %v2092_v34  ;;  %v2237_v11 = vld [vmem:[#allocation7 + $0x100] sm:$0xff]  ;;  %v2252_v34 = vld [vmem:[#allocation7 + $0x178] sm:$0xff] }
 0x8c5   : > { %v2076_v7 = vpop.xlane.xlu0 %2075 }
 0x8c6   : > { %v2094_v10 = vsub.f32 %v3244_v55, %v2076_v7  ;;  %v2102_v2 = vmul.f32 1.442695, %v2093_v46  ;;  %v3534_v7 = vpack.c.bf16 %v2252_v34, %v2250_v30  ;;  %v2249_v46 = vld [vmem:[#allocation7 + $0x160] sm:$0xff] }
 0x8c7   : > { %v2079_v22 = vpop.xlane.xlu1 %2078 }
 0x8c8   : > { %v2104_v51 = vmul.f32 1.442695, %v2094_v10  ;;  %v2095_v33 = vsub.f32 %v3245_v25, %v2079_v22  ;;  %v2251_v10 = vld [vmem:[#allocation7 + $0x170] sm:$0xff] }
 0x8c9   : > { %v2082_v24 = vpop.xlane.xlu0 %2081 }
 0x8ca   : > { %3781 = vpow2.f32 %v2104_v51  ;;  %v2106_v31 = vmul.f32 1.442695, %v2095_v33  ;;  %v2096_v16 = vsub.f32 %v2053_v43, %v2082_v24  ;;  %v3524_v43 = vpack.c.bf16 %v2239_v12, %v2237_v11 }
 0x8cb   : > { %3783 = vpow2.f32 %v2100_v50  ;;  %v2085_v17 = vpop.xlane.xlu1 %2084  ;;  %v3536_v50 = vpack.c.bf16 %v2251_v10, %v2249_v46 }
 0x8cc   : > { %3785 = vpow2.f32 %v2106_v31  ;;  %v2108_v18 = vmul.f32 1.442695, %v2096_v16  ;;  %v2097_v55 = vsub.f32 %v4856_v5, %v2085_v17  ;;  %v2243_v5 = vld [vmem:[#allocation7 + $0x130] sm:$0xff] }
 0x8cd   : > { %v2088_v61 = vpop.xlane.xlu0 %2087  ;;  %3787 = vpow2.f32 %v2102_v2  ;;  %v3528_v27 = vpack.c.bf16 %v2243_v5, %v2241_v6 }
 0x8ce   : > { %v2098_v19 = vsub.f32 %v3248_v28, %v2088_v61  ;;  %v2242_v28 = vld [vmem:[#allocation7 + $0x128] sm:$0xff] }
 0x8cf   : > { %v2091_v23 = vpop.xlane.xlu1 %2090 }
 0x8d0   : > { %v2112_v49 = vmul.f32 1.442695, %v2098_v19  ;;  %v2099_v1 = vsub.f32 %v4853_v3, %v2091_v23  ;;  %v3526_v3 = vpack.c.bf16 %v2244_v15, %v2242_v28 }
 0x8d2   : > { %3789 = vpow2.f32 %v2112_v49  ;;  %v2114_v35 = vmul.f32 1.442695, %v2099_v1 }
 0x8d3   : > { %3791 = vpow2.f32 %v2108_v18 }
 0x8d4   : > { %v4885_v52 = vpop.eup %3781  ;;  %3793 = vpow2.f32 %v2114_v35 }
 0x8d5   : > { %v4887_v54 = vpop.eup %3783  ;;  %v2122_v57 = vsel %vm1116_vm0, %v4885_v52, 0.0 }
 0x8d6   : > { %v4891_v58 = vpop.eup %3785  ;;  %2123 = vadd.xlane.f32.xlu0 %v2122_v57  ;;  %v2116_v62 = vsel %vm1116_vm0, %v4887_v54, 0.0 }
 0x8d7   : > { %v2125_v59 = vsel %vm1116_vm0, %v4891_v58, 0.0  ;;  %v4895_v60 = vpop.eup %3787 }
 0x8d8   : > { %2126 = vadd.xlane.f32.xlu1 %v2125_v59  ;;  %v2119_v21 = vsel %vm1116_vm0, %v4895_v60, 0.0 }
 0x8da   : > { %2117 = vadd.xlane.f32.xlu0 %v2116_v62 }
 0x8dc   : > { %v4901_v9 = vpop.eup %3789  ;;  %2120 = vadd.xlane.f32.xlu1 %v2119_v21 }
 0x8dd   : > { %v2134_v45 = vsel %vm1116_vm0, %v4901_v9, 0.0  ;;  %v4905_v32 = vpop.eup %3791 }
 0x8de   : > { %2135 = vadd.xlane.f32.xlu0 %v2134_v45  ;;  %v2128_v63 = vsel %vm1116_vm0, %v4905_v32, 0.0 }
 0x8e2   : > { %2129 = vadd.xlane.f32.xlu0 %v2128_v63 }
 0x8ed   : > { %2424 = vrot.lane.b32.xlu1 %v4586_v40, %s4010_s19  ;;  %v2110_v40 = vmul.f32 1.442695, %v2097_v55 }
 0x8ef   : > { %3795 = vpow2.f32 %v2110_v40 }
 0x8f1   : > { %2426 = vrot.lane.b32.xlu1 %v4606_v47, %s4010_s19  ;;  %v4921_v47 = vpop.eup %3793 }
 0x8f8   : > { %2422 = vrot.lane.b32.xlu0 %v4564_v38, %s4010_s19  ;;  %v2137_v38 = vsel %vm1116_vm0, %v4921_v47, 0.0 }
 0x8f9   : > { %v4925_v25 = vpop.eup %3795 }
 0x8fc   : > { %2410 = vrot.lane.b32.xlu0 %v4562_v53, %s4010_s19  ;;  %v2131_v53 = vsel %vm1116_vm0, %v4925_v25, 0.0 }
 0x900   : > { %2414 = vrot.lane.b32.xlu0 %v4604_v42, %s4010_s19  ;;  %v2238_v42 = vld [vmem:[#allocation7 + $0x108] sm:$0xff] }
 0x901   : > { %v3522_v41 = vpack.c.bf16 %v2240_v4, %v2238_v42 }
 0x903   : > { %3523 = vmatprep.subr.bf16.mxu1 %v3522_v41 }
 0x904   : > { %3525 = vmatpush1.bf16.msra.mxu1 %v3524_v43 }
 0x905   : > { %3527 = vmatprep.subr.bf16.mxu1 %v3526_v3 }
 0x908   : > { %3529 = vmatpush1.bf16.msra.mxu1 %v3528_v27 }
 0x915   : > { %2138 = vadd.xlane.f32.xlu1 %v2137_v38 }
 0x919   : > { %2132 = vadd.xlane.f32.xlu1 %v2131_v53 }
 0x92a   : > { %2428 = vrot.lane.b32.xlu1 %v4626_v29, %s4010_s19  ;;  %v2248_v29 = vld [vmem:[#allocation7 + $0x158] sm:$0xff] }
 0x92e   : > { %2412 = vrot.lane.b32.xlu1 %v4584_v8, %s4010_s19  ;;  %v3530_v8 = vpack.c.bf16 %v2248_v29, %v2246_v48 }
 0x930   : > { %3531 = vmatprep.subr.bf16.mxu1 %v3530_v8 }
 0x932   : > { %2416 = vrot.lane.b32.xlu1 %v4624_v26, %s4010_s19  ;;  %v2247_v26 = vld [vmem:[#allocation7 + $0x150] sm:$0xff] }
 0x933   : > { %v3532_v37 = vpack.c.bf16 %v2247_v26, %v2245_v44 }
 0x935   : > { %3533 = vmatpush1.bf16.msra.mxu1 %v3532_v37 }
 0x936   : > { %3535 = vmatprep.subr.bf16.mxu1 %v3534_v7 }
 0x939   : > { %3537 = vmatpush1.bf16.msra.mxu1 %v3536_v50 }
 0x963   : > { %v2124_v22 = vpop.xlane.xlu0 %2123 }
 0x965   : > { %v2127_v51 = vpop.xlane.xlu1 %2126 }
 0x966   : > { %3797 = vrcp.f32 %v2127_v51 }
 0x967   : > { %v2118_v33 = vpop.xlane.xlu0 %2117 }
 0x968   : > { %3799 = vrcp.f32 %v2118_v33 }
 0x969   : > { %3801 = vrcp.f32 %v2124_v22  ;;  %v2121_v24 = vpop.xlane.xlu1 %2120 }
 0x96a   : > { %3803 = vrcp.f32 %v2121_v24 }
 0x96b   : > { %v2136_v2 = vpop.xlane.xlu0 %2135 }
 0x96d   : > { %v2425_v23 = vpop.permute.xlu1 %2424 }
 0x96f   : > { %v2130_v31 = vpop.xlane.xlu0 %2129 }
 0x970   : > { %v3798_v16 = vpop.eup %3797 }
 0x971   : > { %v2151_v57 = vmul.f32 %v3798_v16, %v4891_v58  ;;  %v2446_v58 = vsel %vm1116_vm0, %v2425_v23, 0  ;;  %v2427_v1 = vpop.permute.xlu1 %2426 }
 0x972   : > { %v3800_v61 = vpop.eup %3799 }
 0x973   : > { %v3802_v19 = vpop.eup %3801  ;;  %v2423_v18 = vpop.permute.xlu0 %2422  ;;  %v2148_v59 = vmul.f32 %v3800_v61, %v4887_v54 }
 0x974   : > { %v3804_v49 = vpop.eup %3803  ;;  %3622 = vmatprep.subr.msk.bf16.mxu0 %vm1116_vm0, %v2423_v18  ;;  %v2150_v21 = vmul.f32 %v3802_v19, %v4885_v52  ;;  %v2443_v17 = vsel %vm1116_vm0, %v2423_v18, 0  ;;  %v2449_v52 = vsel %vm1116_vm0, %v2427_v1, 0 }
 0x975   : > { %v2149_v62 = vmul.f32 %v3804_v49, %v4895_v60 }
 0x976   : > { %v2157_v63 = vpack.c.bf16 %v2151_v57, %v2150_v21 }
 0x977   : > { %v2156_v45 = vpack.c.bf16 %v2149_v62, %v2148_v59  ;;  %v2411_v43 = vpop.permute.xlu0 %2410 }
 0x979   : > { %3258 = vmatprep.mubr.msk.bf16.mxu0 %vm1116_vm0, %v2156_v45 }
 0x97a   : > { %3259 = vmatmul.mubr.msk.bf16.vlgmr.msra.gmra.mrb[48].mxu0 %vm1116_vm0, %v2157_v63 }
 0x97b   : > { %3267 = vmatpush3.bf16.xpose.msra.mxu0 %v2443_v17  ;;  %v2415_v6 = vpop.permute.xlu0 %2414 }
 0x97c   : > { %3623 = vmatprep.subr.msk.bf16.mxu0 %vm1116_vm0, %v2425_v23 }
 0x983   : > { %3269 = vmatpush3.bf16.xpose.msra.mxu0 %v2446_v58 }
 0x984   : > { %3624 = vmatprep.subr.msk.bf16.mxu0 %vm1116_vm0, %v2427_v1 }
 0x98b   : > { %3271 = vmatpush3.bf16.xpose.msra.mxu0 %v2449_v52 }
 0x9a2   : > { %v2139_v54 = vpop.xlane.xlu1 %2138 }
 0x9a3   : > { %3805 = vrcp.f32 %v2139_v54 }
 0x9a4   : > { %3807 = vrcp.f32 %v2130_v31 }
 0x9a5   : > { %3809 = vrcp.f32 %v2136_v2 }
 0x9a6   : > { %v2133_v60 = vpop.xlane.xlu1 %2132 }
 0x9a7   : > { %3811 = vrcp.f32 %v2133_v60 }
 0x9aa   : > { %v2429_v55 = vpop.permute.xlu1 %2428 }
 0x9ab   : > { %v2452_v35 = vsel %vm1116_vm0, %v2429_v55, 0  ;;  %3625 = vmatprep.subr.msk.bf16.mxu0 %vm1116_vm0, %v2429_v55 }
 0x9ac   : > { %3273 = vmatpush3.bf16.xpose.msra.mxu0 %v2452_v35 }
 0x9ad   : > { %v3806_v40 = vpop.eup %3805 }
 0x9ae   : > { %v3808_v38 = vpop.eup %3807  ;;  %v2155_v4 = vmul.f32 %v3806_v40, %v4921_v47  ;;  %v2413_v3 = vpop.permute.xlu1 %2412 }
 0x9af   : > { %v3810_v53 = vpop.eup %3809  ;;  %v2152_v11 = vmul.f32 %v3808_v38, %v4905_v32 }
 0x9b0   : > { %v2154_v12 = vmul.f32 %v3810_v53, %v4901_v9 }
 0x9b1   : > { %v3812_v42 = vpop.eup %3811 }
 0x9b2   : > { %v2153_v41 = vmul.f32 %v3812_v42, %v4925_v25  ;;  %v2159_v15 = vpack.c.bf16 %v2155_v4, %v2154_v12  ;;  %v2417_v32 = vpop.permute.xlu1 %2416 }
 0x9b4   : > { %v2158_v28 = vpack.c.bf16 %v2153_v41, %v2152_v11 }
 0x9b6   : > { %3262 = vmatprep.mubr.msk.bf16.mxu0 %vm1116_vm0, %v2158_v28 }
 0x9b7   : > { %3263 = vmatmul.mubr.msk.bf16.gmra.mrb[52].mxu0 %vm1116_vm0, %v2159_v15 }
 0x9b8   : > { %3274 = vmatprep.mubr.msk.bf16.mxu0 %vm1116_vm0, %v2411_v43 }
 0x9bf   : > { %3275 = vmatmul.mubr.msk.bf16.vlgmr.msra.gmra.mrb[56].mxu0 %vm1116_vm0, %v2413_v3 }
 0x9c0   : > { %3278 = vmatprep.mubr.msk.bf16.mxu0 %vm1116_vm0, %v2415_v6 }
 0x9c7   : > { %3279 = vmatmul.mubr.msk.bf16.gmra.mrb[60].mxu0 %vm1116_vm0, %v2417_v32 }
 0xa4d   : > { %v3260_v47 = vpop.f32.mrb[48].mxu0 }
 0xa4e   : > { %v2206_v9 = vpop.f32.mrb[49].mxu0 }
 0xa4f   : > { %v3261_v25 = vpop.f32.mrb[50].mxu0  ;;  %3075 = vmatmul.mubr.msk.f32.vlgmr.msra.gmra.mrb[40].mxu1 %vm1116_vm0, %v2206_v9 }
 0xa50   : > { %v2209_v5 = vpop.f32.mrb[51].mxu0  ;;  %2347 = vmatprep.mubr.f32.mxu1 %v4011_v13 }
 0xa53   : > { %3076 = vmatmul.mubr.msk.f32.gmra.mrb[42].mxu1 %vm1116_vm0, %v2209_v5 }
 0xa54   : > { %2353 = vmatprep.mubr.f32.mxu1 %v4011_v13 }
 0xa57   : > { %3077 = vmatmul.mubr.msk.f32.gmra.mrb[44].mxu1 %vm1116_vm0, %v3260_v47 }
 0xa58   : > { %2359 = vmatprep.mubr.f32.mxu1 %v4011_v13 }
 0xa5b   : > { %3078 = vmatmul.mubr.msk.f32.gmra.mrb[46].mxu1 %vm1116_vm0, %v3261_v25 }
 0xa5c   : > { %2365 = vmatprep.mubr.f32.mxu1 %v4011_v13 }
 0xa8a   : > { %v3264_v48 = vpop.f32.mrb[52].mxu0 }
 0xa8b   : > { %v2222_v29 = vpop.f32.mrb[53].mxu0 }
 0xa8c   : > { %v3265_v27 = vpop.f32.mrb[54].mxu0  ;;  %3079 = vmatmul.mubr.msk.f32.gmra.mrb[48].mxu1 %vm1116_vm0, %v2222_v29 }
 0xa8d   : > { %v2225_v8 = vpop.f32.mrb[55].mxu0  ;;  %2371 = vmatprep.mubr.f32.mxu1 %v4011_v13 }
 0xa90   : > { %3080 = vmatmul.mubr.msk.f32.gmra.mrb[50].mxu1 %vm1116_vm0, %v2225_v8 }
 0xa91   : > { %2377 = vmatprep.mubr.f32.mxu1 %v4011_v13 }
 0xa92   : > { %v3276_v44 = vpop.f32.mrb[56].mxu0 }
 0xa93   : > { %v2488_v26 = vpop.f32.mrb[57].mxu0  ;;  %v2525_v46 = vsel %vm1116_vm0, %v3276_v44, -inf }
 0xa94   : > { %3081 = vmatmul.mubr.msk.f32.gmra.mrb[52].mxu1 %vm1116_vm0, %v3264_v48  ;;  %v3277_v30 = vpop.f32.mrb[58].mxu0  ;;  %v2519_v34 = vsel %vm1116_vm0, %v2488_v26, -inf }
 0xa95   : > { %2520 = vmax.xlane.f32.xlu0 %v2519_v34  ;;  %v2491_v37 = vpop.f32.mrb[59].mxu0  ;;  %2383 = vmatprep.mubr.f32.mxu1 %v4011_v13  ;;  %v2528_v51 = vsel %vm1116_vm0, %v3277_v30, -inf }
 0xa96   : > { %v2522_v7 = vsel %vm1116_vm0, %v2491_v37, -inf }
 0xa97   : > { %2523 = vmax.xlane.f32.xlu1 %v2522_v7  ;;  %v2709_v7 = vld [vmem:[#allocation7 + $0x1a8] sm:$0xff] }
 0xa98   : > { %3082 = vmatmul.mubr.msk.f32.gmra.mrb[54].mxu1 %vm1116_vm0, %v3265_v27 }
 0xa99   : > { %2526 = vmax.xlane.f32.xlu0 %v2525_v46  ;;  %2820 = vmatprep.mubr.f32.mxu1 %v4011_v13  ;;  %v2711_v46 = vld [vmem:[#allocation7 + $0x1b8] sm:$0xff] }
 0xa9a   : > { %v3280_v10 = vpop.f32.mrb[60].mxu0 }
 0xa9b   : > { %v2504_v50 = vpop.f32.mrb[61].mxu0  ;;  %v2537_v16 = vsel %vm1116_vm0, %v3280_v10, -inf }
 0xa9c   : > { %v4978_v22 = vpop.f32.mrb[62].mxu0  ;;  %v2531_v2 = vsel %vm1116_vm0, %v2504_v50, -inf }
 0xa9d   : > { %2529 = vmax.xlane.f32.xlu0 %v2528_v51  ;;  %v4981_v33 = vpop.f32.mrb[63].mxu0  ;;  %v2540_v31 = vsel %vm1116_vm0, %v4978_v22, -inf  ;;  %v2710_v51 = vld [vmem:[#allocation7 + $0x1b0] sm:$0xff] }
 0xa9e   : > { %v2534_v24 = vsel %vm1116_vm0, %v4981_v33, -inf }
 0xa9f   : > { %2535 = vmax.xlane.f32.xlu1 %v2534_v24  ;;  %v2715_v24 = vld [vmem:[#allocation7 + $0x1d8] sm:$0xff] }
 0xaa1   : > { %2532 = vmax.xlane.f32.xlu0 %v2531_v2 }
 0xaa3   : > { %2541 = vmax.xlane.f32.xlu1 %v2540_v31  ;;  %v2712_v31 = vld [vmem:[#allocation7 + $0x1c0] sm:$0xff] }
 0xaa5   : > { %2538 = vmax.xlane.f32.xlu0 %v2537_v16  ;;  %v2714_v16 = vld [vmem:[#allocation7 + $0x1d0] sm:$0xff] }
 0xb22   : > { %v2521_v61 = vpop.xlane.xlu0 %2520  ;;  %v4989_v19 = vpop.f32.mrb[40].mxu1 }
 0xb23   : > { %v4991_v18 = vpop.f32.mrb[41].mxu1  ;;  %v2543_v49 = vsub.f32 %v2488_v26, %v2521_v61  ;;  %v2707_v26 = vld [vmem:[#allocation7 + $0x198] sm:$0xff]  ;;  %v2717_v61 = vld [vmem:[#allocation7 + $0x1e8] sm:$0xff] }
 0xb24   : > { %v2524_v57 = vpop.xlane.xlu1 %2523 }
 0xb25   : > { %v2551_v63 = vmul.f32 1.442695, %v2543_v49  ;;  %v2544_v17 = vsub.f32 %v2491_v37, %v2524_v57  ;;  %v2706_v37 = vld [vmem:[#allocation7 + $0x190] sm:$0xff]  ;;  %v2719_v49 = vld [vmem:[#allocation7 + $0x1f8] sm:$0xff]  ;;  %v5053_v57 = vpack.c.bf16 %v2714_v16, %v2712_v31 }
 0xb26   : > { %v2527_v59 = vpop.xlane.xlu0 %2526  ;;  %v4993_v62 = vpop.f32.mrb[42].mxu1 }
 0xb27   : > { %v2545_v21 = vsub.f32 %v3276_v44, %v2527_v59  ;;  %v4995_v45 = vpop.f32.mrb[43].mxu1  ;;  %v2553_v52 = vmul.f32 1.442695, %v2544_v17  ;;  %v5056_v59 = vpack.c.bf16 %v2719_v49, %v2717_v61 }
 0xb29   : > { %v2555_v23 = vmul.f32 1.442695, %v2545_v21  ;;  %v2716_v21 = vld [vmem:[#allocation7 + $0x1e0] sm:$0xff] }
 0xb2a   : > { %v2530_v58 = vpop.xlane.xlu0 %2529 }
 0xb2b   : > { %3813 = vpow2.f32 %v2555_v23  ;;  %v2546_v1 = vsub.f32 %v3277_v30, %v2530_v58  ;;  %v2704_v30 = vld [vmem:[#allocation7 + $0x180] sm:$0xff] }
 0xb2c   : > { %3815 = vpow2.f32 %v2551_v63  ;;  %v2536_v9 = vpop.xlane.xlu1 %2535  ;;  %v2718_v63 = vld [vmem:[#allocation7 + $0x1f0] sm:$0xff] }
 0xb2d   : > { %v2557_v54 = vmul.f32 1.442695, %v2546_v1  ;;  %v2548_v48 = vsub.f32 %v4981_v33, %v2536_v9  ;;  %v2713_v33 = vld [vmem:[#allocation7 + $0x1c8] sm:$0xff]  ;;  %v3552_v17 = vpack.c.bf16 %v2718_v63, %v2716_v21 }
 0xb2e   : > { %v2533_v60 = vpop.xlane.xlu0 %2532  ;;  %v5050_v2 = vpack.c.bf16 %v2715_v24, %v2713_v33 }
 0xb2f   : > { %3817 = vpow2.f32 %v2557_v54  ;;  %v2547_v55 = vsub.f32 %v2504_v50, %v2533_v60  ;;  %v2561_v27 = vmul.f32 1.442695, %v2548_v48  ;;  %v5043_v50 = vpack.c.bf16 %v2711_v46, %v2709_v7 }
 0xb30   : > { %3819 = vpow2.f32 %v2553_v52  ;;  %v2542_v25 = vpop.xlane.xlu1 %2541 }
 0xb31   : > { %v2559_v53 = vmul.f32 1.442695, %v2547_v55  ;;  %v2550_v5 = vsub.f32 %v4978_v22, %v2542_v25  ;;  %v2708_v22 = vld [vmem:[#allocation7 + $0x1a0] sm:$0xff] }
 0xb32   : > { %v2539_v35 = vpop.xlane.xlu0 %2538 }
 0xb33   : > { %v2549_v40 = vsub.f32 %v3280_v10, %v2539_v35  ;;  %v2565_v29 = vmul.f32 1.442695, %v2550_v5  ;;  %v5041_v10 = vpack.c.bf16 %v2706_v37, %v2704_v30 }
 0xb35   : > { %v4997_v38 = vpop.eup %3813  ;;  %v2563_v42 = vmul.f32 1.442695, %v2549_v40 }
 0xb36   : > { %v2573_v4 = vsel %vm1116_vm0, %v4997_v38, 0.0  ;;  %v5001_v11 = vpop.eup %3815 }
 0xb37   : > { %3821 = vpow2.f32 %v2563_v42  ;;  %2574 = vadd.xlane.f32.xlu0 %v2573_v4  ;;  %v2567_v12 = vsel %vm1116_vm0, %v5001_v11, 0.0 }
 0xb38   : > { %3823 = vpow2.f32 %v2559_v53 }
 0xb39   : > { %v5003_v41 = vpop.eup %3817  ;;  %3825 = vpow2.f32 %v2565_v29 }
 0xb3a   : > { %v2576_v28 = vsel %vm1116_vm0, %v5003_v41, 0.0  ;;  %v5009_v15 = vpop.eup %3819  ;;  %3827 = vpow2.f32 %v2561_v27 }
 0xb3b   : > { %2568 = vadd.xlane.f32.xlu0 %v2567_v12  ;;  %2577 = vadd.xlane.f32.xlu1 %v2576_v28  ;;  %v2570_v43 = vsel %vm1116_vm0, %v5009_v15, 0.0 }
 0xb3f   : > { %2571 = vadd.xlane.f32.xlu1 %v2570_v43 }
 0xb41   : > { %v5013_v3 = vpop.eup %3821 }
 0xb42   : > { %v2585_v6 = vsel %vm1116_vm0, %v5013_v3, 0.0  ;;  %v5017_v32 = vpop.eup %3823 }
 0xb43   : > { %2586 = vadd.xlane.f32.xlu0 %v2585_v6  ;;  %v2579_v47 = vsel %vm1116_vm0, %v5017_v32, 0.0  ;;  %v5029_v8 = vpop.eup %3825 }
 0xb44   : > { %v5033_v44 = vpop.eup %3827 }
 0xb47   : > { %2580 = vadd.xlane.f32.xlu0 %v2579_v47 }
 0xb50   : > { %2617 = vrot.lane.b32.xlu1 %v4650_v20, %s4010_s19  ;;  %v2588_v20 = vsel %vm1116_vm0, %v5029_v8, 0.0 }
 0xb54   : > { %2619 = vrot.lane.b32.xlu1 %v4656_v56, %s4010_s19  ;;  %v2705_v56 = vld [vmem:[#allocation7 + $0x188] sm:$0xff] }
 0xb55   : > { %v5039_v34 = vpack.c.bf16 %v2707_v26, %v2705_v56 }
 0xb57   : > { %3554 = vmatprep.subr.bf16.mxu1 %v5039_v34 }
 0xb58   : > { %3558 = vmatpush1.bf16.msra.mxu1 %v5041_v10 }
 0xb59   : > { %3555 = vmatprep.subr.bf16.mxu1 %v5043_v50 }
 0xb5d   : > { %2615 = vrot.lane.b32.xlu0 %v4644_v14, %s4010_s19  ;;  %v2582_v14 = vsel %vm1116_vm0, %v5033_v44, 0.0 }
 0xb78   : > { %2589 = vadd.xlane.f32.xlu1 %v2588_v20 }
 0xb7c   : > { %2583 = vadd.xlane.f32.xlu1 %v2582_v14 }
 0xb8d   : > { %2621 = vrot.lane.b32.xlu1 %v4662_v0, %s4010_s19  ;;  %v5047_v0 = vpack.c.bf16 %v2710_v51, %v2708_v22 }
 0xb8f   : > { %3559 = vmatpush1.bf16.msra.mxu1 %v5047_v0 }
 0xb90   : > { %3556 = vmatprep.subr.bf16.mxu1 %v5050_v2 }
 0xb93   : > { %3560 = vmatpush1.bf16.msra.mxu1 %v5053_v57 }
 0xb94   : > { %3557 = vmatprep.subr.bf16.mxu1 %v5056_v59 }
 0xb97   : > { %3561 = vmatpush1.bf16.msra.mxu1 %v3552_v17 }
 0xbc4   : > { %v2575_v23 = vpop.xlane.xlu0 %2574 }
 0xbc8   : > { %v2569_v58 = vpop.xlane.xlu0 %2568  ;;  %v2578_v1 = vpop.xlane.xlu1 %2577 }
 0xbc9   : > { %3829 = vrcp.f32 %v2569_v58 }
 0xbcc   : > { %v2572_v52 = vpop.xlane.xlu1 %2571 }
 0xbcd   : > { %3831 = vrcp.f32 %v2572_v52 }
 0xbce   : > { %3833 = vrcp.f32 %v2578_v1 }
 0xbcf   : > { %3835 = vrcp.f32 %v2575_v23 }
 0xbd0   : > { %v2587_v54 = vpop.xlane.xlu0 %2586  ;;  %v2618_v40 = vpop.permute.xlu1 %2617 }
 0xbd3   : > { %v3830_v55 = vpop.eup %3829 }
 0xbd4   : > { %v2581_v60 = vpop.xlane.xlu0 %2580  ;;  %v2599_v42 = vmul.f32 %v3830_v55, %v5001_v11  ;;  %v2620_v28 = vpop.permute.xlu1 %2619 }
 0xbd7   : > { %v3832_v35 = vpop.eup %3831 }
 0xbd8   : > { %v2616_v53 = vpop.permute.xlu0 %2615  ;;  %v2600_v4 = vmul.f32 %v3832_v35, %v5009_v15  ;;  %v3834_v6 = vpop.eup %3833 }
 0xbd9   : > { %3282 = vmatprep.subr.bf16.mxu0 %v2616_v53  ;;  %v3836_v15 = vpop.eup %3835  ;;  %v2602_v47 = vmul.f32 %v3834_v6, %v5003_v41 }
 0xbda   : > { %3283 = vmatpush3.bf16.msra.mxu0 %v2616_v53  ;;  %v2607_v12 = vpack.c.bf16 %v2600_v4, %v2599_v42  ;;  %v2601_v25 = vmul.f32 %v3836_v15, %v4997_v38 }
 0xbdb   : > { %3284 = vmatprep.subr.bf16.mxu0 %v2618_v40 }
 0xbdc   : > { %3290 = vmatprep.mubr.msk.bf16.mxu0 %vm1116_vm0, %v2607_v12  ;;  %v2608_v5 = vpack.c.bf16 %v2602_v47, %v2601_v25 }
 0xbde   : > { %3285 = vmatpush3.bf16.msra.mxu0 %v2618_v40 }
 0xbdf   : > { %3286 = vmatprep.subr.bf16.mxu0 %v2620_v28 }
 0xbe2   : > { %3287 = vmatpush3.bf16.msra.mxu0 %v2620_v28 }
 0xc05   : > { %v2590_v43 = vpop.xlane.xlu1 %2589 }
 0xc06   : > { %3837 = vrcp.f32 %v2590_v43 }
 0xc07   : > { %3839 = vrcp.f32 %v2581_v60 }
 0xc08   : > { %3841 = vrcp.f32 %v2587_v54 }
 0xc09   : > { %v2584_v11 = vpop.xlane.xlu1 %2583 }
 0xc0a   : > { %3843 = vrcp.f32 %v2584_v11 }
 0xc0d   : > { %v2622_v9 = vpop.permute.xlu1 %2621 }
 0xc0e   : > { %3288 = vmatprep.subr.bf16.mxu0 %v2622_v9 }
 0xc0f   : > { %3289 = vmatpush3.bf16.msra.mxu0 %v2622_v9 }
 0xc10   : > { %3539 = vmatprep.subr.bf16.mxu0 %v5039_v34  ;;  %v3838_v48 = vpop.eup %3837 }
 0xc11   : > { %v3840_v29 = vpop.eup %3839  ;;  %v2606_v14 = vmul.f32 %v3838_v48, %v5029_v8 }
 0xc12   : > { %3291 = vmatmul.mubr.msk.bf16.vlgmr.msra.gmra.mrb[64].mxu0 %vm1116_vm0, %v2608_v5  ;;  %v3842_v27 = vpop.eup %3841  ;;  %v2603_v41 = vmul.f32 %v3840_v29, %v5017_v32 }
 0xc13   : > { %3541 = vmatpush1.bf16.msra.mxu0 %v5041_v10  ;;  %v2605_v56 = vmul.f32 %v3842_v27, %v5013_v3  ;;  %v1115_v10 = vld [vmem:[%s5180_s6] sm:$0x3] }
 0xc14   : > { %v3844_v20 = vpop.eup %3843  ;;  %3543 = vmatprep.subr.bf16.mxu0 %v5043_v50  ;;  %v2877_v50 = vrot.slane %v1115_v10, %v4381_v39  ;;  %v2881_v22 = vrot.slane %v1115_v10, %v4378_v36 }
 0xc15   : > { %v2604_v38 = vmul.f32 %v3844_v20, %v5033_v44  ;;  %v2610_v30 = vpack.c.bf16 %v2606_v14, %v2605_v56 }
 0xc17   : > { %v2609_v26 = vpack.c.bf16 %v2604_v38, %v2603_v41  ;;  %3545 = vmatpush1.bf16.msra.mxu0 %v5047_v0 }
 0xc18   : > { %3547 = vmatprep.subr.bf16.mxu0 %v5050_v2 }
 0xc19   : > { %3294 = vmatprep.mubr.msk.bf16.mxu0 %vm1116_vm0, %v2609_v26 }
 0xc1a   : > { %3295 = vmatmul.mubr.msk.bf16.gmra.mrb[68].mxu0 %vm1116_vm0, %v2610_v30 }
 0xc1b   : > { %3549 = vmatpush1.bf16.msra.mxu0 %v5053_v57  ;;  %2808 = vmatprep.mubr.f32.mxu0 %v4011_v13 }
 0xc1c   : > { %3551 = vmatprep.subr.bf16.mxu0 %v5056_v59 }
 0xc1f   : > { %3553 = vmatpush1.bf16.msra.mxu0 %v3552_v17 }
 0xce5   : > { %v3292_v32 = vpop.f32.mrb[64].mxu0 }
 0xce6   : > { %v2673_v8 = vpop.f32.mrb[65].mxu0  ;;  %3093 = vmatmul.mubr.msk.f32.vlgmr.msra.gmra.mrb[44].mxu1 %vm1116_vm0, %v3292_v32 }
 0xce7   : > { %v3293_v3 = vpop.f32.mrb[66].mxu0  ;;  %3091 = vmatmul.mubr.msk.f32.vlgmr.msra.gmra.mrb[72].mxu0 %vm1116_vm0, %v2673_v8  ;;  %2826 = vmatprep.mubr.f32.mxu1 %v4011_v13 }
 0xce8   : > { %v2676_v44 = vpop.f32.mrb[67].mxu0  ;;  %2814 = vmatprep.mubr.f32.mxu0 %v4011_v13 }
 0xcea   : > { %3094 = vmatmul.mubr.msk.f32.gmra.mrb[46].mxu1 %vm1116_vm0, %v3293_v3 }
 0xceb   : > { %3092 = vmatmul.mubr.msk.f32.gmra.mrb[74].mxu0 %vm1116_vm0, %v2676_v44  ;;  %2832 = vmatprep.mubr.f32.mxu1 %v4011_v13 }
 0xced   : > { %v3296_v34 = vpop.f32.mrb[68].mxu0 }
 0xcee   : > { %v2689_v37 = vpop.f32.mrb[69].mxu0 }
 0xcef   : > { %v3297_v7 = vpop.f32.mrb[70].mxu0  ;;  %3095 = vmatmul.mubr.msk.f32.gmra.mrb[48].mxu1 %vm1116_vm0, %v2689_v37 }
 0xcf0   : > { %v2692_v46 = vpop.f32.mrb[71].mxu0  ;;  %2838 = vmatprep.mubr.f32.mxu1 %v4011_v13 }
 0xcf3   : > { %3096 = vmatmul.mubr.msk.f32.gmra.mrb[50].mxu1 %vm1116_vm0, %v2692_v46 }
 0xcf4   : > { %2844 = vmatprep.mubr.f32.mxu1 %v4011_v13 }
 0xcf7   : > { %3097 = vmatmul.mubr.msk.f32.gmra.mrb[52].mxu1 %vm1116_vm0, %v3296_v34 }
 0xcf8   : > { %2850 = vmatprep.mubr.f32.mxu1 %v4011_v13 }
 0xcfb   : > { %3098 = vmatmul.mubr.msk.f32.gmra.mrb[54].mxu1 %vm1116_vm0, %v3297_v7 }
 0xdb9   : > { %v2822_v51 = vpop.f32.mrb[44].mxu1 }
 0xdba   : > { %v2888_v33 = vadd.f32 %v2877_v50, %v2822_v51  ;;  %v2810_v24 = vpop.f32.mrb[72].mxu0  ;;  %v2824_v0 = vpop.f32.mrb[45].mxu1 }
 0xdbb   : > { %v3562_v2 = vadd.f32 %v2810_v24, %v4989_v19  ;;  %v2889_v31 = vadd.f32 %v2881_v22, %v2824_v0  ;;  %v2812_v16 = vpop.f32.mrb[73].mxu0 }
 0xdbc   : > { %2904 = vst [vmem:[%s5102_s22 + $0x20] sm:$0xff] %v2888_v33  ;;  %v3563_v39 = vadd.f32 %v2812_v16, %v4991_v18 }
 0xdbd   : > { %v2884_v36 = vadd.f32 %v3562_v2, %v2877_v50  ;;  %2905 = vst [vmem:[%s5102_s22 + $0x28] sm:$0xff] %v2889_v31  ;;  %v2828_v13 = vpop.f32.mrb[46].mxu1 }
 0xdbe   : > { %v2885_v61 = vadd.f32 %v3563_v39, %v2881_v22  ;;  %v2890_v19 = vadd.f32 %v2877_v50, %v2828_v13  ;;  %v2816_v49 = vpop.f32.mrb[74].mxu0  ;;  %v2830_v57 = vpop.f32.mrb[47].mxu1 }
 0xdbf   : > { %2900 = vst [vmem:[%s5102_s22] sm:$0xff] %v2884_v36  ;;  %v3564_v59 = vadd.f32 %v2816_v49, %v4993_v62  ;;  %v2891_v21 = vadd.f32 %v2881_v22, %v2830_v57  ;;  %v2818_v63 = vpop.f32.mrb[75].mxu0 }
 0xdc0   : > { %2901 = vst [vmem:[%s5102_s22 + $0x8] sm:$0xff] %v2885_v61  ;;  %2906 = vst [vmem:[%s5102_s22 + $0x30] sm:$0xff] %v2890_v19  ;;  %v3565_v18 = vadd.f32 %v2818_v63, %v4995_v45 }
 0xdc1   : > { %v2886_v17 = vadd.f32 %v3564_v59, %v2877_v50  ;;  %2907 = vst [vmem:[%s5102_s22 + $0x38] sm:$0xff] %v2891_v21 }
 0xdc2   : > { %v2887_v23 = vadd.f32 %v3565_v18, %v2881_v22  ;;  %v2834_v58 = vpop.f32.mrb[48].mxu1 }
 0xdc3   : > { %2902 = vst [vmem:[%s5102_s22 + $0x10] sm:$0xff] %v2886_v17  ;;  %v2892_v1 = vadd.f32 %v2877_v50, %v2834_v58  ;;  %v2836_v52 = vpop.f32.mrb[49].mxu1 }
 0xdc4   : > { %2903 = vst [vmem:[%s5102_s22 + $0x18] sm:$0xff] %v2887_v23  ;;  %v2893_v62 = vadd.f32 %v2881_v22, %v2836_v52 }
 0xdc5   : > { %2908 = vst [vmem:[%s5102_s22 + $0x40] sm:$0xff] %v2892_v1 }
 0xdc6   : > { %2909 = vst [vmem:[%s5102_s22 + $0x48] sm:$0xff] %v2893_v62  ;;  %v2840_v54 = vpop.f32.mrb[50].mxu1 }
 0xdc7   : > { %v2894_v60 = vadd.f32 %v2877_v50, %v2840_v54  ;;  %v2842_v45 = vpop.f32.mrb[51].mxu1 }
 0xdc8   : > { %v2895_v55 = vadd.f32 %v2881_v22, %v2842_v45 }
 0xdc9   : > { %2910 = vst [vmem:[%s5102_s22 + $0x50] sm:$0xff] %v2894_v60 }
 0xdca   : > { %2911 = vst [vmem:[%s5102_s22 + $0x58] sm:$0xff] %v2895_v55  ;;  %v2846_v35 = vpop.f32.mrb[52].mxu1 }
 0xdcb   : > { %v2896_v40 = vadd.f32 %v2877_v50, %v2846_v35  ;;  %v2848_v53 = vpop.f32.mrb[53].mxu1 }
 0xdcc   : > { %v2897_v42 = vadd.f32 %v2881_v22, %v2848_v53 }
 0xdcd   : > { %2912 = vst [vmem:[%s5102_s22 + $0x60] sm:$0xff] %v2896_v40 }
 0xdce   : > { %2913 = vst [vmem:[%s5102_s22 + $0x68] sm:$0xff] %v2897_v42  ;;  %v2852_v4 = vpop.f32.mrb[54].mxu1 }
 0xdcf   : > { %v2898_v12 = vadd.f32 %v2877_v50, %v2852_v4  ;;  %v2854_v28 = vpop.f32.mrb[55].mxu1 }
 0xdd0   : > { %v2899_v43 = vadd.f32 %v2881_v22, %v2854_v28 }
 0xdd1   : > { %2914 = vst [vmem:[%s5102_s22 + $0x70] sm:$0xff] %v2898_v12 }
 0xdd2   : > { %2915 = vst [vmem:[%s5102_s22 + $0x78] sm:$0xff] %v2899_v43 }
 0xdd3   : > { %3944 = shalt.err (!%p3941_p2)
}
 0xdd4   : > { %s3945_s19 = scalar_lea.hbm %s5126_s9, 2048  ;;  %s3949_s22 = scalar_lea.hbm %s5181_s7, 4096 }
 0xdd5   : > { %p3946_p13 = scmp.ne.s32.totalorder %s5126_s9, %s3945_s19  ;;  %p3950_p4 = scmp.lt.u32.totalorder %s5126_s9, %s5181_s7 }
 0xdd6   : > { %p3951_p7 = scmp.lt.u32.totalorder %s3949_s22, %s3945_s19  ;;  %p3953_p11 = scmp.lt.u32.totalorder %s3945_s19, %s5126_s9 }
 0xdd7   : > { %p3947_p6 = pnand %p3946_p13, %p5197_p0 }
 0xdd8   : > { %p3952_p8 = por %p3951_p7, %p3950_p4 }
 0xdd9   : > { %p3948_p10 = pneg %p3947_p6 }
 0xdda   : > { %p3954_p1 = por %p3953_p11, %p3952_p8 }
 0xddc   : > { %p3955_p3 = pnand %p3954_p1, %p3948_p10 }
 0xdde   : > { %3958 = shalt.err (!%p3955_p3)
}
 0xddf   : > { %s4013_s30 = smov 256   ;;  %s4014_s23 = smov 16  }
 0xde0   : > { %3636 = dma.vmem_to_hbm [thread:$0]  (%p5197_p0), %s5128_s18, 2048, %s5126_s9, %s2917_s28, %s4013_s30, %s4013_s30, %s4014_s23  }
 0xde1 PF: > { %s2945_s11 = sand.u32 1, %s3989_s24   ;;  %p5198_p5 = scmp.ne.s32.totalorder %s5187_s8, 0 }
 0xde2   : > { %p5199_p9 = scmp.ge.s32.totalorder %s4001_s27, 2  ;;  %s2946_s10 = scalar_lea.sflag [#allocation4], %s2945_s11 }
 0xde4   : > { %p3650_p12 = pnand %p5199_p9, %p5198_p5 }
 0xde6   : > { %3984 = dma.done.wait (!%p3650_p12), %s2946_s10, 2048  }
 0xde7   : > { %3986 = vsyncadd (!%p3650_p12), %s2946_s10, 4294965248  ;;  %p21_p2 = scmp.ge.s32.totalorder %s4168_s13, 4   ;;  %s5200_s24 = smov %s3993_s25 }
 0xde8   : > { %s5201_s25 = smov %s3997_s26  ;;  %s5202_s26 = smov %s4177_s17 }
 0xde9   : > { %s5203_s27 = smov %s4168_s13  ;;  %23 = sbr.rel (!%p21_p2) target bundleno = 6 (0x6), region = 101 }
 0xdf0   :  { %2951 = vsyncpa [#allocation3], 1 }
 0xdf1   :  { %2953 = vsyncpa [#allocation3 + $0x1], 1 }
 0xdf2   :  { %2954 = vsyncpa [#allocation6], 1 }
 0xdf3   :  { %2955 = vsyncpa [#allocation4], 1 }
 0xdf4   :  { %2957 = vsyncpa [#allocation4 + $0x1], 1 }

</bundles_post_ra>
